<compile_context>
chip_gen: v7x
topology: tpu7x:2x2x1
jax: 0.10.0
libtpu: 0.0.40
codegen_flags: <defaults>
</compile_context>

<pallas_src>
import jax
import jax.numpy as jnp
from jax.experimental import pallas as pl
from jax.experimental.pallas import tpu as pltpu

# ---- module hyper-parameters (matching ResNet.__init__ defaults) -----------
INPUT_DIM = 2
INDEX_DIM = 1
HIDDEN_DIM = 64
N_HIDDEN_LAYERS = 20
Z_INPUT = False  # config.sde != 'cld'  -> in_dim = input_dim + index_dim
IN_DIM = INPUT_DIM * 2 + INDEX_DIM if Z_INPUT else INPUT_DIM + INDEX_DIM
OUT_DIM = INPUT_DIM
U_DIM = IN_DIM - INDEX_DIM  # feature part of the first layer's input


def _silu(x):
    # nn.SiLU: x * sigmoid(x).  approx reciprocal -> EUP slot (exp is already
    # there), freeing VPU slots in the latency-bound layer chain.
    return x * pl.reciprocal(1.0 + jnp.exp(-x), approx=True)


# ---- Pallas kernel: full forward pass runs in VMEM -------------------------
def _make_kernel(bt, n_sub):
    sub = bt // n_sub

    def kernel(u_ref, lt_ref,
               w0x_ref, w0t_ref, b0_ref,
               wx_ref, wt_ref, b_ref,
               wlx_ref, wlt_ref, bl_ref,
               out_ref, tb_ref):
        lt = lt_ref[...]                                   # (bt, 1) f32

        # Hoisted time-bias for every hidden layer in one vector pass:
        #   tb[i] = log(t) * w_t[i] + b[i]   -> (L, bt, H) in VMEM scratch.
        tb_ref[...] = lt[None, :, :] * wt_ref[...] + b_ref[...]

        tb0 = lt * w0t_ref[...] + b0_ref[...]              # (bt, H)   f32
        tbl = lt * wlt_ref[...] + bl_ref[...]              # (bt, OUT) f32

        w0x = w0x_ref[...]                                 # (U, H)  bf16
        wlx = wlx_ref[...]                                 # (H, O)  bf16

        # First layer, split into n_sub independent batch sub-tiles so the
        # scheduler can interleave MXU drain / EUP / VPU work between them.
        hs = []
        for s in range(n_sub):
            u = u_ref[pl.ds(s * sub, sub), :].astype(jnp.bfloat16)
            h0 = (jnp.dot(u, w0x, preferred_element_type=jnp.float32)
                  + tb0[s * sub:(s + 1) * sub, :])
            hs.append(_silu(h0))

        # Fully unrolled residual hidden-layer chain (static weight slices).
        for i in range(N_HIDDEN_LAYERS):
            wxi = wx_ref[i]                                # (H, H) bf16
            for s in range(n_sub):
                h = hs[s]
                h_new = (jnp.dot(h.astype(jnp.bfloat16), wxi,
                                 preferred_element_type=jnp.float32)
                         + tb_ref[i, pl.ds(s * sub, sub), :])
                hs[s] = _silu(h + h_new)

        # Output layer (no activation).
        for s in range(n_sub):
            o = (jnp.dot(hs[s].astype(jnp.bfloat16), wlx,
                         preferred_element_type=jnp.float32)
                 + tbl[s * sub:(s + 1) * sub, :])
            out_ref[pl.ds(s * sub, sub), :] = o.astype(out_ref.dtype)

    return kernel


# ---- wrapper ----------------------------------------------------------------
def resnet_forward(u, t, params, *, batch_tile=256):
    B = u.shape[0]
    u = u.astype(jnp.float32)
    lt = jnp.log(t).reshape(B, 1).astype(jnp.float32)

    # Pad batch to a multiple of 8 (f32 sublane tile) / to the batch tile.
    if B >= batch_tile:
        bt = batch_tile
    else:
        bt = max(8, ((B + 7) // 8) * 8)
    B_pad = ((B + bt - 1) // bt) * bt
    if B_pad != B:
        u = jnp.pad(u, ((0, B_pad - B), (0, 0)))
        lt = jnp.pad(lt, ((0, B_pad - B), (0, 0)))

    n_sub = 2 if bt % 16 == 0 else 1
    grid = (B_pad // bt,)

    args = (u, lt,
            params["w0x"].astype(jnp.bfloat16), params["w0t"], params["b0"],
            params["wx"].astype(jnp.bfloat16), params["wt"], params["b"],
            params["wlx"].astype(jnp.bfloat16), params["wlt"], params["bl"])

    def row_spec(shape):
        return pl.BlockSpec(shape, lambda i: (i, 0))

    def full2(shape):
        return pl.BlockSpec(shape, lambda i: (0, 0))

    def full3(shape):
        return pl.BlockSpec(shape, lambda i: (0, 0, 0))

    in_specs = [
        row_spec((bt, U_DIM)),                              # u
        row_spec((bt, 1)),                                  # log(t)
        full2((U_DIM, HIDDEN_DIM)),                         # w0x
        full2((1, HIDDEN_DIM)),                             # w0t
        full2((1, HIDDEN_DIM)),                             # b0
        full3((N_HIDDEN_LAYERS, HIDDEN_DIM, HIDDEN_DIM)),   # wx
        full3((N_HIDDEN_LAYERS, 1, HIDDEN_DIM)),            # wt
        full3((N_HIDDEN_LAYERS, 1, HIDDEN_DIM)),            # b
        full2((HIDDEN_DIM, OUT_DIM)),                       # wlx
        full2((1, OUT_DIM)),                                # wlt
        full2((1, OUT_DIM)),                                # bl
    ]

    out = pl.pallas_call(
        _make_kernel(bt, n_sub),
        out_shape=jax.ShapeDtypeStruct((B_pad, OUT_DIM), jnp.float32),
        grid_spec=pltpu.PrefetchScalarGridSpec(
            num_scalar_prefetch=0,
            grid=grid,
            in_specs=in_specs,
            out_specs=row_spec((bt, OUT_DIM)),
            scratch_shapes=[pltpu.VMEM((N_HIDDEN_LAYERS, bt, HIDDEN_DIM),
                                       jnp.float32)]),
        compiler_params=pltpu.CompilerParams(
            dimension_semantics=("parallel",)),
    )(*args)
    return out[:B]


# ---- deterministic parameter init (PyTorch nn.Linear-style uniform) ---------
def init_params(key):
    def linear(k, fan_in, fan_out):
        k1, k2 = jax.random.split(k)
        bound = 1.0 / jnp.sqrt(jnp.asarray(fan_in, jnp.float32))
        w = jax.random.uniform(k1, (fan_in, fan_out), jnp.float32, -bound, bound)
        b = jax.random.uniform(k2, (1, fan_out), jnp.float32, -bound, bound)
        return w, b

    keys = jax.random.split(key, N_HIDDEN_LAYERS + 2)

    w0, b0 = linear(keys[0], IN_DIM, HIDDEN_DIM)
    wx_list, wt_list, b_list = [], [], []
    for i in range(N_HIDDEN_LAYERS):
        w, b = linear(keys[i + 1], HIDDEN_DIM + INDEX_DIM, HIDDEN_DIM)
        wx_list.append(w[:HIDDEN_DIM])          # (HIDDEN, HIDDEN)
        wt_list.append(w[HIDDEN_DIM:])          # (1, HIDDEN)
        b_list.append(b)                        # (1, HIDDEN)
    wl, bl = linear(keys[-1], HIDDEN_DIM + INDEX_DIM, OUT_DIM)

    return dict(
        w0x=w0[:U_DIM], w0t=w0[U_DIM:], b0=b0,
        wx=jnp.stack(wx_list),                  # (20, HIDDEN, HIDDEN)
        wt=jnp.stack(wt_list),                  # (20, 1, HIDDEN)
        b=jnp.stack(b_list),                    # (20, 1, HIDDEN)
        wlx=wl[:HIDDEN_DIM], wlt=wl[HIDDEN_DIM:], bl=bl,
    )


# ---- pure-JAX reference (mirrors the torch forward) --------------------------
def resnet_ref(u, t, params, *, matmul_dtype=jnp.float32):
    lt = jnp.log(t).reshape(-1, 1).astype(jnp.float32)

    def mm(a, w):
        return jnp.dot(a.astype(matmul_dtype), w.astype(matmul_dtype),
                       preferred_element_type=jnp.float32)

    h = jax.nn.silu(mm(u, params["w0x"]) + lt * params["w0t"] + params["b0"])
    for i in range(N_HIDDEN_LAYERS):
        h_new = mm(h, params["wx"][i]) + lt * params["wt"][i] + params["b"][i]
        h = jax.nn.silu(h + h_new)
    return mm(h, params["wlx"]) + lt * params["wlt"] + params["bl"]


if __name__ == "__main__":
    key = jax.random.PRNGKey(0)
    k_u, k_t, k_p = jax.random.split(key, 3)

    B = 16
    u = jax.random.normal(k_u, (B, U_DIM), jnp.float32)             # (16, 2)
    t = jax.random.uniform(k_t, (B,), jnp.float32, 0.1, 1.0)        # positive for log

    params = init_params(k_p)

    out = jax.block_until_ready(resnet_forward(u, t, params))

    # bf16-matmul reference (matches kernel numerics) and full-f32 reference.
    ref_bf16 = resnet_ref(u, t, params, matmul_dtype=jnp.bfloat16)
    ref_f32 = resnet_ref(u, t, params)

    assert out.shape == (B, OUT_DIM)
    assert jnp.allclose(out, ref_bf16, atol=2e-2, rtol=2e-2), (out, ref_bf16)
    assert jnp.allclose(out, ref_f32, atol=1e-1, rtol=1e-1), (out, ref_f32)
    print("KERNEL_OK")
</pallas_src>

<mosaic_0001>
module attributes {stable_mosaic.version = 11 : i64} {
  func.func @kernel(%arg0: i32, %arg1: memref<16x2xf32, #tpu.memory_space<vmem>>, %arg2: memref<16x1xf32, #tpu.memory_space<vmem>>, %arg3: memref<2x64xbf16, #tpu.memory_space<vmem>>, %arg4: memref<1x64xf32, #tpu.memory_space<vmem>>, %arg5: memref<1x64xf32, #tpu.memory_space<vmem>>, %arg6: memref<20x64x64xbf16, #tpu.memory_space<vmem>>, %arg7: memref<20x1x64xf32, #tpu.memory_space<vmem>>, %arg8: memref<20x1x64xf32, #tpu.memory_space<vmem>>, %arg9: memref<64x2xbf16, #tpu.memory_space<vmem>>, %arg10: memref<1x2xf32, #tpu.memory_space<vmem>>, %arg11: memref<1x2xf32, #tpu.memory_space<vmem>>, %arg12: memref<16x2xf32, #tpu.memory_space<vmem>>, %arg13: memref<20x16x64xf32, #tpu.memory_space<vmem>>) attributes {dimension_semantics = [#tpu.dimension_semantics<parallel>], iteration_bounds = array<i64: 1>, scalar_prefetch = 0 : i64, scratch_operands = 1 : i64, tpu.core_type = #tpu.core_type<tc>, window_params = [{transform_indices = @transform_0, window_bounds = array<i64: 16, 2>}, {transform_indices = @transform_1, window_bounds = array<i64: 16, 1>}, {pipeline_mode = #tpu.pipeline_mode<synchronous>, transform_indices = @transform_2, window_bounds = array<i64: 2, 64>}, {pipeline_mode = #tpu.pipeline_mode<synchronous>, transform_indices = @transform_3, window_bounds = array<i64: 1, 64>}, {pipeline_mode = #tpu.pipeline_mode<synchronous>, transform_indices = @transform_4, window_bounds = array<i64: 1, 64>}, {pipeline_mode = #tpu.pipeline_mode<synchronous>, transform_indices = @transform_5, window_bounds = array<i64: 20, 64, 64>}, {pipeline_mode = #tpu.pipeline_mode<synchronous>, transform_indices = @transform_6, window_bounds = array<i64: 20, 1, 64>}, {pipeline_mode = #tpu.pipeline_mode<synchronous>, transform_indices = @transform_7, window_bounds = array<i64: 20, 1, 64>}, {pipeline_mode = #tpu.pipeline_mode<synchronous>, transform_indices = @transform_8, window_bounds = array<i64: 64, 2>}, {pipeline_mode = #tpu.pipeline_mode<synchronous>, transform_indices = @transform_9, window_bounds = array<i64: 1, 2>}, {pipeline_mode = #tpu.pipeline_mode<synchronous>, transform_indices = @transform_10, window_bounds = array<i64: 1, 2>}, {transform_indices = @transform_11, window_bounds = array<i64: 16, 2>}]} {
    %c0 = arith.constant 0 : index
    %c0_0 = arith.constant 0 : index
    %0 = vector.load %arg2[%c0, %c0_0] : memref<16x1xf32, #tpu.memory_space<vmem>>, vector<16x1xf32>
    %1 = vector.shape_cast %0 : vector<16x1xf32> to vector<1x16x1xf32>
    %c0_1 = arith.constant 0 : index
    %c0_2 = arith.constant 0 : index
    %c0_3 = arith.constant 0 : index
    %2 = vector.load %arg7[%c0_1, %c0_2, %c0_3] : memref<20x1x64xf32, #tpu.memory_space<vmem>>, vector<20x1x64xf32>
    %3 = vector.broadcast %1 : vector<1x16x1xf32> to vector<20x16x64xf32>
    %4 = vector.broadcast %2 : vector<20x1x64xf32> to vector<20x16x64xf32>
    %5 = arith.mulf %3, %4 : vector<20x16x64xf32>
    %c0_4 = arith.constant 0 : index
    %c0_5 = arith.constant 0 : index
    %c0_6 = arith.constant 0 : index
    %6 = vector.load %arg8[%c0_4, %c0_5, %c0_6] : memref<20x1x64xf32, #tpu.memory_space<vmem>>, vector<20x1x64xf32>
    %7 = vector.broadcast %6 : vector<20x1x64xf32> to vector<20x16x64xf32>
    %8 = arith.addf %5, %7 : vector<20x16x64xf32>
    %c0_7 = arith.constant 0 : index
    %c0_8 = arith.constant 0 : index
    %c0_9 = arith.constant 0 : index
    %9 = vector.load %arg13[%c0_7, %c0_8, %c0_9] : memref<20x16x64xf32, #tpu.memory_space<vmem>>, vector<20x16x64xf32>
    tpu.vector_store %arg13[%c0_7, %c0_8, %c0_9], %8 {strides = array<i32>} : memref<20x16x64xf32, #tpu.memory_space<vmem>>, vector<20x16x64xf32>,
    %c0_10 = arith.constant 0 : index
    %c0_11 = arith.constant 0 : index
    %10 = vector.load %arg4[%c0_10, %c0_11] : memref<1x64xf32, #tpu.memory_space<vmem>>, vector<1x64xf32>
    %11 = vector.broadcast %0 : vector<16x1xf32> to vector<16x64xf32>
    %12 = vector.broadcast %10 : vector<1x64xf32> to vector<16x64xf32>
    %13 = arith.mulf %11, %12 : vector<16x64xf32>
    %c0_12 = arith.constant 0 : index
    %c0_13 = arith.constant 0 : index
    %14 = vector.load %arg5[%c0_12, %c0_13] : memref<1x64xf32, #tpu.memory_space<vmem>>, vector<1x64xf32>
    %15 = vector.broadcast %14 : vector<1x64xf32> to vector<16x64xf32>
    %16 = arith.addf %13, %15 : vector<16x64xf32>
    %c0_14 = arith.constant 0 : index
    %c0_15 = arith.constant 0 : index
    %17 = vector.load %arg10[%c0_14, %c0_15] : memref<1x2xf32, #tpu.memory_space<vmem>>, vector<1x2xf32>
    %18 = vector.broadcast %0 : vector<16x1xf32> to vector<16x2xf32>
    %19 = vector.broadcast %17 : vector<1x2xf32> to vector<16x2xf32>
    %20 = arith.mulf %18, %19 : vector<16x2xf32>
    %c0_16 = arith.constant 0 : index
    %c0_17 = arith.constant 0 : index
    %21 = vector.load %arg11[%c0_16, %c0_17] : memref<1x2xf32, #tpu.memory_space<vmem>>, vector<1x2xf32>
    %22 = vector.broadcast %21 : vector<1x2xf32> to vector<16x2xf32>
    %23 = arith.addf %20, %22 : vector<16x2xf32>
    %c0_18 = arith.constant 0 : index
    %c0_19 = arith.constant 0 : index
    %24 = vector.load %arg3[%c0_18, %c0_19] : memref<2x64xbf16, #tpu.memory_space<vmem>>, vector<2x64xbf16>
    %c0_20 = arith.constant 0 : index
    %c0_21 = arith.constant 0 : index
    %25 = vector.load %arg9[%c0_20, %c0_21] : memref<64x2xbf16, #tpu.memory_space<vmem>>, vector<64x2xbf16>
    %c0_22 = arith.constant 0 : index
    %c0_23 = arith.constant 0 : index
    %26 = vector.load %arg1[%c0_22, %c0_23] : memref<16x2xf32, #tpu.memory_space<vmem>>, vector<8x2xf32>
    %27 = arith.truncf %26 : vector<8x2xf32> to vector<8x2xbf16>
    %cst = arith.constant dense<0.000000e+00> : vector<8x64xf32>
    %28 = tpu.matmul %27, %24, %cst {dimension_numbers = #tpu.dot_dimension_numbers<[1], [0], [0], [1], [0, 0, 1, 1], [], []>} : vector<8x2xbf16>, vector<2x64xbf16>, vector<8x64xf32> -> vector<8x64xf32>
    %29 = vector.extract_strided_slice %16 {offsets = [0, 0], sizes = [8, 64], strides = [1, 1]} : vector<16x64xf32> to vector<8x64xf32>
    %30 = arith.addf %28, %29 : vector<8x64xf32>
    %cst_24 = arith.constant 0.000000e+00 : f32
    %31 = vector.broadcast %cst_24 : f32 to vector<8x64xf32>
    %32 = arith.subf %31, %30 : vector<8x64xf32>
    %33 = math.exp %32 : vector<8x64xf32>
    %cst_25 = arith.constant 1.000000e+00 : f32
    %34 = vector.broadcast %cst_25 : f32 to vector<8x64xf32>
    %35 = arith.addf %34, %33 : vector<8x64xf32>
    %36 = tpu.reciprocal %35 {approx = true} : vector<8x64xf32> -> vector<8x64xf32>
    %37 = arith.mulf %30, %36 : vector<8x64xf32>
    %c8 = arith.constant 8 : index
    %c0_26 = arith.constant 0 : index
    %38 = vector.load %arg1[%c8, %c0_26] : memref<16x2xf32, #tpu.memory_space<vmem>>, vector<8x2xf32>
    %39 = arith.truncf %38 : vector<8x2xf32> to vector<8x2xbf16>
    %cst_27 = arith.constant dense<0.000000e+00> : vector<8x64xf32>
    %40 = tpu.matmul %39, %24, %cst_27 {dimension_numbers = #tpu.dot_dimension_numbers<[1], [0], [0], [1], [0, 0, 1, 1], [], []>} : vector<8x2xbf16>, vector<2x64xbf16>, vector<8x64xf32> -> vector<8x64xf32>
    %41 = vector.extract_strided_slice %16 {offsets = [8, 0], sizes = [8, 64], strides = [1, 1]} : vector<16x64xf32> to vector<8x64xf32>
    %42 = arith.addf %40, %41 : vector<8x64xf32>
    %cst_28 = arith.constant 0.000000e+00 : f32
    %43 = vector.broadcast %cst_28 : f32 to vector<8x64xf32>
    %44 = arith.subf %43, %42 : vector<8x64xf32>
    %45 = math.exp %44 : vector<8x64xf32>
    %cst_29 = arith.constant 1.000000e+00 : f32
    %46 = vector.broadcast %cst_29 : f32 to vector<8x64xf32>
    %47 = arith.addf %46, %45 : vector<8x64xf32>
    %48 = tpu.reciprocal %47 {approx = true} : vector<8x64xf32> -> vector<8x64xf32>
    %49 = arith.mulf %42, %48 : vector<8x64xf32>
    %c0_30 = arith.constant 0 : index
    %c0_31 = arith.constant 0 : index
    %c0_32 = arith.constant 0 : index
    %50 = vector.load %arg6[%c0_30, %c0_31, %c0_32] : memref<20x64x64xbf16, #tpu.memory_space<vmem>>, vector<1x64x64xbf16>
    %51 = vector.shape_cast %50 : vector<1x64x64xbf16> to vector<64x64xbf16>
    %52 = arith.truncf %37 : vector<8x64xf32> to vector<8x64xbf16>
    %cst_33 = arith.constant dense<0.000000e+00> : vector<8x64xf32>
    %53 = tpu.matmul %52, %51, %cst_33 {dimension_numbers = #tpu.dot_dimension_numbers<[1], [0], [0], [1], [0, 0, 1, 1], [], []>} : vector<8x64xbf16>, vector<64x64xbf16>, vector<8x64xf32> -> vector<8x64xf32>
    %c0_34 = arith.constant 0 : index
    %c0_35 = arith.constant 0 : index
    %c0_36 = arith.constant 0 : index
    %54 = vector.load %arg13[%c0_34, %c0_35, %c0_36] : memref<20x16x64xf32, #tpu.memory_space<vmem>>, vector<1x8x64xf32>
    %55 = vector.shape_cast %54 : vector<1x8x64xf32> to vector<8x64xf32>
    %56 = arith.addf %53, %55 : vector<8x64xf32>
    %57 = arith.addf %37, %56 : vector<8x64xf32>
    %cst_37 = arith.constant 0.000000e+00 : f32
    %58 = vector.broadcast %cst_37 : f32 to vector<8x64xf32>
    %59 = arith.subf %58, %57 : vector<8x64xf32>
    %60 = math.exp %59 : vector<8x64xf32>
    %cst_38 = arith.constant 1.000000e+00 : f32
    %61 = vector.broadcast %cst_38 : f32 to vector<8x64xf32>
    %62 = arith.addf %61, %60 : vector<8x64xf32>
    %63 = tpu.reciprocal %62 {approx = true} : vector<8x64xf32> -> vector<8x64xf32>
    %64 = arith.mulf %57, %63 : vector<8x64xf32>
    %65 = arith.truncf %49 : vector<8x64xf32> to vector<8x64xbf16>
    %cst_39 = arith.constant dense<0.000000e+00> : vector<8x64xf32>
    %66 = tpu.matmul %65, %51, %cst_39 {dimension_numbers = #tpu.dot_dimension_numbers<[1], [0], [0], [1], [0, 0, 1, 1], [], []>} : vector<8x64xbf16>, vector<64x64xbf16>, vector<8x64xf32> -> vector<8x64xf32>
    %c0_40 = arith.constant 0 : index
    %c8_41 = arith.constant 8 : index
    %c0_42 = arith.constant 0 : index
    %67 = vector.load %arg13[%c0_40, %c8_41, %c0_42] : memref<20x16x64xf32, #tpu.memory_space<vmem>>, vector<1x8x64xf32>
    %68 = vector.shape_cast %67 : vector<1x8x64xf32> to vector<8x64xf32>
    %69 = arith.addf %66, %68 : vector<8x64xf32>
    %70 = arith.addf %49, %69 : vector<8x64xf32>
    %cst_43 = arith.constant 0.000000e+00 : f32
    %71 = vector.broadcast %cst_43 : f32 to vector<8x64xf32>
    %72 = arith.subf %71, %70 : vector<8x64xf32>
    %73 = math.exp %72 : vector<8x64xf32>
    %cst_44 = arith.constant 1.000000e+00 : f32
    %74 = vector.broadcast %cst_44 : f32 to vector<8x64xf32>
    %75 = arith.addf %74, %73 : vector<8x64xf32>
    %76 = tpu.reciprocal %75 {approx = true} : vector<8x64xf32> -> vector<8x64xf32>
    %77 = arith.mulf %70, %76 : vector<8x64xf32>
    %c1 = arith.constant 1 : index
    %c0_45 = arith.constant 0 : index
    %c0_46 = arith.constant 0 : index
    %78 = vector.load %arg6[%c1, %c0_45, %c0_46] : memref<20x64x64xbf16, #tpu.memory_space<vmem>>, vector<1x64x64xbf16>
    %79 = vector.shape_cast %78 : vector<1x64x64xbf16> to vector<64x64xbf16>
    %80 = arith.truncf %64 : vector<8x64xf32> to vector<8x64xbf16>
    %cst_47 = arith.constant dense<0.000000e+00> : vector<8x64xf32>
    %81 = tpu.matmul %80, %79, %cst_47 {dimension_numbers = #tpu.dot_dimension_numbers<[1], [0], [0], [1], [0, 0, 1, 1], [], []>} : vector<8x64xbf16>, vector<64x64xbf16>, vector<8x64xf32> -> vector<8x64xf32>
    %c1_48 = arith.constant 1 : index
    %c0_49 = arith.constant 0 : index
    %c0_50 = arith.constant 0 : index
    %82 = vector.load %arg13[%c1_48, %c0_49, %c0_50] : memref<20x16x64xf32, #tpu.memory_space<vmem>>, vector<1x8x64xf32>
    %83 = vector.shape_cast %82 : vector<1x8x64xf32> to vector<8x64xf32>
    %84 = arith.addf %81, %83 : vector<8x64xf32>
    %85 = arith.addf %64, %84 : vector<8x64xf32>
    %cst_51 = arith.constant 0.000000e+00 : f32
    %86 = vector.broadcast %cst_51 : f32 to vector<8x64xf32>
    %87 = arith.subf %86, %85 : vector<8x64xf32>
    %88 = math.exp %87 : vector<8x64xf32>
    %cst_52 = arith.constant 1.000000e+00 : f32
    %89 = vector.broadcast %cst_52 : f32 to vector<8x64xf32>
    %90 = arith.addf %89, %88 : vector<8x64xf32>
    %91 = tpu.reciprocal %90 {approx = true} : vector<8x64xf32> -> vector<8x64xf32>
    %92 = arith.mulf %85, %91 : vector<8x64xf32>
    %93 = arith.truncf %77 : vector<8x64xf32> to vector<8x64xbf16>
    %cst_53 = arith.constant dense<0.000000e+00> : vector<8x64xf32>
    %94 = tpu.matmul %93, %79, %cst_53 {dimension_numbers = #tpu.dot_dimension_numbers<[1], [0], [0], [1], [0, 0, 1, 1], [], []>} : vector<8x64xbf16>, vector<64x64xbf16>, vector<8x64xf32> -> vector<8x64xf32>
    %c1_54 = arith.constant 1 : index
    %c8_55 = arith.constant 8 : index
    %c0_56 = arith.constant 0 : index
    %95 = vector.load %arg13[%c1_54, %c8_55, %c0_56] : memref<20x16x64xf32, #tpu.memory_space<vmem>>, vector<1x8x64xf32>
    %96 = vector.shape_cast %95 : vector<1x8x64xf32> to vector<8x64xf32>
    %97 = arith.addf %94, %96 : vector<8x64xf32>
    %98 = arith.addf %77, %97 : vector<8x64xf32>
    %cst_57 = arith.constant 0.000000e+00 : f32
    %99 = vector.broadcast %cst_57 : f32 to vector<8x64xf32>
    %100 = arith.subf %99, %98 : vector<8x64xf32>
    %101 = math.exp %100 : vector<8x64xf32>
    %cst_58 = arith.constant 1.000000e+00 : f32
    %102 = vector.broadcast %cst_58 : f32 to vector<8x64xf32>
    %103 = arith.addf %102, %101 : vector<8x64xf32>
    %104 = tpu.reciprocal %103 {approx = true} : vector<8x64xf32> -> vector<8x64xf32>
    %105 = arith.mulf %98, %104 : vector<8x64xf32>
    %c2 = arith.constant 2 : index
    %c0_59 = arith.constant 0 : index
    %c0_60 = arith.constant 0 : index
    %106 = vector.load %arg6[%c2, %c0_59, %c0_60] : memref<20x64x64xbf16, #tpu.memory_space<vmem>>, vector<1x64x64xbf16>
    %107 = vector.shape_cast %106 : vector<1x64x64xbf16> to vector<64x64xbf16>
    %108 = arith.truncf %92 : vector<8x64xf32> to vector<8x64xbf16>
    %cst_61 = arith.constant dense<0.000000e+00> : vector<8x64xf32>
    %109 = tpu.matmul %108, %107, %cst_61 {dimension_numbers = #tpu.dot_dimension_numbers<[1], [0], [0], [1], [0, 0, 1, 1], [], []>} : vector<8x64xbf16>, vector<64x64xbf16>, vector<8x64xf32> -> vector<8x64xf32>
    %c2_62 = arith.constant 2 : index
    %c0_63 = arith.constant 0 : index
    %c0_64 = arith.constant 0 : index
    %110 = vector.load %arg13[%c2_62, %c0_63, %c0_64] : memref<20x16x64xf32, #tpu.memory_space<vmem>>, vector<1x8x64xf32>
    %111 = vector.shape_cast %110 : vector<1x8x64xf32> to vector<8x64xf32>
    %112 = arith.addf %109, %111 : vector<8x64xf32>
    %113 = arith.addf %92, %112 : vector<8x64xf32>
    %cst_65 = arith.constant 0.000000e+00 : f32
    %114 = vector.broadcast %cst_65 : f32 to vector<8x64xf32>
    %115 = arith.subf %114, %113 : vector<8x64xf32>
    %116 = math.exp %115 : vector<8x64xf32>
    %cst_66 = arith.constant 1.000000e+00 : f32
    %117 = vector.broadcast %cst_66 : f32 to vector<8x64xf32>
    %118 = arith.addf %117, %116 : vector<8x64xf32>
    %119 = tpu.reciprocal %118 {approx = true} : vector<8x64xf32> -> vector<8x64xf32>
    %120 = arith.mulf %113, %119 : vector<8x64xf32>
    %121 = arith.truncf %105 : vector<8x64xf32> to vector<8x64xbf16>
    %cst_67 = arith.constant dense<0.000000e+00> : vector<8x64xf32>
    %122 = tpu.matmul %121, %107, %cst_67 {dimension_numbers = #tpu.dot_dimension_numbers<[1], [0], [0], [1], [0, 0, 1, 1], [], []>} : vector<8x64xbf16>, vector<64x64xbf16>, vector<8x64xf32> -> vector<8x64xf32>
    %c2_68 = arith.constant 2 : index
    %c8_69 = arith.constant 8 : index
    %c0_70 = arith.constant 0 : index
    %123 = vector.load %arg13[%c2_68, %c8_69, %c0_70] : memref<20x16x64xf32, #tpu.memory_space<vmem>>, vector<1x8x64xf32>
    %124 = vector.shape_cast %123 : vector<1x8x64xf32> to vector<8x64xf32>
    %125 = arith.addf %122, %124 : vector<8x64xf32>
    %126 = arith.addf %105, %125 : vector<8x64xf32>
    %cst_71 = arith.constant 0.000000e+00 : f32
    %127 = vector.broadcast %cst_71 : f32 to vector<8x64xf32>
    %128 = arith.subf %127, %126 : vector<8x64xf32>
    %129 = math.exp %128 : vector<8x64xf32>
    %cst_72 = arith.constant 1.000000e+00 : f32
    %130 = vector.broadcast %cst_72 : f32 to vector<8x64xf32>
    %131 = arith.addf %130, %129 : vector<8x64xf32>
    %132 = tpu.reciprocal %131 {approx = true} : vector<8x64xf32> -> vector<8x64xf32>
    %133 = arith.mulf %126, %132 : vector<8x64xf32>
    %c3 = arith.constant 3 : index
    %c0_73 = arith.constant 0 : index
    %c0_74 = arith.constant 0 : index
    %134 = vector.load %arg6[%c3, %c0_73, %c0_74] : memref<20x64x64xbf16, #tpu.memory_space<vmem>>, vector<1x64x64xbf16>
    %135 = vector.shape_cast %134 : vector<1x64x64xbf16> to vector<64x64xbf16>
    %136 = arith.truncf %120 : vector<8x64xf32> to vector<8x64xbf16>
    %cst_75 = arith.constant dense<0.000000e+00> : vector<8x64xf32>
    %137 = tpu.matmul %136, %135, %cst_75 {dimension_numbers = #tpu.dot_dimension_numbers<[1], [0], [0], [1], [0, 0, 1, 1], [], []>} : vector<8x64xbf16>, vector<64x64xbf16>, vector<8x64xf32> -> vector<8x64xf32>
    %c3_76 = arith.constant 3 : index
    %c0_77 = arith.constant 0 : index
    %c0_78 = arith.constant 0 : index
    %138 = vector.load %arg13[%c3_76, %c0_77, %c0_78] : memref<20x16x64xf32, #tpu.memory_space<vmem>>, vector<1x8x64xf32>
    %139 = vector.shape_cast %138 : vector<1x8x64xf32> to vector<8x64xf32>
    %140 = arith.addf %137, %139 : vector<8x64xf32>
    %141 = arith.addf %120, %140 : vector<8x64xf32>
    %cst_79 = arith.constant 0.000000e+00 : f32
    %142 = vector.broadcast %cst_79 : f32 to vector<8x64xf32>
    %143 = arith.subf %142, %141 : vector<8x64xf32>
    %144 = math.exp %143 : vector<8x64xf32>
    %cst_80 = arith.constant 1.000000e+00 : f32
    %145 = vector.broadcast %cst_80 : f32 to vector<8x64xf32>
    %146 = arith.addf %145, %144 : vector<8x64xf32>
    %147 = tpu.reciprocal %146 {approx = true} : vector<8x64xf32> -> vector<8x64xf32>
    %148 = arith.mulf %141, %147 : vector<8x64xf32>
    %149 = arith.truncf %133 : vector<8x64xf32> to vector<8x64xbf16>
    %cst_81 = arith.constant dense<0.000000e+00> : vector<8x64xf32>
    %150 = tpu.matmul %149, %135, %cst_81 {dimension_numbers = #tpu.dot_dimension_numbers<[1], [0], [0], [1], [0, 0, 1, 1], [], []>} : vector<8x64xbf16>, vector<64x64xbf16>, vector<8x64xf32> -> vector<8x64xf32>
    %c3_82 = arith.constant 3 : index
    %c8_83 = arith.constant 8 : index
    %c0_84 = arith.constant 0 : index
    %151 = vector.load %arg13[%c3_82, %c8_83, %c0_84] : memref<20x16x64xf32, #tpu.memory_space<vmem>>, vector<1x8x64xf32>
    %152 = vector.shape_cast %151 : vector<1x8x64xf32> to vector<8x64xf32>
    %153 = arith.addf %150, %152 : vector<8x64xf32>
    %154 = arith.addf %133, %153 : vector<8x64xf32>
    %cst_85 = arith.constant 0.000000e+00 : f32
    %155 = vector.broadcast %cst_85 : f32 to vector<8x64xf32>
    %156 = arith.subf %155, %154 : vector<8x64xf32>
    %157 = math.exp %156 : vector<8x64xf32>
    %cst_86 = arith.constant 1.000000e+00 : f32
    %158 = vector.broadcast %cst_86 : f32 to vector<8x64xf32>
    %159 = arith.addf %158, %157 : vector<8x64xf32>
    %160 = tpu.reciprocal %159 {approx = true} : vector<8x64xf32> -> vector<8x64xf32>
    %161 = arith.mulf %154, %160 : vector<8x64xf32>
    %c4 = arith.constant 4 : index
    %c0_87 = arith.constant 0 : index
    %c0_88 = arith.constant 0 : index
    %162 = vector.load %arg6[%c4, %c0_87, %c0_88] : memref<20x64x64xbf16, #tpu.memory_space<vmem>>, vector<1x64x64xbf16>
    %163 = vector.shape_cast %162 : vector<1x64x64xbf16> to vector<64x64xbf16>
    %164 = arith.truncf %148 : vector<8x64xf32> to vector<8x64xbf16>
    %cst_89 = arith.constant dense<0.000000e+00> : vector<8x64xf32>
    %165 = tpu.matmul %164, %163, %cst_89 {dimension_numbers = #tpu.dot_dimension_numbers<[1], [0], [0], [1], [0, 0, 1, 1], [], []>} : vector<8x64xbf16>, vector<64x64xbf16>, vector<8x64xf32> -> vector<8x64xf32>
    %c4_90 = arith.constant 4 : index
    %c0_91 = arith.constant 0 : index
    %c0_92 = arith.constant 0 : index
    %166 = vector.load %arg13[%c4_90, %c0_91, %c0_92] : memref<20x16x64xf32, #tpu.memory_space<vmem>>, vector<1x8x64xf32>
    %167 = vector.shape_cast %166 : vector<1x8x64xf32> to vector<8x64xf32>
    %168 = arith.addf %165, %167 : vector<8x64xf32>
    %169 = arith.addf %148, %168 : vector<8x64xf32>
    %cst_93 = arith.constant 0.000000e+00 : f32
    %170 = vector.broadcast %cst_93 : f32 to vector<8x64xf32>
    %171 = arith.subf %170, %169 : vector<8x64xf32>
    %172 = math.exp %171 : vector<8x64xf32>
    %cst_94 = arith.constant 1.000000e+00 : f32
    %173 = vector.broadcast %cst_94 : f32 to vector<8x64xf32>
    %174 = arith.addf %173, %172 : vector<8x64xf32>
    %175 = tpu.reciprocal %174 {approx = true} : vector<8x64xf32> -> vector<8x64xf32>
    %176 = arith.mulf %169, %175 : vector<8x64xf32>
    %177 = arith.truncf %161 : vector<8x64xf32> to vector<8x64xbf16>
    %cst_95 = arith.constant dense<0.000000e+00> : vector<8x64xf32>
    %178 = tpu.matmul %177, %163, %cst_95 {dimension_numbers = #tpu.dot_dimension_numbers<[1], [0], [0], [1], [0, 0, 1, 1], [], []>} : vector<8x64xbf16>, vector<64x64xbf16>, vector<8x64xf32> -> vector<8x64xf32>
    %c4_96 = arith.constant 4 : index
    %c8_97 = arith.constant 8 : index
    %c0_98 = arith.constant 0 : index
    %179 = vector.load %arg13[%c4_96, %c8_97, %c0_98] : memref<20x16x64xf32, #tpu.memory_space<vmem>>, vector<1x8x64xf32>
    %180 = vector.shape_cast %179 : vector<1x8x64xf32> to vector<8x64xf32>
    %181 = arith.addf %178, %180 : vector<8x64xf32>
    %182 = arith.addf %161, %181 : vector<8x64xf32>
    %cst_99 = arith.constant 0.000000e+00 : f32
    %183 = vector.broadcast %cst_99 : f32 to vector<8x64xf32>
    %184 = arith.subf %183, %182 : vector<8x64xf32>
    %185 = math.exp %184 : vector<8x64xf32>
    %cst_100 = arith.constant 1.000000e+00 : f32
    %186 = vector.broadcast %cst_100 : f32 to vector<8x64xf32>
    %187 = arith.addf %186, %185 : vector<8x64xf32>
    %188 = tpu.reciprocal %187 {approx = true} : vector<8x64xf32> -> vector<8x64xf32>
    %189 = arith.mulf %182, %188 : vector<8x64xf32>
    %c5 = arith.constant 5 : index
    %c0_101 = arith.constant 0 : index
    %c0_102 = arith.constant 0 : index
    %190 = vector.load %arg6[%c5, %c0_101, %c0_102] : memref<20x64x64xbf16, #tpu.memory_space<vmem>>, vector<1x64x64xbf16>
    %191 = vector.shape_cast %190 : vector<1x64x64xbf16> to vector<64x64xbf16>
    %192 = arith.truncf %176 : vector<8x64xf32> to vector<8x64xbf16>
    %cst_103 = arith.constant dense<0.000000e+00> : vector<8x64xf32>
    %193 = tpu.matmul %192, %191, %cst_103 {dimension_numbers = #tpu.dot_dimension_numbers<[1], [0], [0], [1], [0, 0, 1, 1], [], []>} : vector<8x64xbf16>, vector<64x64xbf16>, vector<8x64xf32> -> vector<8x64xf32>
    %c5_104 = arith.constant 5 : index
    %c0_105 = arith.constant 0 : index
    %c0_106 = arith.constant 0 : index
    %194 = vector.load %arg13[%c5_104, %c0_105, %c0_106] : memref<20x16x64xf32, #tpu.memory_space<vmem>>, vector<1x8x64xf32>
    %195 = vector.shape_cast %194 : vector<1x8x64xf32> to vector<8x64xf32>
    %196 = arith.addf %193, %195 : vector<8x64xf32>
    %197 = arith.addf %176, %196 : vector<8x64xf32>
    %cst_107 = arith.constant 0.000000e+00 : f32
    %198 = vector.broadcast %cst_107 : f32 to vector<8x64xf32>
    %199 = arith.subf %198, %197 : vector<8x64xf32>
    %200 = math.exp %199 : vector<8x64xf32>
    %cst_108 = arith.constant 1.000000e+00 : f32
    %201 = vector.broadcast %cst_108 : f32 to vector<8x64xf32>
    %202 = arith.addf %201, %200 : vector<8x64xf32>
    %203 = tpu.reciprocal %202 {approx = true} : vector<8x64xf32> -> vector<8x64xf32>
    %204 = arith.mulf %197, %203 : vector<8x64xf32>
    %205 = arith.truncf %189 : vector<8x64xf32> to vector<8x64xbf16>
    %cst_109 = arith.constant dense<0.000000e+00> : vector<8x64xf32>
    %206 = tpu.matmul %205, %191, %cst_109 {dimension_numbers = #tpu.dot_dimension_numbers<[1], [0], [0], [1], [0, 0, 1, 1], [], []>} : vector<8x64xbf16>, vector<64x64xbf16>, vector<8x64xf32> -> vector<8x64xf32>
    %c5_110 = arith.constant 5 : index
    %c8_111 = arith.constant 8 : index
    %c0_112 = arith.constant 0 : index
    %207 = vector.load %arg13[%c5_110, %c8_111, %c0_112] : memref<20x16x64xf32, #tpu.memory_space<vmem>>, vector<1x8x64xf32>
    %208 = vector.shape_cast %207 : vector<1x8x64xf32> to vector<8x64xf32>
    %209 = arith.addf %206, %208 : vector<8x64xf32>
    %210 = arith.addf %189, %209 : vector<8x64xf32>
    %cst_113 = arith.constant 0.000000e+00 : f32
    %211 = vector.broadcast %cst_113 : f32 to vector<8x64xf32>
    %212 = arith.subf %211, %210 : vector<8x64xf32>
    %213 = math.exp %212 : vector<8x64xf32>
    %cst_114 = arith.constant 1.000000e+00 : f32
    %214 = vector.broadcast %cst_114 : f32 to vector<8x64xf32>
    %215 = arith.addf %214, %213 : vector<8x64xf32>
    %216 = tpu.reciprocal %215 {approx = true} : vector<8x64xf32> -> vector<8x64xf32>
    %217 = arith.mulf %210, %216 : vector<8x64xf32>
    %c6 = arith.constant 6 : index
    %c0_115 = arith.constant 0 : index
    %c0_116 = arith.constant 0 : index
    %218 = vector.load %arg6[%c6, %c0_115, %c0_116] : memref<20x64x64xbf16, #tpu.memory_space<vmem>>, vector<1x64x64xbf16>
    %219 = vector.shape_cast %218 : vector<1x64x64xbf16> to vector<64x64xbf16>
    %220 = arith.truncf %204 : vector<8x64xf32> to vector<8x64xbf16>
    %cst_117 = arith.constant dense<0.000000e+00> : vector<8x64xf32>
    %221 = tpu.matmul %220, %219, %cst_117 {dimension_numbers = #tpu.dot_dimension_numbers<[1], [0], [0], [1], [0, 0, 1, 1], [], []>} : vector<8x64xbf16>, vector<64x64xbf16>, vector<8x64xf32> -> vector<8x64xf32>
    %c6_118 = arith.constant 6 : index
    %c0_119 = arith.constant 0 : index
    %c0_120 = arith.constant 0 : index
    %222 = vector.load %arg13[%c6_118, %c0_119, %c0_120] : memref<20x16x64xf32, #tpu.memory_space<vmem>>, vector<1x8x64xf32>
    %223 = vector.shape_cast %222 : vector<1x8x64xf32> to vector<8x64xf32>
    %224 = arith.addf %221, %223 : vector<8x64xf32>
    %225 = arith.addf %204, %224 : vector<8x64xf32>
    %cst_121 = arith.constant 0.000000e+00 : f32
    %226 = vector.broadcast %cst_121 : f32 to vector<8x64xf32>
    %227 = arith.subf %226, %225 : vector<8x64xf32>
    %228 = math.exp %227 : vector<8x64xf32>
    %cst_122 = arith.constant 1.000000e+00 : f32
    %229 = vector.broadcast %cst_122 : f32 to vector<8x64xf32>
    %230 = arith.addf %229, %228 : vector<8x64xf32>
    %231 = tpu.reciprocal %230 {approx = true} : vector<8x64xf32> -> vector<8x64xf32>
    %232 = arith.mulf %225, %231 : vector<8x64xf32>
    %233 = arith.truncf %217 : vector<8x64xf32> to vector<8x64xbf16>
    %cst_123 = arith.constant dense<0.000000e+00> : vector<8x64xf32>
    %234 = tpu.matmul %233, %219, %cst_123 {dimension_numbers = #tpu.dot_dimension_numbers<[1], [0], [0], [1], [0, 0, 1, 1], [], []>} : vector<8x64xbf16>, vector<64x64xbf16>, vector<8x64xf32> -> vector<8x64xf32>
    %c6_124 = arith.constant 6 : index
    %c8_125 = arith.constant 8 : index
    %c0_126 = arith.constant 0 : index
    %235 = vector.load %arg13[%c6_124, %c8_125, %c0_126] : memref<20x16x64xf32, #tpu.memory_space<vmem>>, vector<1x8x64xf32>
    %236 = vector.shape_cast %235 : vector<1x8x64xf32> to vector<8x64xf32>
    %237 = arith.addf %234, %236 : vector<8x64xf32>
    %238 = arith.addf %217, %237 : vector<8x64xf32>
    %cst_127 = arith.constant 0.000000e+00 : f32
    %239 = vector.broadcast %cst_127 : f32 to vector<8x64xf32>
    %240 = arith.subf %239, %238 : vector<8x64xf32>
    %241 = math.exp %240 : vector<8x64xf32>
    %cst_128 = arith.constant 1.000000e+00 : f32
    %242 = vector.broadcast %cst_128 : f32 to vector<8x64xf32>
    %243 = arith.addf %242, %241 : vector<8x64xf32>
    %244 = tpu.reciprocal %243 {approx = true} : vector<8x64xf32> -> vector<8x64xf32>
    %245 = arith.mulf %238, %244 : vector<8x64xf32>
    %c7 = arith.constant 7 : index
    %c0_129 = arith.constant 0 : index
    %c0_130 = arith.constant 0 : index
    %246 = vector.load %arg6[%c7, %c0_129, %c0_130] : memref<20x64x64xbf16, #tpu.memory_space<vmem>>, vector<1x64x64xbf16>
    %247 = vector.shape_cast %246 : vector<1x64x64xbf16> to vector<64x64xbf16>
    %248 = arith.truncf %232 : vector<8x64xf32> to vector<8x64xbf16>
    %cst_131 = arith.constant dense<0.000000e+00> : vector<8x64xf32>
    %249 = tpu.matmul %248, %247, %cst_131 {dimension_numbers = #tpu.dot_dimension_numbers<[1], [0], [0], [1], [0, 0, 1, 1], [], []>} : vector<8x64xbf16>, vector<64x64xbf16>, vector<8x64xf32> -> vector<8x64xf32>
    %c7_132 = arith.constant 7 : index
    %c0_133 = arith.constant 0 : index
    %c0_134 = arith.constant 0 : index
    %250 = vector.load %arg13[%c7_132, %c0_133, %c0_134] : memref<20x16x64xf32, #tpu.memory_space<vmem>>, vector<1x8x64xf32>
    %251 = vector.shape_cast %250 : vector<1x8x64xf32> to vector<8x64xf32>
    %252 = arith.addf %249, %251 : vector<8x64xf32>
    %253 = arith.addf %232, %252 : vector<8x64xf32>
    %cst_135 = arith.constant 0.000000e+00 : f32
    %254 = vector.broadcast %cst_135 : f32 to vector<8x64xf32>
    %255 = arith.subf %254, %253 : vector<8x64xf32>
    %256 = math.exp %255 : vector<8x64xf32>
    %cst_136 = arith.constant 1.000000e+00 : f32
    %257 = vector.broadcast %cst_136 : f32 to vector<8x64xf32>
    %258 = arith.addf %257, %256 : vector<8x64xf32>
    %259 = tpu.reciprocal %258 {approx = true} : vector<8x64xf32> -> vector<8x64xf32>
    %260 = arith.mulf %253, %259 : vector<8x64xf32>
    %261 = arith.truncf %245 : vector<8x64xf32> to vector<8x64xbf16>
    %cst_137 = arith.constant dense<0.000000e+00> : vector<8x64xf32>
    %262 = tpu.matmul %261, %247, %cst_137 {dimension_numbers = #tpu.dot_dimension_numbers<[1], [0], [0], [1], [0, 0, 1, 1], [], []>} : vector<8x64xbf16>, vector<64x64xbf16>, vector<8x64xf32> -> vector<8x64xf32>
    %c7_138 = arith.constant 7 : index
    %c8_139 = arith.constant 8 : index
    %c0_140 = arith.constant 0 : index
    %263 = vector.load %arg13[%c7_138, %c8_139, %c0_140] : memref<20x16x64xf32, #tpu.memory_space<vmem>>, vector<1x8x64xf32>
    %264 = vector.shape_cast %263 : vector<1x8x64xf32> to vector<8x64xf32>
    %265 = arith.addf %262, %264 : vector<8x64xf32>
    %266 = arith.addf %245, %265 : vector<8x64xf32>
    %cst_141 = arith.constant 0.000000e+00 : f32
    %267 = vector.broadcast %cst_141 : f32 to vector<8x64xf32>
    %268 = arith.subf %267, %266 : vector<8x64xf32>
    %269 = math.exp %268 : vector<8x64xf32>
    %cst_142 = arith.constant 1.000000e+00 : f32
    %270 = vector.broadcast %cst_142 : f32 to vector<8x64xf32>
    %271 = arith.addf %270, %269 : vector<8x64xf32>
    %272 = tpu.reciprocal %271 {approx = true} : vector<8x64xf32> -> vector<8x64xf32>
    %273 = arith.mulf %266, %272 : vector<8x64xf32>
    %c8_143 = arith.constant 8 : index
    %c0_144 = arith.constant 0 : index
    %c0_145 = arith.constant 0 : index
    %274 = vector.load %arg6[%c8_143, %c0_144, %c0_145] : memref<20x64x64xbf16, #tpu.memory_space<vmem>>, vector<1x64x64xbf16>
    %275 = vector.shape_cast %274 : vector<1x64x64xbf16> to vector<64x64xbf16>
    %276 = arith.truncf %260 : vector<8x64xf32> to vector<8x64xbf16>
    %cst_146 = arith.constant dense<0.000000e+00> : vector<8x64xf32>
    %277 = tpu.matmul %276, %275, %cst_146 {dimension_numbers = #tpu.dot_dimension_numbers<[1], [0], [0], [1], [0, 0, 1, 1], [], []>} : vector<8x64xbf16>, vector<64x64xbf16>, vector<8x64xf32> -> vector<8x64xf32>
    %c8_147 = arith.constant 8 : index
    %c0_148 = arith.constant 0 : index
    %c0_149 = arith.constant 0 : index
    %278 = vector.load %arg13[%c8_147, %c0_148, %c0_149] : memref<20x16x64xf32, #tpu.memory_space<vmem>>, vector<1x8x64xf32>
    %279 = vector.shape_cast %278 : vector<1x8x64xf32> to vector<8x64xf32>
    %280 = arith.addf %277, %279 : vector<8x64xf32>
    %281 = arith.addf %260, %280 : vector<8x64xf32>
    %cst_150 = arith.constant 0.000000e+00 : f32
    %282 = vector.broadcast %cst_150 : f32 to vector<8x64xf32>
    %283 = arith.subf %282, %281 : vector<8x64xf32>
    %284 = math.exp %283 : vector<8x64xf32>
    %cst_151 = arith.constant 1.000000e+00 : f32
    %285 = vector.broadcast %cst_151 : f32 to vector<8x64xf32>
    %286 = arith.addf %285, %284 : vector<8x64xf32>
    %287 = tpu.reciprocal %286 {approx = true} : vector<8x64xf32> -> vector<8x64xf32>
    %288 = arith.mulf %281, %287 : vector<8x64xf32>
    %289 = arith.truncf %273 : vector<8x64xf32> to vector<8x64xbf16>
    %cst_152 = arith.constant dense<0.000000e+00> : vector<8x64xf32>
    %290 = tpu.matmul %289, %275, %cst_152 {dimension_numbers = #tpu.dot_dimension_numbers<[1], [0], [0], [1], [0, 0, 1, 1], [], []>} : vector<8x64xbf16>, vector<64x64xbf16>, vector<8x64xf32> -> vector<8x64xf32>
    %c8_153 = arith.constant 8 : index
    %c8_154 = arith.constant 8 : index
    %c0_155 = arith.constant 0 : index
    %291 = vector.load %arg13[%c8_153, %c8_154, %c0_155] : memref<20x16x64xf32, #tpu.memory_space<vmem>>, vector<1x8x64xf32>
    %292 = vector.shape_cast %291 : vector<1x8x64xf32> to vector<8x64xf32>
    %293 = arith.addf %290, %292 : vector<8x64xf32>
    %294 = arith.addf %273, %293 : vector<8x64xf32>
    %cst_156 = arith.constant 0.000000e+00 : f32
    %295 = vector.broadcast %cst_156 : f32 to vector<8x64xf32>
    %296 = arith.subf %295, %294 : vector<8x64xf32>
    %297 = math.exp %296 : vector<8x64xf32>
    %cst_157 = arith.constant 1.000000e+00 : f32
    %298 = vector.broadcast %cst_157 : f32 to vector<8x64xf32>
    %299 = arith.addf %298, %297 : vector<8x64xf32>
    %300 = tpu.reciprocal %299 {approx = true} : vector<8x64xf32> -> vector<8x64xf32>
    %301 = arith.mulf %294, %300 : vector<8x64xf32>
    %c9 = arith.constant 9 : index
    %c0_158 = arith.constant 0 : index
    %c0_159 = arith.constant 0 : index
    %302 = vector.load %arg6[%c9, %c0_158, %c0_159] : memref<20x64x64xbf16, #tpu.memory_space<vmem>>, vector<1x64x64xbf16>
    %303 = vector.shape_cast %302 : vector<1x64x64xbf16> to vector<64x64xbf16>
    %304 = arith.truncf %288 : vector<8x64xf32> to vector<8x64xbf16>
    %cst_160 = arith.constant dense<0.000000e+00> : vector<8x64xf32>
    %305 = tpu.matmul %304, %303, %cst_160 {dimension_numbers = #tpu.dot_dimension_numbers<[1], [0], [0], [1], [0, 0, 1, 1], [], []>} : vector<8x64xbf16>, vector<64x64xbf16>, vector<8x64xf32> -> vector<8x64xf32>
    %c9_161 = arith.constant 9 : index
    %c0_162 = arith.constant 0 : index
    %c0_163 = arith.constant 0 : index
    %306 = vector.load %arg13[%c9_161, %c0_162, %c0_163] : memref<20x16x64xf32, #tpu.memory_space<vmem>>, vector<1x8x64xf32>
    %307 = vector.shape_cast %306 : vector<1x8x64xf32> to vector<8x64xf32>
    %308 = arith.addf %305, %307 : vector<8x64xf32>
    %309 = arith.addf %288, %308 : vector<8x64xf32>
    %cst_164 = arith.constant 0.000000e+00 : f32
    %310 = vector.broadcast %cst_164 : f32 to vector<8x64xf32>
    %311 = arith.subf %310, %309 : vector<8x64xf32>
    %312 = math.exp %311 : vector<8x64xf32>
    %cst_165 = arith.constant 1.000000e+00 : f32
    %313 = vector.broadcast %cst_165 : f32 to vector<8x64xf32>
    %314 = arith.addf %313, %312 : vector<8x64xf32>
    %315 = tpu.reciprocal %314 {approx = true} : vector<8x64xf32> -> vector<8x64xf32>
    %316 = arith.mulf %309, %315 : vector<8x64xf32>
    %317 = arith.truncf %301 : vector<8x64xf32> to vector<8x64xbf16>
    %cst_166 = arith.constant dense<0.000000e+00> : vector<8x64xf32>
    %318 = tpu.matmul %317, %303, %cst_166 {dimension_numbers = #tpu.dot_dimension_numbers<[1], [0], [0], [1], [0, 0, 1, 1], [], []>} : vector<8x64xbf16>, vector<64x64xbf16>, vector<8x64xf32> -> vector<8x64xf32>
    %c9_167 = arith.constant 9 : index
    %c8_168 = arith.constant 8 : index
    %c0_169 = arith.constant 0 : index
    %319 = vector.load %arg13[%c9_167, %c8_168, %c0_169] : memref<20x16x64xf32, #tpu.memory_space<vmem>>, vector<1x8x64xf32>
    %320 = vector.shape_cast %319 : vector<1x8x64xf32> to vector<8x64xf32>
    %321 = arith.addf %318, %320 : vector<8x64xf32>
    %322 = arith.addf %301, %321 : vector<8x64xf32>
    %cst_170 = arith.constant 0.000000e+00 : f32
    %323 = vector.broadcast %cst_170 : f32 to vector<8x64xf32>
    %324 = arith.subf %323, %322 : vector<8x64xf32>
    %325 = math.exp %324 : vector<8x64xf32>
    %cst_171 = arith.constant 1.000000e+00 : f32
    %326 = vector.broadcast %cst_171 : f32 to vector<8x64xf32>
    %327 = arith.addf %326, %325 : vector<8x64xf32>
    %328 = tpu.reciprocal %327 {approx = true} : vector<8x64xf32> -> vector<8x64xf32>
    %329 = arith.mulf %322, %328 : vector<8x64xf32>
    %c10 = arith.constant 10 : index
    %c0_172 = arith.constant 0 : index
    %c0_173 = arith.constant 0 : index
    %330 = vector.load %arg6[%c10, %c0_172, %c0_173] : memref<20x64x64xbf16, #tpu.memory_space<vmem>>, vector<1x64x64xbf16>
    %331 = vector.shape_cast %330 : vector<1x64x64xbf16> to vector<64x64xbf16>
    %332 = arith.truncf %316 : vector<8x64xf32> to vector<8x64xbf16>
    %cst_174 = arith.constant dense<0.000000e+00> : vector<8x64xf32>
    %333 = tpu.matmul %332, %331, %cst_174 {dimension_numbers = #tpu.dot_dimension_numbers<[1], [0], [0], [1], [0, 0, 1, 1], [], []>} : vector<8x64xbf16>, vector<64x64xbf16>, vector<8x64xf32> -> vector<8x64xf32>
    %c10_175 = arith.constant 10 : index
    %c0_176 = arith.constant 0 : index
    %c0_177 = arith.constant 0 : index
    %334 = vector.load %arg13[%c10_175, %c0_176, %c0_177] : memref<20x16x64xf32, #tpu.memory_space<vmem>>, vector<1x8x64xf32>
    %335 = vector.shape_cast %334 : vector<1x8x64xf32> to vector<8x64xf32>
    %336 = arith.addf %333, %335 : vector<8x64xf32>
    %337 = arith.addf %316, %336 : vector<8x64xf32>
    %cst_178 = arith.constant 0.000000e+00 : f32
    %338 = vector.broadcast %cst_178 : f32 to vector<8x64xf32>
    %339 = arith.subf %338, %337 : vector<8x64xf32>
    %340 = math.exp %339 : vector<8x64xf32>
    %cst_179 = arith.constant 1.000000e+00 : f32
    %341 = vector.broadcast %cst_179 : f32 to vector<8x64xf32>
    %342 = arith.addf %341, %340 : vector<8x64xf32>
    %343 = tpu.reciprocal %342 {approx = true} : vector<8x64xf32> -> vector<8x64xf32>
    %344 = arith.mulf %337, %343 : vector<8x64xf32>
    %345 = arith.truncf %329 : vector<8x64xf32> to vector<8x64xbf16>
    %cst_180 = arith.constant dense<0.000000e+00> : vector<8x64xf32>
    %346 = tpu.matmul %345, %331, %cst_180 {dimension_numbers = #tpu.dot_dimension_numbers<[1], [0], [0], [1], [0, 0, 1, 1], [], []>} : vector<8x64xbf16>, vector<64x64xbf16>, vector<8x64xf32> -> vector<8x64xf32>
    %c10_181 = arith.constant 10 : index
    %c8_182 = arith.constant 8 : index
    %c0_183 = arith.constant 0 : index
    %347 = vector.load %arg13[%c10_181, %c8_182, %c0_183] : memref<20x16x64xf32, #tpu.memory_space<vmem>>, vector<1x8x64xf32>
    %348 = vector.shape_cast %347 : vector<1x8x64xf32> to vector<8x64xf32>
    %349 = arith.addf %346, %348 : vector<8x64xf32>
    %350 = arith.addf %329, %349 : vector<8x64xf32>
    %cst_184 = arith.constant 0.000000e+00 : f32
    %351 = vector.broadcast %cst_184 : f32 to vector<8x64xf32>
    %352 = arith.subf %351, %350 : vector<8x64xf32>
    %353 = math.exp %352 : vector<8x64xf32>
    %cst_185 = arith.constant 1.000000e+00 : f32
    %354 = vector.broadcast %cst_185 : f32 to vector<8x64xf32>
    %355 = arith.addf %354, %353 : vector<8x64xf32>
    %356 = tpu.reciprocal %355 {approx = true} : vector<8x64xf32> -> vector<8x64xf32>
    %357 = arith.mulf %350, %356 : vector<8x64xf32>
    %c11 = arith.constant 11 : index
    %c0_186 = arith.constant 0 : index
    %c0_187 = arith.constant 0 : index
    %358 = vector.load %arg6[%c11, %c0_186, %c0_187] : memref<20x64x64xbf16, #tpu.memory_space<vmem>>, vector<1x64x64xbf16>
    %359 = vector.shape_cast %358 : vector<1x64x64xbf16> to vector<64x64xbf16>
    %360 = arith.truncf %344 : vector<8x64xf32> to vector<8x64xbf16>
    %cst_188 = arith.constant dense<0.000000e+00> : vector<8x64xf32>
    %361 = tpu.matmul %360, %359, %cst_188 {dimension_numbers = #tpu.dot_dimension_numbers<[1], [0], [0], [1], [0, 0, 1, 1], [], []>} : vector<8x64xbf16>, vector<64x64xbf16>, vector<8x64xf32> -> vector<8x64xf32>
    %c11_189 = arith.constant 11 : index
    %c0_190 = arith.constant 0 : index
    %c0_191 = arith.constant 0 : index
    %362 = vector.load %arg13[%c11_189, %c0_190, %c0_191] : memref<20x16x64xf32, #tpu.memory_space<vmem>>, vector<1x8x64xf32>
    %363 = vector.shape_cast %362 : vector<1x8x64xf32> to vector<8x64xf32>
    %364 = arith.addf %361, %363 : vector<8x64xf32>
    %365 = arith.addf %344, %364 : vector<8x64xf32>
    %cst_192 = arith.constant 0.000000e+00 : f32
    %366 = vector.broadcast %cst_192 : f32 to vector<8x64xf32>
    %367 = arith.subf %366, %365 : vector<8x64xf32>
    %368 = math.exp %367 : vector<8x64xf32>
    %cst_193 = arith.constant 1.000000e+00 : f32
    %369 = vector.broadcast %cst_193 : f32 to vector<8x64xf32>
    %370 = arith.addf %369, %368 : vector<8x64xf32>
    %371 = tpu.reciprocal %370 {approx = true} : vector<8x64xf32> -> vector<8x64xf32>
    %372 = arith.mulf %365, %371 : vector<8x64xf32>
    %373 = arith.truncf %357 : vector<8x64xf32> to vector<8x64xbf16>
    %cst_194 = arith.constant dense<0.000000e+00> : vector<8x64xf32>
    %374 = tpu.matmul %373, %359, %cst_194 {dimension_numbers = #tpu.dot_dimension_numbers<[1], [0], [0], [1], [0, 0, 1, 1], [], []>} : vector<8x64xbf16>, vector<64x64xbf16>, vector<8x64xf32> -> vector<8x64xf32>
    %c11_195 = arith.constant 11 : index
    %c8_196 = arith.constant 8 : index
    %c0_197 = arith.constant 0 : index
    %375 = vector.load %arg13[%c11_195, %c8_196, %c0_197] : memref<20x16x64xf32, #tpu.memory_space<vmem>>, vector<1x8x64xf32>
    %376 = vector.shape_cast %375 : vector<1x8x64xf32> to vector<8x64xf32>
    %377 = arith.addf %374, %376 : vector<8x64xf32>
    %378 = arith.addf %357, %377 : vector<8x64xf32>
    %cst_198 = arith.constant 0.000000e+00 : f32
    %379 = vector.broadcast %cst_198 : f32 to vector<8x64xf32>
    %380 = arith.subf %379, %378 : vector<8x64xf32>
    %381 = math.exp %380 : vector<8x64xf32>
    %cst_199 = arith.constant 1.000000e+00 : f32
    %382 = vector.broadcast %cst_199 : f32 to vector<8x64xf32>
    %383 = arith.addf %382, %381 : vector<8x64xf32>
    %384 = tpu.reciprocal %383 {approx = true} : vector<8x64xf32> -> vector<8x64xf32>
    %385 = arith.mulf %378, %384 : vector<8x64xf32>
    %c12 = arith.constant 12 : index
    %c0_200 = arith.constant 0 : index
    %c0_201 = arith.constant 0 : index
    %386 = vector.load %arg6[%c12, %c0_200, %c0_201] : memref<20x64x64xbf16, #tpu.memory_space<vmem>>, vector<1x64x64xbf16>
    %387 = vector.shape_cast %386 : vector<1x64x64xbf16> to vector<64x64xbf16>
    %388 = arith.truncf %372 : vector<8x64xf32> to vector<8x64xbf16>
    %cst_202 = arith.constant dense<0.000000e+00> : vector<8x64xf32>
    %389 = tpu.matmul %388, %387, %cst_202 {dimension_numbers = #tpu.dot_dimension_numbers<[1], [0], [0], [1], [0, 0, 1, 1], [], []>} : vector<8x64xbf16>, vector<64x64xbf16>, vector<8x64xf32> -> vector<8x64xf32>
    %c12_203 = arith.constant 12 : index
    %c0_204 = arith.constant 0 : index
    %c0_205 = arith.constant 0 : index
    %390 = vector.load %arg13[%c12_203, %c0_204, %c0_205] : memref<20x16x64xf32, #tpu.memory_space<vmem>>, vector<1x8x64xf32>
    %391 = vector.shape_cast %390 : vector<1x8x64xf32> to vector<8x64xf32>
    %392 = arith.addf %389, %391 : vector<8x64xf32>
    %393 = arith.addf %372, %392 : vector<8x64xf32>
    %cst_206 = arith.constant 0.000000e+00 : f32
    %394 = vector.broadcast %cst_206 : f32 to vector<8x64xf32>
    %395 = arith.subf %394, %393 : vector<8x64xf32>
    %396 = math.exp %395 : vector<8x64xf32>
    %cst_207 = arith.constant 1.000000e+00 : f32
    %397 = vector.broadcast %cst_207 : f32 to vector<8x64xf32>
    %398 = arith.addf %397, %396 : vector<8x64xf32>
    %399 = tpu.reciprocal %398 {approx = true} : vector<8x64xf32> -> vector<8x64xf32>
    %400 = arith.mulf %393, %399 : vector<8x64xf32>
    %401 = arith.truncf %385 : vector<8x64xf32> to vector<8x64xbf16>
    %cst_208 = arith.constant dense<0.000000e+00> : vector<8x64xf32>
    %402 = tpu.matmul %401, %387, %cst_208 {dimension_numbers = #tpu.dot_dimension_numbers<[1], [0], [0], [1], [0, 0, 1, 1], [], []>} : vector<8x64xbf16>, vector<64x64xbf16>, vector<8x64xf32> -> vector<8x64xf32>
    %c12_209 = arith.constant 12 : index
    %c8_210 = arith.constant 8 : index
    %c0_211 = arith.constant 0 : index
    %403 = vector.load %arg13[%c12_209, %c8_210, %c0_211] : memref<20x16x64xf32, #tpu.memory_space<vmem>>, vector<1x8x64xf32>
    %404 = vector.shape_cast %403 : vector<1x8x64xf32> to vector<8x64xf32>
    %405 = arith.addf %402, %404 : vector<8x64xf32>
    %406 = arith.addf %385, %405 : vector<8x64xf32>
    %cst_212 = arith.constant 0.000000e+00 : f32
    %407 = vector.broadcast %cst_212 : f32 to vector<8x64xf32>
    %408 = arith.subf %407, %406 : vector<8x64xf32>
    %409 = math.exp %408 : vector<8x64xf32>
    %cst_213 = arith.constant 1.000000e+00 : f32
    %410 = vector.broadcast %cst_213 : f32 to vector<8x64xf32>
    %411 = arith.addf %410, %409 : vector<8x64xf32>
    %412 = tpu.reciprocal %411 {approx = true} : vector<8x64xf32> -> vector<8x64xf32>
    %413 = arith.mulf %406, %412 : vector<8x64xf32>
    %c13 = arith.constant 13 : index
    %c0_214 = arith.constant 0 : index
    %c0_215 = arith.constant 0 : index
    %414 = vector.load %arg6[%c13, %c0_214, %c0_215] : memref<20x64x64xbf16, #tpu.memory_space<vmem>>, vector<1x64x64xbf16>
    %415 = vector.shape_cast %414 : vector<1x64x64xbf16> to vector<64x64xbf16>
    %416 = arith.truncf %400 : vector<8x64xf32> to vector<8x64xbf16>
    %cst_216 = arith.constant dense<0.000000e+00> : vector<8x64xf32>
    %417 = tpu.matmul %416, %415, %cst_216 {dimension_numbers = #tpu.dot_dimension_numbers<[1], [0], [0], [1], [0, 0, 1, 1], [], []>} : vector<8x64xbf16>, vector<64x64xbf16>, vector<8x64xf32> -> vector<8x64xf32>
    %c13_217 = arith.constant 13 : index
    %c0_218 = arith.constant 0 : index
    %c0_219 = arith.constant 0 : index
    %418 = vector.load %arg13[%c13_217, %c0_218, %c0_219] : memref<20x16x64xf32, #tpu.memory_space<vmem>>, vector<1x8x64xf32>
    %419 = vector.shape_cast %418 : vector<1x8x64xf32> to vector<8x64xf32>
    %420 = arith.addf %417, %419 : vector<8x64xf32>
    %421 = arith.addf %400, %420 : vector<8x64xf32>
    %cst_220 = arith.constant 0.000000e+00 : f32
    %422 = vector.broadcast %cst_220 : f32 to vector<8x64xf32>
    %423 = arith.subf %422, %421 : vector<8x64xf32>
    %424 = math.exp %423 : vector<8x64xf32>
    %cst_221 = arith.constant 1.000000e+00 : f32
    %425 = vector.broadcast %cst_221 : f32 to vector<8x64xf32>
    %426 = arith.addf %425, %424 : vector<8x64xf32>
    %427 = tpu.reciprocal %426 {approx = true} : vector<8x64xf32> -> vector<8x64xf32>
    %428 = arith.mulf %421, %427 : vector<8x64xf32>
    %429 = arith.truncf %413 : vector<8x64xf32> to vector<8x64xbf16>
    %cst_222 = arith.constant dense<0.000000e+00> : vector<8x64xf32>
    %430 = tpu.matmul %429, %415, %cst_222 {dimension_numbers = #tpu.dot_dimension_numbers<[1], [0], [0], [1], [0, 0, 1, 1], [], []>} : vector<8x64xbf16>, vector<64x64xbf16>, vector<8x64xf32> -> vector<8x64xf32>
    %c13_223 = arith.constant 13 : index
    %c8_224 = arith.constant 8 : index
    %c0_225 = arith.constant 0 : index
    %431 = vector.load %arg13[%c13_223, %c8_224, %c0_225] : memref<20x16x64xf32, #tpu.memory_space<vmem>>, vector<1x8x64xf32>
    %432 = vector.shape_cast %431 : vector<1x8x64xf32> to vector<8x64xf32>
    %433 = arith.addf %430, %432 : vector<8x64xf32>
    %434 = arith.addf %413, %433 : vector<8x64xf32>
    %cst_226 = arith.constant 0.000000e+00 : f32
    %435 = vector.broadcast %cst_226 : f32 to vector<8x64xf32>
    %436 = arith.subf %435, %434 : vector<8x64xf32>
    %437 = math.exp %436 : vector<8x64xf32>
    %cst_227 = arith.constant 1.000000e+00 : f32
    %438 = vector.broadcast %cst_227 : f32 to vector<8x64xf32>
    %439 = arith.addf %438, %437 : vector<8x64xf32>
    %440 = tpu.reciprocal %439 {approx = true} : vector<8x64xf32> -> vector<8x64xf32>
    %441 = arith.mulf %434, %440 : vector<8x64xf32>
    %c14 = arith.constant 14 : index
    %c0_228 = arith.constant 0 : index
    %c0_229 = arith.constant 0 : index
    %442 = vector.load %arg6[%c14, %c0_228, %c0_229] : memref<20x64x64xbf16, #tpu.memory_space<vmem>>, vector<1x64x64xbf16>
    %443 = vector.shape_cast %442 : vector<1x64x64xbf16> to vector<64x64xbf16>
    %444 = arith.truncf %428 : vector<8x64xf32> to vector<8x64xbf16>
    %cst_230 = arith.constant dense<0.000000e+00> : vector<8x64xf32>
    %445 = tpu.matmul %444, %443, %cst_230 {dimension_numbers = #tpu.dot_dimension_numbers<[1], [0], [0], [1], [0, 0, 1, 1], [], []>} : vector<8x64xbf16>, vector<64x64xbf16>, vector<8x64xf32> -> vector<8x64xf32>
    %c14_231 = arith.constant 14 : index
    %c0_232 = arith.constant 0 : index
    %c0_233 = arith.constant 0 : index
    %446 = vector.load %arg13[%c14_231, %c0_232, %c0_233] : memref<20x16x64xf32, #tpu.memory_space<vmem>>, vector<1x8x64xf32>
    %447 = vector.shape_cast %446 : vector<1x8x64xf32> to vector<8x64xf32>
    %448 = arith.addf %445, %447 : vector<8x64xf32>
    %449 = arith.addf %428, %448 : vector<8x64xf32>
    %cst_234 = arith.constant 0.000000e+00 : f32
    %450 = vector.broadcast %cst_234 : f32 to vector<8x64xf32>
    %451 = arith.subf %450, %449 : vector<8x64xf32>
    %452 = math.exp %451 : vector<8x64xf32>
    %cst_235 = arith.constant 1.000000e+00 : f32
    %453 = vector.broadcast %cst_235 : f32 to vector<8x64xf32>
    %454 = arith.addf %453, %452 : vector<8x64xf32>
    %455 = tpu.reciprocal %454 {approx = true} : vector<8x64xf32> -> vector<8x64xf32>
    %456 = arith.mulf %449, %455 : vector<8x64xf32>
    %457 = arith.truncf %441 : vector<8x64xf32> to vector<8x64xbf16>
    %cst_236 = arith.constant dense<0.000000e+00> : vector<8x64xf32>
    %458 = tpu.matmul %457, %443, %cst_236 {dimension_numbers = #tpu.dot_dimension_numbers<[1], [0], [0], [1], [0, 0, 1, 1], [], []>} : vector<8x64xbf16>, vector<64x64xbf16>, vector<8x64xf32> -> vector<8x64xf32>
    %c14_237 = arith.constant 14 : index
    %c8_238 = arith.constant 8 : index
    %c0_239 = arith.constant 0 : index
    %459 = vector.load %arg13[%c14_237, %c8_238, %c0_239] : memref<20x16x64xf32, #tpu.memory_space<vmem>>, vector<1x8x64xf32>
    %460 = vector.shape_cast %459 : vector<1x8x64xf32> to vector<8x64xf32>
    %461 = arith.addf %458, %460 : vector<8x64xf32>
    %462 = arith.addf %441, %461 : vector<8x64xf32>
    %cst_240 = arith.constant 0.000000e+00 : f32
    %463 = vector.broadcast %cst_240 : f32 to vector<8x64xf32>
    %464 = arith.subf %463, %462 : vector<8x64xf32>
    %465 = math.exp %464 : vector<8x64xf32>
    %cst_241 = arith.constant 1.000000e+00 : f32
    %466 = vector.broadcast %cst_241 : f32 to vector<8x64xf32>
    %467 = arith.addf %466, %465 : vector<8x64xf32>
    %468 = tpu.reciprocal %467 {approx = true} : vector<8x64xf32> -> vector<8x64xf32>
    %469 = arith.mulf %462, %468 : vector<8x64xf32>
    %c15 = arith.constant 15 : index
    %c0_242 = arith.constant 0 : index
    %c0_243 = arith.constant 0 : index
    %470 = vector.load %arg6[%c15, %c0_242, %c0_243] : memref<20x64x64xbf16, #tpu.memory_space<vmem>>, vector<1x64x64xbf16>
    %471 = vector.shape_cast %470 : vector<1x64x64xbf16> to vector<64x64xbf16>
    %472 = arith.truncf %456 : vector<8x64xf32> to vector<8x64xbf16>
    %cst_244 = arith.constant dense<0.000000e+00> : vector<8x64xf32>
    %473 = tpu.matmul %472, %471, %cst_244 {dimension_numbers = #tpu.dot_dimension_numbers<[1], [0], [0], [1], [0, 0, 1, 1], [], []>} : vector<8x64xbf16>, vector<64x64xbf16>, vector<8x64xf32> -> vector<8x64xf32>
    %c15_245 = arith.constant 15 : index
    %c0_246 = arith.constant 0 : index
    %c0_247 = arith.constant 0 : index
    %474 = vector.load %arg13[%c15_245, %c0_246, %c0_247] : memref<20x16x64xf32, #tpu.memory_space<vmem>>, vector<1x8x64xf32>
    %475 = vector.shape_cast %474 : vector<1x8x64xf32> to vector<8x64xf32>
    %476 = arith.addf %473, %475 : vector<8x64xf32>
    %477 = arith.addf %456, %476 : vector<8x64xf32>
    %cst_248 = arith.constant 0.000000e+00 : f32
    %478 = vector.broadcast %cst_248 : f32 to vector<8x64xf32>
    %479 = arith.subf %478, %477 : vector<8x64xf32>
    %480 = math.exp %479 : vector<8x64xf32>
    %cst_249 = arith.constant 1.000000e+00 : f32
    %481 = vector.broadcast %cst_249 : f32 to vector<8x64xf32>
    %482 = arith.addf %481, %480 : vector<8x64xf32>
    %483 = tpu.reciprocal %482 {approx = true} : vector<8x64xf32> -> vector<8x64xf32>
    %484 = arith.mulf %477, %483 : vector<8x64xf32>
    %485 = arith.truncf %469 : vector<8x64xf32> to vector<8x64xbf16>
    %cst_250 = arith.constant dense<0.000000e+00> : vector<8x64xf32>
    %486 = tpu.matmul %485, %471, %cst_250 {dimension_numbers = #tpu.dot_dimension_numbers<[1], [0], [0], [1], [0, 0, 1, 1], [], []>} : vector<8x64xbf16>, vector<64x64xbf16>, vector<8x64xf32> -> vector<8x64xf32>
    %c15_251 = arith.constant 15 : index
    %c8_252 = arith.constant 8 : index
    %c0_253 = arith.constant 0 : index
    %487 = vector.load %arg13[%c15_251, %c8_252, %c0_253] : memref<20x16x64xf32, #tpu.memory_space<vmem>>, vector<1x8x64xf32>
    %488 = vector.shape_cast %487 : vector<1x8x64xf32> to vector<8x64xf32>
    %489 = arith.addf %486, %488 : vector<8x64xf32>
    %490 = arith.addf %469, %489 : vector<8x64xf32>
    %cst_254 = arith.constant 0.000000e+00 : f32
    %491 = vector.broadcast %cst_254 : f32 to vector<8x64xf32>
    %492 = arith.subf %491, %490 : vector<8x64xf32>
    %493 = math.exp %492 : vector<8x64xf32>
    %cst_255 = arith.constant 1.000000e+00 : f32
    %494 = vector.broadcast %cst_255 : f32 to vector<8x64xf32>
    %495 = arith.addf %494, %493 : vector<8x64xf32>
    %496 = tpu.reciprocal %495 {approx = true} : vector<8x64xf32> -> vector<8x64xf32>
    %497 = arith.mulf %490, %496 : vector<8x64xf32>
    %c16 = arith.constant 16 : index
    %c0_256 = arith.constant 0 : index
    %c0_257 = arith.constant 0 : index
    %498 = vector.load %arg6[%c16, %c0_256, %c0_257] : memref<20x64x64xbf16, #tpu.memory_space<vmem>>, vector<1x64x64xbf16>
    %499 = vector.shape_cast %498 : vector<1x64x64xbf16> to vector<64x64xbf16>
    %500 = arith.truncf %484 : vector<8x64xf32> to vector<8x64xbf16>
    %cst_258 = arith.constant dense<0.000000e+00> : vector<8x64xf32>
    %501 = tpu.matmul %500, %499, %cst_258 {dimension_numbers = #tpu.dot_dimension_numbers<[1], [0], [0], [1], [0, 0, 1, 1], [], []>} : vector<8x64xbf16>, vector<64x64xbf16>, vector<8x64xf32> -> vector<8x64xf32>
    %c16_259 = arith.constant 16 : index
    %c0_260 = arith.constant 0 : index
    %c0_261 = arith.constant 0 : index
    %502 = vector.load %arg13[%c16_259, %c0_260, %c0_261] : memref<20x16x64xf32, #tpu.memory_space<vmem>>, vector<1x8x64xf32>
    %503 = vector.shape_cast %502 : vector<1x8x64xf32> to vector<8x64xf32>
    %504 = arith.addf %501, %503 : vector<8x64xf32>
    %505 = arith.addf %484, %504 : vector<8x64xf32>
    %cst_262 = arith.constant 0.000000e+00 : f32
    %506 = vector.broadcast %cst_262 : f32 to vector<8x64xf32>
    %507 = arith.subf %506, %505 : vector<8x64xf32>
    %508 = math.exp %507 : vector<8x64xf32>
    %cst_263 = arith.constant 1.000000e+00 : f32
    %509 = vector.broadcast %cst_263 : f32 to vector<8x64xf32>
    %510 = arith.addf %509, %508 : vector<8x64xf32>
    %511 = tpu.reciprocal %510 {approx = true} : vector<8x64xf32> -> vector<8x64xf32>
    %512 = arith.mulf %505, %511 : vector<8x64xf32>
    %513 = arith.truncf %497 : vector<8x64xf32> to vector<8x64xbf16>
    %cst_264 = arith.constant dense<0.000000e+00> : vector<8x64xf32>
    %514 = tpu.matmul %513, %499, %cst_264 {dimension_numbers = #tpu.dot_dimension_numbers<[1], [0], [0], [1], [0, 0, 1, 1], [], []>} : vector<8x64xbf16>, vector<64x64xbf16>, vector<8x64xf32> -> vector<8x64xf32>
    %c16_265 = arith.constant 16 : index
    %c8_266 = arith.constant 8 : index
    %c0_267 = arith.constant 0 : index
    %515 = vector.load %arg13[%c16_265, %c8_266, %c0_267] : memref<20x16x64xf32, #tpu.memory_space<vmem>>, vector<1x8x64xf32>
    %516 = vector.shape_cast %515 : vector<1x8x64xf32> to vector<8x64xf32>
    %517 = arith.addf %514, %516 : vector<8x64xf32>
    %518 = arith.addf %497, %517 : vector<8x64xf32>
    %cst_268 = arith.constant 0.000000e+00 : f32
    %519 = vector.broadcast %cst_268 : f32 to vector<8x64xf32>
    %520 = arith.subf %519, %518 : vector<8x64xf32>
    %521 = math.exp %520 : vector<8x64xf32>
    %cst_269 = arith.constant 1.000000e+00 : f32
    %522 = vector.broadcast %cst_269 : f32 to vector<8x64xf32>
    %523 = arith.addf %522, %521 : vector<8x64xf32>
    %524 = tpu.reciprocal %523 {approx = true} : vector<8x64xf32> -> vector<8x64xf32>
    %525 = arith.mulf %518, %524 : vector<8x64xf32>
    %c17 = arith.constant 17 : index
    %c0_270 = arith.constant 0 : index
    %c0_271 = arith.constant 0 : index
    %526 = vector.load %arg6[%c17, %c0_270, %c0_271] : memref<20x64x64xbf16, #tpu.memory_space<vmem>>, vector<1x64x64xbf16>
    %527 = vector.shape_cast %526 : vector<1x64x64xbf16> to vector<64x64xbf16>
    %528 = arith.truncf %512 : vector<8x64xf32> to vector<8x64xbf16>
    %cst_272 = arith.constant dense<0.000000e+00> : vector<8x64xf32>
    %529 = tpu.matmul %528, %527, %cst_272 {dimension_numbers = #tpu.dot_dimension_numbers<[1], [0], [0], [1], [0, 0, 1, 1], [], []>} : vector<8x64xbf16>, vector<64x64xbf16>, vector<8x64xf32> -> vector<8x64xf32>
    %c17_273 = arith.constant 17 : index
    %c0_274 = arith.constant 0 : index
    %c0_275 = arith.constant 0 : index
    %530 = vector.load %arg13[%c17_273, %c0_274, %c0_275] : memref<20x16x64xf32, #tpu.memory_space<vmem>>, vector<1x8x64xf32>
    %531 = vector.shape_cast %530 : vector<1x8x64xf32> to vector<8x64xf32>
    %532 = arith.addf %529, %531 : vector<8x64xf32>
    %533 = arith.addf %512, %532 : vector<8x64xf32>
    %cst_276 = arith.constant 0.000000e+00 : f32
    %534 = vector.broadcast %cst_276 : f32 to vector<8x64xf32>
    %535 = arith.subf %534, %533 : vector<8x64xf32>
    %536 = math.exp %535 : vector<8x64xf32>
    %cst_277 = arith.constant 1.000000e+00 : f32
    %537 = vector.broadcast %cst_277 : f32 to vector<8x64xf32>
    %538 = arith.addf %537, %536 : vector<8x64xf32>
    %539 = tpu.reciprocal %538 {approx = true} : vector<8x64xf32> -> vector<8x64xf32>
    %540 = arith.mulf %533, %539 : vector<8x64xf32>
    %541 = arith.truncf %525 : vector<8x64xf32> to vector<8x64xbf16>
    %cst_278 = arith.constant dense<0.000000e+00> : vector<8x64xf32>
    %542 = tpu.matmul %541, %527, %cst_278 {dimension_numbers = #tpu.dot_dimension_numbers<[1], [0], [0], [1], [0, 0, 1, 1], [], []>} : vector<8x64xbf16>, vector<64x64xbf16>, vector<8x64xf32> -> vector<8x64xf32>
    %c17_279 = arith.constant 17 : index
    %c8_280 = arith.constant 8 : index
    %c0_281 = arith.constant 0 : index
    %543 = vector.load %arg13[%c17_279, %c8_280, %c0_281] : memref<20x16x64xf32, #tpu.memory_space<vmem>>, vector<1x8x64xf32>
    %544 = vector.shape_cast %543 : vector<1x8x64xf32> to vector<8x64xf32>
    %545 = arith.addf %542, %544 : vector<8x64xf32>
    %546 = arith.addf %525, %545 : vector<8x64xf32>
    %cst_282 = arith.constant 0.000000e+00 : f32
    %547 = vector.broadcast %cst_282 : f32 to vector<8x64xf32>
    %548 = arith.subf %547, %546 : vector<8x64xf32>
    %549 = math.exp %548 : vector<8x64xf32>
    %cst_283 = arith.constant 1.000000e+00 : f32
    %550 = vector.broadcast %cst_283 : f32 to vector<8x64xf32>
    %551 = arith.addf %550, %549 : vector<8x64xf32>
    %552 = tpu.reciprocal %551 {approx = true} : vector<8x64xf32> -> vector<8x64xf32>
    %553 = arith.mulf %546, %552 : vector<8x64xf32>
    %c18 = arith.constant 18 : index
    %c0_284 = arith.constant 0 : index
    %c0_285 = arith.constant 0 : index
    %554 = vector.load %arg6[%c18, %c0_284, %c0_285] : memref<20x64x64xbf16, #tpu.memory_space<vmem>>, vector<1x64x64xbf16>
    %555 = vector.shape_cast %554 : vector<1x64x64xbf16> to vector<64x64xbf16>
    %556 = arith.truncf %540 : vector<8x64xf32> to vector<8x64xbf16>
    %cst_286 = arith.constant dense<0.000000e+00> : vector<8x64xf32>
    %557 = tpu.matmul %556, %555, %cst_286 {dimension_numbers = #tpu.dot_dimension_numbers<[1], [0], [0], [1], [0, 0, 1, 1], [], []>} : vector<8x64xbf16>, vector<64x64xbf16>, vector<8x64xf32> -> vector<8x64xf32>
    %c18_287 = arith.constant 18 : index
    %c0_288 = arith.constant 0 : index
    %c0_289 = arith.constant 0 : index
    %558 = vector.load %arg13[%c18_287, %c0_288, %c0_289] : memref<20x16x64xf32, #tpu.memory_space<vmem>>, vector<1x8x64xf32>
    %559 = vector.shape_cast %558 : vector<1x8x64xf32> to vector<8x64xf32>
    %560 = arith.addf %557, %559 : vector<8x64xf32>
    %561 = arith.addf %540, %560 : vector<8x64xf32>
    %cst_290 = arith.constant 0.000000e+00 : f32
    %562 = vector.broadcast %cst_290 : f32 to vector<8x64xf32>
    %563 = arith.subf %562, %561 : vector<8x64xf32>
    %564 = math.exp %563 : vector<8x64xf32>
    %cst_291 = arith.constant 1.000000e+00 : f32
    %565 = vector.broadcast %cst_291 : f32 to vector<8x64xf32>
    %566 = arith.addf %565, %564 : vector<8x64xf32>
    %567 = tpu.reciprocal %566 {approx = true} : vector<8x64xf32> -> vector<8x64xf32>
    %568 = arith.mulf %561, %567 : vector<8x64xf32>
    %569 = arith.truncf %553 : vector<8x64xf32> to vector<8x64xbf16>
    %cst_292 = arith.constant dense<0.000000e+00> : vector<8x64xf32>
    %570 = tpu.matmul %569, %555, %cst_292 {dimension_numbers = #tpu.dot_dimension_numbers<[1], [0], [0], [1], [0, 0, 1, 1], [], []>} : vector<8x64xbf16>, vector<64x64xbf16>, vector<8x64xf32> -> vector<8x64xf32>
    %c18_293 = arith.constant 18 : index
    %c8_294 = arith.constant 8 : index
    %c0_295 = arith.constant 0 : index
    %571 = vector.load %arg13[%c18_293, %c8_294, %c0_295] : memref<20x16x64xf32, #tpu.memory_space<vmem>>, vector<1x8x64xf32>
    %572 = vector.shape_cast %571 : vector<1x8x64xf32> to vector<8x64xf32>
    %573 = arith.addf %570, %572 : vector<8x64xf32>
    %574 = arith.addf %553, %573 : vector<8x64xf32>
    %cst_296 = arith.constant 0.000000e+00 : f32
    %575 = vector.broadcast %cst_296 : f32 to vector<8x64xf32>
    %576 = arith.subf %575, %574 : vector<8x64xf32>
    %577 = math.exp %576 : vector<8x64xf32>
    %cst_297 = arith.constant 1.000000e+00 : f32
    %578 = vector.broadcast %cst_297 : f32 to vector<8x64xf32>
    %579 = arith.addf %578, %577 : vector<8x64xf32>
    %580 = tpu.reciprocal %579 {approx = true} : vector<8x64xf32> -> vector<8x64xf32>
    %581 = arith.mulf %574, %580 : vector<8x64xf32>
    %c19 = arith.constant 19 : index
    %c0_298 = arith.constant 0 : index
    %c0_299 = arith.constant 0 : index
    %582 = vector.load %arg6[%c19, %c0_298, %c0_299] : memref<20x64x64xbf16, #tpu.memory_space<vmem>>, vector<1x64x64xbf16>
    %583 = vector.shape_cast %582 : vector<1x64x64xbf16> to vector<64x64xbf16>
    %584 = arith.truncf %568 : vector<8x64xf32> to vector<8x64xbf16>
    %cst_300 = arith.constant dense<0.000000e+00> : vector<8x64xf32>
    %585 = tpu.matmul %584, %583, %cst_300 {dimension_numbers = #tpu.dot_dimension_numbers<[1], [0], [0], [1], [0, 0, 1, 1], [], []>} : vector<8x64xbf16>, vector<64x64xbf16>, vector<8x64xf32> -> vector<8x64xf32>
    %c19_301 = arith.constant 19 : index
    %c0_302 = arith.constant 0 : index
    %c0_303 = arith.constant 0 : index
    %586 = vector.load %arg13[%c19_301, %c0_302, %c0_303] : memref<20x16x64xf32, #tpu.memory_space<vmem>>, vector<1x8x64xf32>
    %587 = vector.shape_cast %586 : vector<1x8x64xf32> to vector<8x64xf32>
    %588 = arith.addf %585, %587 : vector<8x64xf32>
    %589 = arith.addf %568, %588 : vector<8x64xf32>
    %cst_304 = arith.constant 0.000000e+00 : f32
    %590 = vector.broadcast %cst_304 : f32 to vector<8x64xf32>
    %591 = arith.subf %590, %589 : vector<8x64xf32>
    %592 = math.exp %591 : vector<8x64xf32>
    %cst_305 = arith.constant 1.000000e+00 : f32
    %593 = vector.broadcast %cst_305 : f32 to vector<8x64xf32>
    %594 = arith.addf %593, %592 : vector<8x64xf32>
    %595 = tpu.reciprocal %594 {approx = true} : vector<8x64xf32> -> vector<8x64xf32>
    %596 = arith.mulf %589, %595 : vector<8x64xf32>
    %597 = arith.truncf %581 : vector<8x64xf32> to vector<8x64xbf16>
    %cst_306 = arith.constant dense<0.000000e+00> : vector<8x64xf32>
    %598 = tpu.matmul %597, %583, %cst_306 {dimension_numbers = #tpu.dot_dimension_numbers<[1], [0], [0], [1], [0, 0, 1, 1], [], []>} : vector<8x64xbf16>, vector<64x64xbf16>, vector<8x64xf32> -> vector<8x64xf32>
    %c19_307 = arith.constant 19 : index
    %c8_308 = arith.constant 8 : index
    %c0_309 = arith.constant 0 : index
    %599 = vector.load %arg13[%c19_307, %c8_308, %c0_309] : memref<20x16x64xf32, #tpu.memory_space<vmem>>, vector<1x8x64xf32>
    %600 = vector.shape_cast %599 : vector<1x8x64xf32> to vector<8x64xf32>
    %601 = arith.addf %598, %600 : vector<8x64xf32>
    %602 = arith.addf %581, %601 : vector<8x64xf32>
    %cst_310 = arith.constant 0.000000e+00 : f32
    %603 = vector.broadcast %cst_310 : f32 to vector<8x64xf32>
    %604 = arith.subf %603, %602 : vector<8x64xf32>
    %605 = math.exp %604 : vector<8x64xf32>
    %cst_311 = arith.constant 1.000000e+00 : f32
    %606 = vector.broadcast %cst_311 : f32 to vector<8x64xf32>
    %607 = arith.addf %606, %605 : vector<8x64xf32>
    %608 = tpu.reciprocal %607 {approx = true} : vector<8x64xf32> -> vector<8x64xf32>
    %609 = arith.mulf %602, %608 : vector<8x64xf32>
    %610 = arith.truncf %596 : vector<8x64xf32> to vector<8x64xbf16>
    %cst_312 = arith.constant dense<0.000000e+00> : vector<8x2xf32>
    %611 = tpu.matmul %610, %25, %cst_312 {dimension_numbers = #tpu.dot_dimension_numbers<[1], [0], [0], [1], [0, 0, 1, 1], [], []>} : vector<8x64xbf16>, vector<64x2xbf16>, vector<8x2xf32> -> vector<8x2xf32>
    %612 = vector.extract_strided_slice %23 {offsets = [0, 0], sizes = [8, 2], strides = [1, 1]} : vector<16x2xf32> to vector<8x2xf32>
    %613 = arith.addf %611, %612 : vector<8x2xf32>
    %c0_313 = arith.constant 0 : index
    %c0_314 = arith.constant 0 : index
    %614 = vector.load %arg12[%c0_313, %c0_314] : memref<16x2xf32, #tpu.memory_space<vmem>>, vector<8x2xf32>
    tpu.vector_store %arg12[%c0_313, %c0_314], %613 {strides = array<i32>} : memref<16x2xf32, #tpu.memory_space<vmem>>, vector<8x2xf32>,
    %615 = arith.truncf %609 : vector<8x64xf32> to vector<8x64xbf16>
    %cst_315 = arith.constant dense<0.000000e+00> : vector<8x2xf32>
    %616 = tpu.matmul %615, %25, %cst_315 {dimension_numbers = #tpu.dot_dimension_numbers<[1], [0], [0], [1], [0, 0, 1, 1], [], []>} : vector<8x64xbf16>, vector<64x2xbf16>, vector<8x2xf32> -> vector<8x2xf32>
    %617 = vector.extract_strided_slice %23 {offsets = [8, 0], sizes = [8, 2], strides = [1, 1]} : vector<16x2xf32> to vector<8x2xf32>
    %618 = arith.addf %616, %617 : vector<8x2xf32>
    %c8_316 = arith.constant 8 : index
    %c0_317 = arith.constant 0 : index
    %619 = vector.load %arg12[%c8_316, %c0_317] : memref<16x2xf32, #tpu.memory_space<vmem>>, vector<8x2xf32>
    tpu.vector_store %arg12[%c8_316, %c0_317], %618 {strides = array<i32>} : memref<16x2xf32, #tpu.memory_space<vmem>>, vector<8x2xf32>,
    return
  }
  func.func @transform_0(%arg0: i32) -> (i32, i32) {
    %c0_i32 = arith.constant 0 : i32
    %c0_i32_0 = arith.constant 0 : i32
    return %arg0, %c0_i32 : i32, i32
  }
  func.func @transform_1(%arg0: i32) -> (i32, i32) {
    %c0_i32 = arith.constant 0 : i32
    %c0_i32_0 = arith.constant 0 : i32
    return %arg0, %c0_i32 : i32, i32
  }
  func.func @transform_2(%arg0: i32) -> (i32, i32) {
    %c0_i32 = arith.constant 0 : i32
    %c0_i32_0 = arith.constant 0 : i32
    %c0_i32_1 = arith.constant 0 : i32
    return %c0_i32, %c0_i32_0 : i32, i32
  }
  func.func @transform_3(%arg0: i32) -> (i32, i32) {
    %c0_i32 = arith.constant 0 : i32
    %c0_i32_0 = arith.constant 0 : i32
    %c0_i32_1 = arith.constant 0 : i32
    return %c0_i32, %c0_i32_0 : i32, i32
  }
  func.func @transform_4(%arg0: i32) -> (i32, i32) {
    %c0_i32 = arith.constant 0 : i32
    %c0_i32_0 = arith.constant 0 : i32
    %c0_i32_1 = arith.constant 0 : i32
    return %c0_i32, %c0_i32_0 : i32, i32
  }
  func.func @transform_5(%arg0: i32) -> (i32, i32, i32) {
    %c0_i32 = arith.constant 0 : i32
    %c0_i32_0 = arith.constant 0 : i32
    %c0_i32_1 = arith.constant 0 : i32
    %c0_i32_2 = arith.constant 0 : i32
    return %c0_i32, %c0_i32_0, %c0_i32_1 : i32, i32, i32
  }
  func.func @transform_6(%arg0: i32) -> (i32, i32, i32) {
    %c0_i32 = arith.constant 0 : i32
    %c0_i32_0 = arith.constant 0 : i32
    %c0_i32_1 = arith.constant 0 : i32
    %c0_i32_2 = arith.constant 0 : i32
    return %c0_i32, %c0_i32_0, %c0_i32_1 : i32, i32, i32
  }
  func.func @transform_7(%arg0: i32) -> (i32, i32, i32) {
    %c0_i32 = arith.constant 0 : i32
    %c0_i32_0 = arith.constant 0 : i32
    %c0_i32_1 = arith.constant 0 : i32
    %c0_i32_2 = arith.constant 0 : i32
    return %c0_i32, %c0_i32_0, %c0_i32_1 : i32, i32, i32
  }
  func.func @transform_8(%arg0: i32) -> (i32, i32) {
    %c0_i32 = arith.constant 0 : i32
    %c0_i32_0 = arith.constant 0 : i32
    %c0_i32_1 = arith.constant 0 : i32
    return %c0_i32, %c0_i32_0 : i32, i32
  }
  func.func @transform_9(%arg0: i32) -> (i32, i32) {
    %c0_i32 = arith.constant 0 : i32
    %c0_i32_0 = arith.constant 0 : i32
    %c0_i32_1 = arith.constant 0 : i32
    return %c0_i32, %c0_i32_0 : i32, i32
  }
  func.func @transform_10(%arg0: i32) -> (i32, i32) {
    %c0_i32 = arith.constant 0 : i32
    %c0_i32_0 = arith.constant 0 : i32
    %c0_i32_1 = arith.constant 0 : i32
    return %c0_i32, %c0_i32_0 : i32, i32
  }
  func.func @transform_11(%arg0: i32) -> (i32, i32) {
    %c0_i32 = arith.constant 0 : i32
    %c0_i32_0 = arith.constant 0 : i32
    return %arg0, %c0_i32 : i32, i32
  }
}

</mosaic_0001>

<bundles_post_ra>
// kernel: tpu_custom_call.1
= control target key start
LH: loop header
LB: loop body
LE: loop exit
PB: predicated region body
PF: predicated region fallthrough
CT: control target
= control target key end

     0   :  { %16 = vsyncpa [#allocation4], 0  ;;  %s4680_s17 = smov [#allocation3]   ;;  %s5315_s0 = inlined_call_operand.vmem [shape: f32[16,2], index: 0, kind: input, shape index: {}]   ;;  %s5316_s1 = inlined_call_operand.vmem [shape: f32[16,1], index: 1, kind: input, shape index: {}]   ;;  %s5317_s2 = inlined_call_operand.vmem [shape: bf16[2,64], index: 2, kind: input, shape index: {}]   ;;  %s5318_s3 = inlined_call_operand.vmem [shape: f32[1,64], index: 3, kind: input, shape index: {}]   ;;  %s5319_s4 = inlined_call_operand.vmem [shape: f32[1,64], index: 4, kind: input, shape index: {}]   ;;  %s5320_s5 = inlined_call_operand.hbm [shape: bf16[20,64,64], index: 5, kind: input, shape index: {}]   ;;  %s5321_s6 = inlined_call_operand.vmem [shape: f32[20,1,64], index: 6, kind: input, shape index: {}]   ;;  %s5322_s7 = inlined_call_operand.vmem [shape: f32[20,1,64], index: 7, kind: input, shape index: {}]   ;;  %s5323_s8 = inlined_call_operand.vmem [shape: bf16[64,2], index: 8, kind: input, shape index: {}]   ;;  %s5324_s9 = inlined_call_operand.vmem [shape: f32[1,2], index: 9, kind: input, shape index: {}]   ;;  %s5325_s10 = inlined_call_operand.vmem [shape: f32[1,2], index: 10, kind: input, shape index: {}]   ;;  %s5326_s11 = inlined_call_operand.vmem [shape: f32[16,2], index: 11, kind: output, shape index: {}]  }
   0x1   :  { %s32_s18 = sshll.u32 %s4680_s17, 4  ;;  %s4656_s21 = scalar_lea.hbm %s5320_s5, 10240  ;;  %s33_s18 = int_to_ptr.vmem [resolvable:$true] %s32_s18 }
   0x2   :  { %p4657_p0 = scmp.ne.s32.totalorder %s5320_s5, %s4656_s21  ;;  %p4660_p1 = scmp.lt.u32.totalorder %s4656_s21, %s5320_s5 }
   0x4   :  { %p4662_p2 = pnand %p4660_p1, %p4657_p0 }
   0x6   :  { %4665 = shalt.err (!%p4662_p2)
}
   0x7   :  { %s4666_s26 = scalar_lea.vmem %s33_s18, 10240  ;;  %p4671_p4 = scmp.lt.s32.totalorder %s33_s18, %s33_s18 }
   0x8   :  { %p4667_p3 = scmp.ne.s32.totalorder %s33_s18, %s4666_s26  ;;  %p4672_p5 = scmp.lt.s32.totalorder %s4666_s26, %s4666_s26 }
   0xa   :  { %p4673_p6 = por %p4672_p5, %p4671_p4 }
   0xc   :  { %p4674_p7 = pnand %p4673_p6, %p4667_p3 }
   0xe   :  { %4677 = shalt.err (!%p4674_p7)
}
   0xf   :  { %s4681_s27 = smov 64   ;;  %s4682_s28 = smov 4  }
  0x10   :  { %38 = dma.hbm_to_vmem [thread:$0]  %s5320_s5, 10240, %s33_s18, [#allocation4], %s4681_s27, %s4681_s27, %s4682_s28  }
  0x11   :  { %4678 = dma.done.wait [#allocation4], 10240  }
  0x12   :  { %4679 = vsyncadd [#allocation4], 4294957056  ;;  %v4683_v0 = vmov 0.0   ;;  %vm4684_vm0 = vmmov 0   ;;  %v4685_v1 = vmov 0   ;;  %vm517_vm1 = vcmask 1040384  }
  0x13   :  { %3881 = vmatprep.subr.bf16.mxu0 %v4683_v0  ;;  %3887 = vmatprep.subr.bf16.mxu1 %v4683_v0  ;;  %v502_v2 = vld [vmem:[%s5317_s2] sm:$0x1]  ;;  %v567_v4 = vld [vmem:[%s5315_s0 + $0x8] sm:$0xff]  ;;  %vm513_vm2 = vcmask 15360   ;;  %v4406_v12 = vld [vmem:[#allocation3 + $0x10] sm:$0xff]   ;;  %vm425_vm3 = vcmask 523264  }
  0x14   :  { %3883 = vmatprep.mubr.msk.bf16.mxu0 %vm4684_vm0, %v4683_v0  ;;  %3889 = vmatprep.mubr.msk.bf16.mxu1 %vm4684_vm0, %v4683_v0  ;;  %v511_v3 = vld [vmem:[%s5315_s0] sm:$0xff]  ;;  %v519_v5 = vsel %vm517_vm1, %v502_v2, 0  ;;  %v568_v7 = vpack.c.bf16 %v567_v4, %v567_v4  ;;  %v54_v9 = vld [vmem:[%s5316_s1 + $0x8] sm:$0xff]  ;;  %v4407_v13 = vld [vmem:[#allocation3 + $0x18] sm:$0xff]  }
  0x15   :  { %4403 = vset.pattern.permute.xlu0 %v4685_v1  ;;  %v512_v6 = vpack.c.bf16 %v511_v3, %v511_v3  ;;  %v53_v8 = vld [vmem:[%s5316_s1] sm:$0xff]  ;;  %3882 = vmatpush3.bf16.msra.mxu0 %v519_v5  ;;  %v4405_v11 = vld [vmem:[#allocation3 + $0x8] sm:$0xff]  }
  0x16   :  { %3888 = vmatpush3.bf16.msra.mxu1 %v519_v5  ;;  %77 = vperm.xlu0 %4403, %v53_v8   ;;  %v4404_v10 = vld [vmem:[#allocation3] sm:$0xff]   ;;  %v3503_v52 = vld [vmem:[%s5321_s6 + $0x8] ss:$0 sm:$0xff]  ;;  %v3504_v56 = vld [vmem:[%s5321_s6 + $0x9] ss:$0 sm:$0xff] }
  0x17   :  { %3893 = vmatprep.subr.bf16.mxu0 %v4683_v0  ;;  %3905 = vmatprep.subr.bf16.mxu1 %v4683_v0  ;;  %v3495_v14 = vld [vmem:[%s5321_s6] ss:$0 sm:$0xff]  ;;  %v3496_v15 = vld [vmem:[%s5321_s6 + $0x1] ss:$0 sm:$0xff]  ;;  %v3497_v16 = vld [vmem:[%s5321_s6 + $0x2] ss:$0 sm:$0xff] }
  0x18   :  { %3884 = vmatmul.mubr.msk.bf16.vlgmr.msra.gmra.mrb[0].mxu0 %vm513_vm2, %v512_v6  ;;  %v3498_v17 = vld [vmem:[%s5321_s6 + $0x3] ss:$0 sm:$0xff]  ;;  %v3499_v18 = vld [vmem:[%s5321_s6 + $0x4] ss:$0 sm:$0xff]  ;;  %v3500_v19 = vld [vmem:[%s5321_s6 + $0x5] ss:$0 sm:$0xff] }
  0x19   :  { %3890 = vmatmul.mubr.msk.bf16.vlgmr.msra.gmra.mrb[0].mxu1 %vm513_vm2, %v568_v7  ;;  %3901 = vmatprep.mubr.msk.bf16.mxu0 %vm4684_vm0, %v4683_v0  ;;  %v3515_v20 = vld [vmem:[%s5322_s7] ss:$0 sm:$0xff]  ;;  %v3516_v21 = vld [vmem:[%s5322_s7 + $0x1] ss:$0 sm:$0xff]  ;;  %v3501_v22 = vld [vmem:[%s5321_s6 + $0x6] ss:$0 sm:$0xff] }
  0x1a   :  { %3913 = vmatprep.mubr.msk.bf16.mxu1 %vm4684_vm0, %v4683_v0  ;;  %82 = vperm.xlu0 %4403, %v54_v9   ;;  %v3517_v24 = vld [vmem:[%s5322_s7 + $0x2] ss:$0 sm:$0xff]  ;;  %v3518_v25 = vld [vmem:[%s5322_s7 + $0x3] ss:$0 sm:$0xff]  ;;  %v3519_v26 = vld [vmem:[%s5322_s7 + $0x4] ss:$0 sm:$0xff] }
  0x1b   :  { %3894 = vmatpush3.bf16.msra.mxu0 %v4404_v10  ;;  %3906 = vmatpush3.bf16.msra.mxu1 %v4404_v10  ;;  %v3520_v30 = vld [vmem:[%s5322_s7 + $0x5] ss:$0 sm:$0xff]  ;;  %v3521_v31 = vld [vmem:[%s5322_s7 + $0x6] ss:$0 sm:$0xff]  ;;  %v3502_v51 = vld [vmem:[%s5321_s6 + $0x7] ss:$0 sm:$0xff] }
  0x1c   :  { %3895 = vmatprep.subr.bf16.mxu0 %v4683_v0  ;;  %3907 = vmatprep.subr.bf16.mxu1 %v4683_v0  ;;  %v3505_v57 = vld [vmem:[%s5321_s6 + $0xa] ss:$0 sm:$0xff]  ;;  %v3522_v62 = vld [vmem:[%s5322_s7 + $0x7] ss:$0 sm:$0xff]  ;;  %v3523_v63 = vld [vmem:[%s5322_s7 + $0x8] ss:$0 sm:$0xff] }
  0x1d   :  { %v3524_v5 = vld [vmem:[%s5322_s7 + $0x9] ss:$0 sm:$0xff]  ;;  %v3525_v6 = vld [vmem:[%s5322_s7 + $0xa] ss:$0 sm:$0xff] }
  0x1f   :  { %3896 = vmatpush3.bf16.msra.mxu0 %v4405_v11  ;;  %3908 = vmatpush3.bf16.msra.mxu1 %v4405_v11  ;;  %v3506_v11 = vld [vmem:[%s5321_s6 + $0xb] ss:$0 sm:$0xff] }
  0x20   :  { %3897 = vmatprep.subr.bf16.mxu0 %v4683_v0  ;;  %3909 = vmatprep.subr.bf16.mxu1 %v4683_v0 }
  0x23   :  { %3898 = vmatpush3.bf16.msra.mxu0 %v4406_v12  ;;  %3910 = vmatpush3.bf16.msra.mxu1 %v4406_v12  ;;  %v3507_v12 = vld [vmem:[%s5321_s6 + $0xc] ss:$0 sm:$0xff] }
  0x24   :  { %3899 = vmatprep.subr.bf16.mxu0 %v4683_v0  ;;  %3911 = vmatprep.subr.bf16.mxu1 %v4683_v0 }
  0x27   :  { %3900 = vmatpush3.bf16.msra.mxu0 %v4407_v13  ;;  %3912 = vmatpush3.bf16.msra.mxu1 %v4407_v13 }
  0x28   :  { %3917 = vmatprep.subr.bf16.mxu0 %v4683_v0  ;;  %3929 = vmatprep.subr.bf16.mxu1 %v4683_v0 }
  0x95   :  { %v4822_v23 = vpop.permute.xlu0 %77 }
  0x96   :  { %v205_v27 = vmul.f32 %v3495_v14, %v4822_v23  ;;  %v207_v28 = vmul.f32 %v3496_v15, %v4822_v23  ;;  %v209_v29 = vmul.f32 %v3497_v16, %v4822_v23  ;;  %v211_v32 = vmul.f32 %v3498_v17, %v4822_v23 }
  0x97   :  { %v213_v33 = vmul.f32 %v3499_v18, %v4822_v23  ;;  %v215_v34 = vmul.f32 %v3500_v19, %v4822_v23  ;;  %v217_v35 = vmul.f32 %v3501_v22, %v4822_v23  ;;  %v219_v1 = vmul.f32 %v3502_v51, %v4822_v23 }
  0x98   :  { %v385_v36 = vadd.f32 %v3515_v20, %v205_v27  ;;  %v387_v37 = vadd.f32 %v3516_v21, %v207_v28  ;;  %v389_v38 = vadd.f32 %v3517_v24, %v209_v29  ;;  %v391_v40 = vadd.f32 %v3518_v25, %v211_v32 }
  0x99   :  { %v4846_v39 = vpop.permute.xlu0 %82  ;;  %v393_v41 = vadd.f32 %v3519_v26, %v213_v33  ;;  %v395_v42 = vadd.f32 %v3520_v30, %v215_v34  ;;  %v397_v43 = vadd.f32 %v3521_v31, %v217_v35  ;;  %v221_v3 = vmul.f32 %v3503_v52, %v4822_v23 }
  0x9a   :  { %426 = vst.msk [vmem:[#allocation2] sm:$0xff] %vm425_vm3, %v385_v36  ;;  %v206_v44 = vmul.f32 %v3495_v14, %v4846_v39  ;;  %428 = vst.msk [vmem:[#allocation2 + $0x10] sm:$0xff] %vm425_vm3, %v387_v37  ;;  %v208_v45 = vmul.f32 %v3496_v15, %v4846_v39  ;;  %v210_v46 = vmul.f32 %v3497_v16, %v4846_v39  ;;  %v3510_v36 = vld [vmem:[%s5321_s6 + $0xf] ss:$0 sm:$0xff]  ;;  %v3511_v37 = vld [vmem:[%s5321_s6 + $0x10] ss:$0 sm:$0xff] }
  0x9b   :  { %430 = vst.msk [vmem:[#allocation2 + $0x20] sm:$0xff] %vm425_vm3, %v389_v38  ;;  %432 = vst.msk [vmem:[#allocation2 + $0x30] sm:$0xff] %vm425_vm3, %v391_v40  ;;  %v212_v47 = vmul.f32 %v3498_v17, %v4846_v39  ;;  %v214_v48 = vmul.f32 %v3499_v18, %v4846_v39  ;;  %v216_v49 = vmul.f32 %v3500_v19, %v4846_v39  ;;  %v3508_v17 = vld [vmem:[%s5321_s6 + $0xd] ss:$0 sm:$0xff]  ;;  %v3509_v18 = vld [vmem:[%s5321_s6 + $0xe] ss:$0 sm:$0xff] }
  0x9c   :  { %434 = vst.msk [vmem:[#allocation2 + $0x40] sm:$0xff] %vm425_vm3, %v393_v41  ;;  %436 = vst.msk [vmem:[#allocation2 + $0x50] sm:$0xff] %vm425_vm3, %v395_v42  ;;  %v218_v50 = vmul.f32 %v3501_v22, %v4846_v39  ;;  %v386_v53 = vadd.f32 %v3515_v20, %v206_v44  ;;  %v388_v54 = vadd.f32 %v3516_v21, %v208_v45  ;;  %v3513_v44 = vld [vmem:[%s5321_s6 + $0x12] ss:$0 sm:$0xff] }
  0x9d   :  { %438 = vst.msk [vmem:[#allocation2 + $0x60] sm:$0xff] %vm425_vm3, %v397_v43  ;;  %v390_v55 = vadd.f32 %v3517_v24, %v210_v46  ;;  %v392_v58 = vadd.f32 %v3518_v25, %v212_v47  ;;  %v394_v59 = vadd.f32 %v3519_v26, %v214_v48  ;;  %v396_v60 = vadd.f32 %v3520_v30, %v216_v49  ;;  %v3526_v24 = vld [vmem:[%s5322_s7 + $0xb] ss:$0 sm:$0xff]  ;;  %v3527_v25 = vld [vmem:[%s5322_s7 + $0xc] ss:$0 sm:$0xff] }
  0x9e   :  { %v398_v61 = vadd.f32 %v3521_v31, %v218_v50  ;;  %427 = vst.msk [vmem:[#allocation2 + $0x8] sm:$0xff] %vm425_vm3, %v386_v53  ;;  %429 = vst.msk [vmem:[#allocation2 + $0x18] sm:$0xff] %vm425_vm3, %v388_v54  ;;  %v220_v2 = vmul.f32 %v3502_v51, %v4846_v39  ;;  %v222_v4 = vmul.f32 %v3503_v52, %v4846_v39  ;;  %v3528_v30 = vld [vmem:[%s5322_s7 + $0xd] ss:$0 sm:$0xff]  ;;  %v3529_v31 = vld [vmem:[%s5322_s7 + $0xe] ss:$0 sm:$0xff] }
  0x9f   :  { %431 = vst.msk [vmem:[#allocation2 + $0x28] sm:$0xff] %vm425_vm3, %v390_v55  ;;  %433 = vst.msk [vmem:[#allocation2 + $0x38] sm:$0xff] %vm425_vm3, %v392_v58  ;;  %v223_v7 = vmul.f32 %v3504_v56, %v4822_v23  ;;  %v224_v8 = vmul.f32 %v3504_v56, %v4846_v39  ;;  %v225_v9 = vmul.f32 %v3505_v57, %v4822_v23  ;;  %v3512_v43 = vld [vmem:[%s5321_s6 + $0x11] ss:$0 sm:$0xff]  ;;  %v3530_v49 = vld [vmem:[%s5322_s7 + $0xf] ss:$0 sm:$0xff] }
  0xa0   :  { %435 = vst.msk [vmem:[#allocation2 + $0x48] sm:$0xff] %vm425_vm3, %v394_v59  ;;  %437 = vst.msk [vmem:[#allocation2 + $0x58] sm:$0xff] %vm425_vm3, %v396_v60  ;;  %v226_v10 = vmul.f32 %v3505_v57, %v4846_v39  ;;  %v399_v13 = vadd.f32 %v3522_v62, %v219_v1  ;;  %v400_v14 = vadd.f32 %v3522_v62, %v220_v2  ;;  %v3531_v50 = vld [vmem:[%s5322_s7 + $0x10] ss:$0 sm:$0xff]  ;;  %v3532_v55 = vld [vmem:[%s5322_s7 + $0x11] ss:$0 sm:$0xff] }
  0xa1   :  { %439 = vst.msk [vmem:[#allocation2 + $0x68] sm:$0xff] %vm425_vm3, %v398_v61  ;;  %v401_v15 = vadd.f32 %v3523_v63, %v221_v3  ;;  %v402_v16 = vadd.f32 %v3523_v63, %v222_v4  ;;  %v403_v19 = vadd.f32 %v3524_v5, %v223_v7  ;;  %v404_v20 = vadd.f32 %v3524_v5, %v224_v8  ;;  %v3533_v56 = vld [vmem:[%s5322_s7 + $0x12] ss:$0 sm:$0xff]  ;;  %v3514_v61 = vld [vmem:[%s5321_s6 + $0x13] ss:$0 sm:$0xff] }
  0xa2   :  { %v405_v21 = vadd.f32 %v3525_v6, %v225_v9  ;;  %v406_v22 = vadd.f32 %v3525_v6, %v226_v10  ;;  %440 = vst.msk [vmem:[#allocation2 + $0x70] sm:$0xff] %vm425_vm3, %v399_v13  ;;  %441 = vst.msk [vmem:[#allocation2 + $0x78] sm:$0xff] %vm425_vm3, %v400_v14  ;;  %v227_v26 = vmul.f32 %v3506_v11, %v4822_v23  ;;  %v3534_v7 = vld [vmem:[%s5322_s7 + $0x13] ss:$0 sm:$0xff] }
  0xa3   :  { %442 = vst.msk [vmem:[#allocation2 + $0x80] sm:$0xff] %vm425_vm3, %v401_v15  ;;  %443 = vst.msk [vmem:[#allocation2 + $0x88] sm:$0xff] %vm425_vm3, %v402_v16  ;;  %v228_v27 = vmul.f32 %v3506_v11, %v4846_v39  ;;  %v229_v28 = vmul.f32 %v3507_v12, %v4822_v23  ;;  %v230_v29 = vmul.f32 %v3507_v12, %v4846_v39  ;;  %v3535_v12 = vld [vmem:[%s5318_s3] ss:$0 sm:$0xff] }
  0xa4   :  { %444 = vst.msk [vmem:[#allocation2 + $0x90] sm:$0xff] %vm425_vm3, %v403_v19  ;;  %445 = vst.msk [vmem:[#allocation2 + $0x98] sm:$0xff] %vm425_vm3, %v404_v20  ;;  %v231_v32 = vmul.f32 %v3508_v17, %v4822_v23  ;;  %v232_v33 = vmul.f32 %v3508_v17, %v4846_v39  ;;  %v233_v34 = vmul.f32 %v3509_v18, %v4822_v23  ;;  %v3536_v15 = vld [vmem:[%s5319_s4] ss:$0 sm:$0xff] }
  0xa5   :  { %446 = vst.msk [vmem:[#allocation2 + $0xa0] sm:$0xff] %vm425_vm3, %v405_v21  ;;  %447 = vst.msk [vmem:[#allocation2 + $0xa8] sm:$0xff] %vm425_vm3, %v406_v22  ;;  %v234_v35 = vmul.f32 %v3509_v18, %v4846_v39  ;;  %v407_v38 = vadd.f32 %v3526_v24, %v227_v26  ;;  %v408_v40 = vadd.f32 %v3526_v24, %v228_v27 }
  0xa6   :  { %v409_v41 = vadd.f32 %v3527_v25, %v229_v28  ;;  %v410_v42 = vadd.f32 %v3527_v25, %v230_v29  ;;  %v411_v45 = vadd.f32 %v3528_v30, %v231_v32  ;;  %v412_v46 = vadd.f32 %v3528_v30, %v232_v33 }
  0xa7   :  { %v413_v47 = vadd.f32 %v3529_v31, %v233_v34  ;;  %v414_v48 = vadd.f32 %v3529_v31, %v234_v35  ;;  %448 = vst.msk [vmem:[#allocation2 + $0xb0] sm:$0xff] %vm425_vm3, %v407_v38  ;;  %449 = vst.msk [vmem:[#allocation2 + $0xb8] sm:$0xff] %vm425_vm3, %v408_v40  ;;  %v235_v51 = vmul.f32 %v3510_v36, %v4822_v23 }
  0xa8   :  { %450 = vst.msk [vmem:[#allocation2 + $0xc0] sm:$0xff] %vm425_vm3, %v409_v41  ;;  %451 = vst.msk [vmem:[#allocation2 + $0xc8] sm:$0xff] %vm425_vm3, %v410_v42  ;;  %v236_v52 = vmul.f32 %v3510_v36, %v4846_v39  ;;  %v237_v53 = vmul.f32 %v3511_v37, %v4822_v23  ;;  %v238_v54 = vmul.f32 %v3511_v37, %v4846_v39 }
  0xa9   :  { %452 = vst.msk [vmem:[#allocation2 + $0xd0] sm:$0xff] %vm425_vm3, %v411_v45  ;;  %453 = vst.msk [vmem:[#allocation2 + $0xd8] sm:$0xff] %vm425_vm3, %v412_v46  ;;  %v239_v57 = vmul.f32 %v3512_v43, %v4822_v23  ;;  %v240_v58 = vmul.f32 %v3512_v43, %v4846_v39  ;;  %v241_v59 = vmul.f32 %v3513_v44, %v4822_v23  ;;  %v4409_v45 = vld [vmem:[#allocation3 + $0x28] sm:$0xff]   ;;  %v4410_v46 = vld [vmem:[#allocation3 + $0x30] sm:$0xff]  }
  0xaa   :  { %454 = vst.msk [vmem:[#allocation2 + $0xe0] sm:$0xff] %vm425_vm3, %v413_v47  ;;  %455 = vst.msk [vmem:[#allocation2 + $0xe8] sm:$0xff] %vm425_vm3, %v414_v48  ;;  %v242_v60 = vmul.f32 %v3513_v44, %v4846_v39  ;;  %v415_v62 = vadd.f32 %v3530_v49, %v235_v51  ;;  %v416_v63 = vadd.f32 %v3530_v49, %v236_v52  ;;  %v4408_v44 = vld [vmem:[#allocation3 + $0x20] sm:$0xff]   ;;  %v4411_v47 = vld [vmem:[#allocation3 + $0x38] sm:$0xff]  }
  0xab   :  { %v417_v1 = vadd.f32 %v3531_v50, %v237_v53  ;;  %v418_v2 = vadd.f32 %v3531_v50, %v238_v54  ;;  %v419_v3 = vadd.f32 %v3532_v55, %v239_v57  ;;  %v420_v4 = vadd.f32 %v3532_v55, %v240_v58  ;;  %v627_v48 = vld [vmem:[#allocation2] sm:$0xff]  ;;  %v703_v51 = vld [vmem:[#allocation2 + $0x8] sm:$0xff] }
  0xac   :  { %v421_v5 = vadd.f32 %v3533_v56, %v241_v59  ;;  %v422_v6 = vadd.f32 %v3533_v56, %v242_v60  ;;  %456 = vst.msk [vmem:[#allocation2 + $0xf0] sm:$0xff] %vm425_vm3, %v415_v62  ;;  %457 = vst.msk [vmem:[#allocation2 + $0xf8] sm:$0xff] %vm425_vm3, %v416_v63  ;;  %v243_v8 = vmul.f32 %v3514_v61, %v4822_v23 }
  0xad   :  { %458 = vst.msk [vmem:[#allocation2 + $0x100] sm:$0xff] %vm425_vm3, %v417_v1  ;;  %459 = vst.msk [vmem:[#allocation2 + $0x108] sm:$0xff] %vm425_vm3, %v418_v2  ;;  %v244_v9 = vmul.f32 %v3514_v61, %v4846_v39  ;;  %v473_v13 = vmul.f32 %v3535_v12, %v4822_v23  ;;  %v474_v14 = vmul.f32 %v3535_v12, %v4846_v39 }
  0xae   :  { %460 = vst.msk [vmem:[#allocation2 + $0x110] sm:$0xff] %vm425_vm3, %v419_v3  ;;  %461 = vst.msk [vmem:[#allocation2 + $0x118] sm:$0xff] %vm425_vm3, %v420_v4  ;;  %v423_v10 = vadd.f32 %v3534_v7, %v243_v8 }
  0xaf   :  { %462 = vst.msk [vmem:[#allocation2 + $0x120] sm:$0xff] %vm425_vm3, %v421_v5  ;;  %463 = vst.msk [vmem:[#allocation2 + $0x128] sm:$0xff] %vm425_vm3, %v422_v6  ;;  %v424_v11 = vadd.f32 %v3534_v7, %v244_v9  ;;  %v482_v16 = vadd.f32 %v3536_v15, %v473_v13  ;;  %v483_v17 = vadd.f32 %v3536_v15, %v474_v14  ;;  %v4412_v13 = vld [vmem:[#allocation3 + $0x40] sm:$0xff]   ;;  %v4413_v14 = vld [vmem:[#allocation3 + $0x48] sm:$0xff]  }
  0xb0   :  { %464 = vst.msk [vmem:[#allocation2 + $0x130] sm:$0xff] %vm425_vm3, %v423_v10  ;;  %v4414_v15 = vld [vmem:[#allocation3 + $0x50] sm:$0xff]  }
  0xb1   :  { %465 = vst.msk [vmem:[#allocation2 + $0x138] sm:$0xff] %vm425_vm3, %v424_v11 }
  0xeb   :  { %v555_v18 = vpop.f32.mrb[0].mxu0 }
  0xec   :  { %v606_v19 = vpop.f32.mrb[0].mxu1  ;;  %v556_v20 = vadd.f32 %v555_v18, %v482_v16  ;;  %v3885_v22 = vpop.f32.mrb[1].mxu0  ;;  %v4415_v16 = vld [vmem:[#allocation3 + $0x58] sm:$0xff]  }
  0xed   :  { %v607_v21 = vadd.f32 %v606_v19, %v483_v17  ;;  %v3891_v24 = vpop.f32.mrb[1].mxu1  ;;  %v558_v25 = vpop.f32.mrb[2].mxu0  ;;  %v765_v17 = vld [vmem:[#allocation2 + $0x10] sm:$0xff] }
  0xee   :  { %v609_v26 = vpop.f32.mrb[2].mxu1  ;;  %v561_v27 = vsub.f32 0.0, %v556_v20  ;;  %v3886_v29 = vpop.f32.mrb[3].mxu0 }
  0xef   :  { %v612_v28 = vsub.f32 0.0, %v607_v21  ;;  %v3892_v30 = vpop.f32.mrb[3].mxu1 }
  0xf0   :  { %v562_v31 = vmul.f32 1.442695, %v561_v27 }
  0xf1   :  { %v613_v32 = vmul.f32 1.442695, %v612_v28 }
  0xf2   :  { %4488 = vpow2.f32 %v562_v31 }
  0xf3   :  { %4490 = vpow2.f32 %v613_v32 }
  0xfc   :  { %v4489_v33 = vpop.eup %4488 }
  0xfd   :  { %v4491_v34 = vpop.eup %4490  ;;  %v564_v35 = vadd.f32 1.0, %v4489_v33 }
  0xfe   :  { %v615_v36 = vadd.f32 1.0, %v4491_v34 }
  0xff   :  { %4492 = vrcp.f32 %v564_v35 }
 0x100   :  { %4494 = vrcp.f32 %v615_v36 }
 0x109   :  { %v4493_v37 = vpop.eup %4492 }
 0x10a   :  { %v4495_v38 = vpop.eup %4494  ;;  %v566_v40 = vmul.f32 %v4493_v37, %v556_v20  ;;  %v841_v20 = vld [vmem:[#allocation2 + $0x18] sm:$0xff] }
 0x10b   :  { %v617_v41 = vmul.f32 %v4495_v38, %v607_v21 }
 0x10c   :  { %v626_v42 = vpack.c.bf16 %v566_v40, %v566_v40 }
 0x10d   :  { %v702_v43 = vpack.c.bf16 %v617_v41, %v617_v41 }
 0x10e   :  { %3902 = vmatmul.mubr.msk.bf16.vlgmr.msra.gmra.mrb[4].mxu0 %vm425_vm3, %v626_v42 }
 0x10f   :  { %3914 = vmatmul.mubr.msk.bf16.vlgmr.msra.gmra.mrb[4].mxu1 %vm425_vm3, %v702_v43  ;;  %3925 = vmatprep.mubr.msk.bf16.mxu0 %vm4684_vm0, %v4683_v0 }
 0x110   :  { %3937 = vmatprep.mubr.msk.bf16.mxu1 %vm4684_vm0, %v4683_v0  ;;  %3918 = vmatpush3.bf16.msra.mxu0 %v4408_v44 }
 0x111   :  { %3930 = vmatpush3.bf16.msra.mxu1 %v4408_v44  ;;  %3919 = vmatprep.subr.bf16.mxu0 %v4683_v0 }
 0x112   :  { %3931 = vmatprep.subr.bf16.mxu1 %v4683_v0 }
 0x114   :  { %3920 = vmatpush3.bf16.msra.mxu0 %v4409_v45 }
 0x115   :  { %3932 = vmatpush3.bf16.msra.mxu1 %v4409_v45  ;;  %3921 = vmatprep.subr.bf16.mxu0 %v4683_v0 }
 0x116   :  { %3933 = vmatprep.subr.bf16.mxu1 %v4683_v0 }
 0x118   :  { %3922 = vmatpush3.bf16.msra.mxu0 %v4410_v46 }
 0x119   :  { %3934 = vmatpush3.bf16.msra.mxu1 %v4410_v46  ;;  %3923 = vmatprep.subr.bf16.mxu0 %v4683_v0 }
 0x11a   :  { %3935 = vmatprep.subr.bf16.mxu1 %v4683_v0 }
 0x11c   :  { %3924 = vmatpush3.bf16.msra.mxu0 %v4411_v47 }
 0x11d   :  { %3936 = vmatpush3.bf16.msra.mxu1 %v4411_v47  ;;  %3941 = vmatprep.subr.bf16.mxu0 %v4683_v0  ;;  %v4416_v47 = vld [vmem:[#allocation3 + $0x60] sm:$0xff]  }
 0x11e   :  { %3953 = vmatprep.subr.bf16.mxu1 %v4683_v0 }
 0x1e1   :  { %v689_v49 = vpop.f32.mrb[4].mxu0 }
 0x1e2   :  { %v690_v50 = vadd.f32 %v689_v49, %v627_v48  ;;  %v741_v52 = vpop.f32.mrb[4].mxu1  ;;  %v3903_v53 = vpop.f32.mrb[5].mxu0  ;;  %v4417_v48 = vld [vmem:[#allocation3 + $0x68] sm:$0xff]   ;;  %v4418_v49 = vld [vmem:[#allocation3 + $0x70] sm:$0xff]  }
 0x1e3   :  { %v742_v54 = vadd.f32 %v741_v52, %v703_v51  ;;  %v3915_v55 = vpop.f32.mrb[5].mxu1  ;;  %v692_v56 = vpop.f32.mrb[6].mxu0  ;;  %v903_v51 = vld [vmem:[#allocation2 + $0x20] sm:$0xff] }
 0x1e4   :  { %v695_v57 = vadd.f32 %v690_v50, %v566_v40  ;;  %v744_v58 = vpop.f32.mrb[6].mxu1  ;;  %v3904_v59 = vpop.f32.mrb[7].mxu0  ;;  %v4419_v50 = vld [vmem:[#allocation3 + $0x78] sm:$0xff]  }
 0x1e5   :  { %v747_v60 = vadd.f32 %v742_v54, %v617_v41  ;;  %v3916_v61 = vpop.f32.mrb[7].mxu1  ;;  %v979_v54 = vld [vmem:[#allocation2 + $0x28] sm:$0xff] }
 0x1e6   :  { %v696_v62 = vsub.f32 0.0, %v695_v57 }
 0x1e7   :  { %v748_v63 = vsub.f32 0.0, %v747_v60 }
 0x1e8   :  { %v697_v1 = vmul.f32 1.442695, %v696_v62 }
 0x1e9   :  { %v749_v2 = vmul.f32 1.442695, %v748_v63 }
 0x1ea   :  { %4496 = vpow2.f32 %v697_v1 }
 0x1eb   :  { %4498 = vpow2.f32 %v749_v2 }
 0x1f4   :  { %v4497_v3 = vpop.eup %4496 }
 0x1f5   :  { %v4499_v4 = vpop.eup %4498  ;;  %v699_v5 = vadd.f32 1.0, %v4497_v3 }
 0x1f6   :  { %v751_v6 = vadd.f32 1.0, %v4499_v4 }
 0x1f7   :  { %4500 = vrcp.f32 %v699_v5 }
 0x1f8   :  { %4502 = vrcp.f32 %v751_v6 }
 0x201   :  { %v4501_v7 = vpop.eup %4500 }
 0x202   :  { %v4503_v8 = vpop.eup %4502  ;;  %v701_v9 = vmul.f32 %v4501_v7, %v695_v57 }
 0x203   :  { %v753_v10 = vmul.f32 %v4503_v8, %v747_v60 }
 0x204   :  { %v763_v11 = vpack.c.bf16 %v701_v9, %v701_v9 }
 0x205   :  { %v840_v12 = vpack.c.bf16 %v753_v10, %v753_v10 }
 0x206   :  { %3926 = vmatmul.mubr.msk.bf16.vlgmr.msra.gmra.mrb[8].mxu0 %vm425_vm3, %v763_v11 }
 0x207   :  { %3938 = vmatmul.mubr.msk.bf16.vlgmr.msra.gmra.mrb[8].mxu1 %vm425_vm3, %v840_v12  ;;  %3949 = vmatprep.mubr.msk.bf16.mxu0 %vm4684_vm0, %v4683_v0 }
 0x208   :  { %3961 = vmatprep.mubr.msk.bf16.mxu1 %vm4684_vm0, %v4683_v0  ;;  %3942 = vmatpush3.bf16.msra.mxu0 %v4412_v13 }
 0x209   :  { %3954 = vmatpush3.bf16.msra.mxu1 %v4412_v13  ;;  %3943 = vmatprep.subr.bf16.mxu0 %v4683_v0 }
 0x20a   :  { %3955 = vmatprep.subr.bf16.mxu1 %v4683_v0 }
 0x20c   :  { %3944 = vmatpush3.bf16.msra.mxu0 %v4413_v14 }
 0x20d   :  { %3956 = vmatpush3.bf16.msra.mxu1 %v4413_v14  ;;  %3945 = vmatprep.subr.bf16.mxu0 %v4683_v0 }
 0x20e   :  { %3957 = vmatprep.subr.bf16.mxu1 %v4683_v0 }
 0x210   :  { %3946 = vmatpush3.bf16.msra.mxu0 %v4414_v15 }
 0x211   :  { %3958 = vmatpush3.bf16.msra.mxu1 %v4414_v15  ;;  %3947 = vmatprep.subr.bf16.mxu0 %v4683_v0 }
 0x212   :  { %3959 = vmatprep.subr.bf16.mxu1 %v4683_v0 }
 0x214   :  { %3948 = vmatpush3.bf16.msra.mxu0 %v4415_v16 }
 0x215   :  { %3960 = vmatpush3.bf16.msra.mxu1 %v4415_v16  ;;  %3965 = vmatprep.subr.bf16.mxu0 %v4683_v0  ;;  %v4420_v16 = vld [vmem:[#allocation3 + $0x80] sm:$0xff]  }
 0x216   :  { %3977 = vmatprep.subr.bf16.mxu1 %v4683_v0 }
 0x2d9   :  { %v827_v18 = vpop.f32.mrb[8].mxu0 }
 0x2da   :  { %v828_v19 = vadd.f32 %v827_v18, %v765_v17  ;;  %v879_v21 = vpop.f32.mrb[8].mxu1  ;;  %v3927_v22 = vpop.f32.mrb[9].mxu0  ;;  %v4421_v17 = vld [vmem:[#allocation3 + $0x88] sm:$0xff]   ;;  %v4422_v18 = vld [vmem:[#allocation3 + $0x90] sm:$0xff]  }
 0x2db   :  { %v880_v24 = vadd.f32 %v879_v21, %v841_v20  ;;  %v3939_v25 = vpop.f32.mrb[9].mxu1  ;;  %v830_v26 = vpop.f32.mrb[10].mxu0  ;;  %v1041_v20 = vld [vmem:[#allocation2 + $0x30] sm:$0xff] }
 0x2dc   :  { %v833_v27 = vadd.f32 %v828_v19, %v701_v9  ;;  %v882_v28 = vpop.f32.mrb[10].mxu1  ;;  %v3928_v29 = vpop.f32.mrb[11].mxu0  ;;  %v4423_v19 = vld [vmem:[#allocation3 + $0x98] sm:$0xff]  }
 0x2dd   :  { %v885_v30 = vadd.f32 %v880_v24, %v753_v10  ;;  %v3940_v31 = vpop.f32.mrb[11].mxu1  ;;  %v1117_v24 = vld [vmem:[#allocation2 + $0x38] sm:$0xff] }
 0x2de   :  { %v834_v32 = vsub.f32 0.0, %v833_v27 }
 0x2df   :  { %v886_v33 = vsub.f32 0.0, %v885_v30 }
 0x2e0   :  { %v835_v34 = vmul.f32 1.442695, %v834_v32 }
 0x2e1   :  { %v887_v35 = vmul.f32 1.442695, %v886_v33 }
 0x2e2   :  { %4504 = vpow2.f32 %v835_v34 }
 0x2e3   :  { %4506 = vpow2.f32 %v887_v35 }
 0x2ec   :  { %v4505_v36 = vpop.eup %4504 }
 0x2ed   :  { %v4507_v37 = vpop.eup %4506  ;;  %v837_v38 = vadd.f32 1.0, %v4505_v36 }
 0x2ee   :  { %v889_v40 = vadd.f32 1.0, %v4507_v37 }
 0x2ef   :  { %4508 = vrcp.f32 %v837_v38 }
 0x2f0   :  { %4510 = vrcp.f32 %v889_v40 }
 0x2f9   :  { %v4509_v41 = vpop.eup %4508 }
 0x2fa   :  { %v4511_v42 = vpop.eup %4510  ;;  %v839_v43 = vmul.f32 %v4509_v41, %v833_v27 }
 0x2fb   :  { %v891_v44 = vmul.f32 %v4511_v42, %v885_v30 }
 0x2fc   :  { %v901_v45 = vpack.c.bf16 %v839_v43, %v839_v43 }
 0x2fd   :  { %v978_v46 = vpack.c.bf16 %v891_v44, %v891_v44 }
 0x2fe   :  { %3950 = vmatmul.mubr.msk.bf16.vlgmr.msra.gmra.mrb[12].mxu0 %vm425_vm3, %v901_v45 }
 0x2ff   :  { %3962 = vmatmul.mubr.msk.bf16.vlgmr.msra.gmra.mrb[12].mxu1 %vm425_vm3, %v978_v46  ;;  %3973 = vmatprep.mubr.msk.bf16.mxu0 %vm4684_vm0, %v4683_v0 }
 0x300   :  { %3985 = vmatprep.mubr.msk.bf16.mxu1 %vm4684_vm0, %v4683_v0  ;;  %3966 = vmatpush3.bf16.msra.mxu0 %v4416_v47 }
 0x301   :  { %3978 = vmatpush3.bf16.msra.mxu1 %v4416_v47  ;;  %3967 = vmatprep.subr.bf16.mxu0 %v4683_v0 }
 0x302   :  { %3979 = vmatprep.subr.bf16.mxu1 %v4683_v0 }
 0x304   :  { %3968 = vmatpush3.bf16.msra.mxu0 %v4417_v48 }
 0x305   :  { %3980 = vmatpush3.bf16.msra.mxu1 %v4417_v48  ;;  %3969 = vmatprep.subr.bf16.mxu0 %v4683_v0 }
 0x306   :  { %3981 = vmatprep.subr.bf16.mxu1 %v4683_v0 }
 0x308   :  { %3970 = vmatpush3.bf16.msra.mxu0 %v4418_v49 }
 0x309   :  { %3982 = vmatpush3.bf16.msra.mxu1 %v4418_v49  ;;  %3971 = vmatprep.subr.bf16.mxu0 %v4683_v0 }
 0x30a   :  { %3983 = vmatprep.subr.bf16.mxu1 %v4683_v0 }
 0x30c   :  { %3972 = vmatpush3.bf16.msra.mxu0 %v4419_v50 }
 0x30d   :  { %3984 = vmatpush3.bf16.msra.mxu1 %v4419_v50  ;;  %3989 = vmatprep.subr.bf16.mxu0 %v4683_v0  ;;  %v4424_v50 = vld [vmem:[#allocation3 + $0xa0] sm:$0xff]  }
 0x30e   :  { %4001 = vmatprep.subr.bf16.mxu1 %v4683_v0 }
 0x3d1   :  { %v965_v52 = vpop.f32.mrb[12].mxu0 }
 0x3d2   :  { %v966_v53 = vadd.f32 %v965_v52, %v903_v51  ;;  %v1017_v55 = vpop.f32.mrb[12].mxu1  ;;  %v3951_v56 = vpop.f32.mrb[13].mxu0  ;;  %v4425_v51 = vld [vmem:[#allocation3 + $0xa8] sm:$0xff]   ;;  %v4426_v52 = vld [vmem:[#allocation3 + $0xb0] sm:$0xff]  }
 0x3d3   :  { %v1018_v57 = vadd.f32 %v1017_v55, %v979_v54  ;;  %v3963_v58 = vpop.f32.mrb[13].mxu1  ;;  %v968_v59 = vpop.f32.mrb[14].mxu0  ;;  %v1179_v54 = vld [vmem:[#allocation2 + $0x40] sm:$0xff] }
 0x3d4   :  { %v971_v60 = vadd.f32 %v966_v53, %v839_v43  ;;  %v1020_v61 = vpop.f32.mrb[14].mxu1  ;;  %v3952_v62 = vpop.f32.mrb[15].mxu0  ;;  %v4427_v53 = vld [vmem:[#allocation3 + $0xb8] sm:$0xff]  }
 0x3d5   :  { %v1023_v63 = vadd.f32 %v1018_v57, %v891_v44  ;;  %v3964_v1 = vpop.f32.mrb[15].mxu1  ;;  %v1255_v57 = vld [vmem:[#allocation2 + $0x48] sm:$0xff] }
 0x3d6   :  { %v972_v2 = vsub.f32 0.0, %v971_v60 }
 0x3d7   :  { %v1024_v3 = vsub.f32 0.0, %v1023_v63 }
 0x3d8   :  { %v973_v4 = vmul.f32 1.442695, %v972_v2 }
 0x3d9   :  { %v1025_v5 = vmul.f32 1.442695, %v1024_v3 }
 0x3da   :  { %4512 = vpow2.f32 %v973_v4 }
 0x3db   :  { %4514 = vpow2.f32 %v1025_v5 }
 0x3e4   :  { %v4513_v6 = vpop.eup %4512 }
 0x3e5   :  { %v4515_v7 = vpop.eup %4514  ;;  %v975_v8 = vadd.f32 1.0, %v4513_v6 }
 0x3e6   :  { %v1027_v9 = vadd.f32 1.0, %v4515_v7 }
 0x3e7   :  { %4516 = vrcp.f32 %v975_v8 }
 0x3e8   :  { %4518 = vrcp.f32 %v1027_v9 }
 0x3f1   :  { %v4517_v10 = vpop.eup %4516 }
 0x3f2   :  { %v4519_v11 = vpop.eup %4518  ;;  %v977_v12 = vmul.f32 %v4517_v10, %v971_v60 }
 0x3f3   :  { %v1029_v13 = vmul.f32 %v4519_v11, %v1023_v63 }
 0x3f4   :  { %v1039_v14 = vpack.c.bf16 %v977_v12, %v977_v12 }
 0x3f5   :  { %v1116_v15 = vpack.c.bf16 %v1029_v13, %v1029_v13 }
 0x3f6   :  { %3974 = vmatmul.mubr.msk.bf16.vlgmr.msra.gmra.mrb[16].mxu0 %vm425_vm3, %v1039_v14 }
 0x3f7   :  { %3986 = vmatmul.mubr.msk.bf16.vlgmr.msra.gmra.mrb[16].mxu1 %vm425_vm3, %v1116_v15  ;;  %3997 = vmatprep.mubr.msk.bf16.mxu0 %vm4684_vm0, %v4683_v0 }
 0x3f8   :  { %4009 = vmatprep.mubr.msk.bf16.mxu1 %vm4684_vm0, %v4683_v0  ;;  %3990 = vmatpush3.bf16.msra.mxu0 %v4420_v16 }
 0x3f9   :  { %4002 = vmatpush3.bf16.msra.mxu1 %v4420_v16  ;;  %3991 = vmatprep.subr.bf16.mxu0 %v4683_v0 }
 0x3fa   :  { %4003 = vmatprep.subr.bf16.mxu1 %v4683_v0 }
 0x3fc   :  { %3992 = vmatpush3.bf16.msra.mxu0 %v4421_v17 }
 0x3fd   :  { %4004 = vmatpush3.bf16.msra.mxu1 %v4421_v17  ;;  %3993 = vmatprep.subr.bf16.mxu0 %v4683_v0 }
 0x3fe   :  { %4005 = vmatprep.subr.bf16.mxu1 %v4683_v0 }
 0x400   :  { %3994 = vmatpush3.bf16.msra.mxu0 %v4422_v18 }
 0x401   :  { %4006 = vmatpush3.bf16.msra.mxu1 %v4422_v18  ;;  %3995 = vmatprep.subr.bf16.mxu0 %v4683_v0 }
 0x402   :  { %4007 = vmatprep.subr.bf16.mxu1 %v4683_v0 }
 0x404   :  { %3996 = vmatpush3.bf16.msra.mxu0 %v4423_v19 }
 0x405   :  { %4008 = vmatpush3.bf16.msra.mxu1 %v4423_v19  ;;  %4013 = vmatprep.subr.bf16.mxu0 %v4683_v0  ;;  %v4428_v19 = vld [vmem:[#allocation3 + $0xc0] sm:$0xff]  }
 0x406   :  { %4025 = vmatprep.subr.bf16.mxu1 %v4683_v0 }
 0x4c9   :  { %v1103_v21 = vpop.f32.mrb[16].mxu0 }
 0x4ca   :  { %v1104_v22 = vadd.f32 %v1103_v21, %v1041_v20  ;;  %v1155_v25 = vpop.f32.mrb[16].mxu1  ;;  %v3975_v26 = vpop.f32.mrb[17].mxu0  ;;  %v4429_v20 = vld [vmem:[#allocation3 + $0xc8] sm:$0xff]   ;;  %v4430_v21 = vld [vmem:[#allocation3 + $0xd0] sm:$0xff]  }
 0x4cb   :  { %v1156_v27 = vadd.f32 %v1155_v25, %v1117_v24  ;;  %v3987_v28 = vpop.f32.mrb[17].mxu1  ;;  %v1106_v29 = vpop.f32.mrb[18].mxu0  ;;  %v1317_v24 = vld [vmem:[#allocation2 + $0x50] sm:$0xff] }
 0x4cc   :  { %v1109_v30 = vadd.f32 %v1104_v22, %v977_v12  ;;  %v1158_v31 = vpop.f32.mrb[18].mxu1  ;;  %v3976_v32 = vpop.f32.mrb[19].mxu0  ;;  %v4431_v22 = vld [vmem:[#allocation3 + $0xd8] sm:$0xff]  }
 0x4cd   :  { %v1161_v33 = vadd.f32 %v1156_v27, %v1029_v13  ;;  %v3988_v34 = vpop.f32.mrb[19].mxu1  ;;  %v1393_v27 = vld [vmem:[#allocation2 + $0x58] sm:$0xff] }
 0x4ce   :  { %v1110_v35 = vsub.f32 0.0, %v1109_v30 }
 0x4cf   :  { %v1162_v36 = vsub.f32 0.0, %v1161_v33 }
 0x4d0   :  { %v1111_v37 = vmul.f32 1.442695, %v1110_v35 }
 0x4d1   :  { %v1163_v38 = vmul.f32 1.442695, %v1162_v36 }
 0x4d2   :  { %4520 = vpow2.f32 %v1111_v37 }
 0x4d3   :  { %4522 = vpow2.f32 %v1163_v38 }
 0x4dc   :  { %v4521_v40 = vpop.eup %4520 }
 0x4dd   :  { %v4523_v41 = vpop.eup %4522  ;;  %v1113_v42 = vadd.f32 1.0, %v4521_v40 }
 0x4de   :  { %v1165_v43 = vadd.f32 1.0, %v4523_v41 }
 0x4df   :  { %4524 = vrcp.f32 %v1113_v42 }
 0x4e0   :  { %4526 = vrcp.f32 %v1165_v43 }
 0x4e9   :  { %v4525_v44 = vpop.eup %4524 }
 0x4ea   :  { %v4527_v45 = vpop.eup %4526  ;;  %v1115_v46 = vmul.f32 %v4525_v44, %v1109_v30 }
 0x4eb   :  { %v1167_v47 = vmul.f32 %v4527_v45, %v1161_v33 }
 0x4ec   :  { %v1177_v48 = vpack.c.bf16 %v1115_v46, %v1115_v46 }
 0x4ed   :  { %v1254_v49 = vpack.c.bf16 %v1167_v47, %v1167_v47 }
 0x4ee   :  { %3998 = vmatmul.mubr.msk.bf16.vlgmr.msra.gmra.mrb[20].mxu0 %vm425_vm3, %v1177_v48 }
 0x4ef   :  { %4010 = vmatmul.mubr.msk.bf16.vlgmr.msra.gmra.mrb[20].mxu1 %vm425_vm3, %v1254_v49  ;;  %4021 = vmatprep.mubr.msk.bf16.mxu0 %vm4684_vm0, %v4683_v0 }
 0x4f0   :  { %4033 = vmatprep.mubr.msk.bf16.mxu1 %vm4684_vm0, %v4683_v0  ;;  %4014 = vmatpush3.bf16.msra.mxu0 %v4424_v50 }
 0x4f1   :  { %4026 = vmatpush3.bf16.msra.mxu1 %v4424_v50  ;;  %4015 = vmatprep.subr.bf16.mxu0 %v4683_v0 }
 0x4f2   :  { %4027 = vmatprep.subr.bf16.mxu1 %v4683_v0 }
 0x4f4   :  { %4016 = vmatpush3.bf16.msra.mxu0 %v4425_v51 }
 0x4f5   :  { %4028 = vmatpush3.bf16.msra.mxu1 %v4425_v51  ;;  %4017 = vmatprep.subr.bf16.mxu0 %v4683_v0 }
 0x4f6   :  { %4029 = vmatprep.subr.bf16.mxu1 %v4683_v0 }
 0x4f8   :  { %4018 = vmatpush3.bf16.msra.mxu0 %v4426_v52 }
 0x4f9   :  { %4030 = vmatpush3.bf16.msra.mxu1 %v4426_v52  ;;  %4019 = vmatprep.subr.bf16.mxu0 %v4683_v0 }
 0x4fa   :  { %4031 = vmatprep.subr.bf16.mxu1 %v4683_v0 }
 0x4fc   :  { %4020 = vmatpush3.bf16.msra.mxu0 %v4427_v53 }
 0x4fd   :  { %4032 = vmatpush3.bf16.msra.mxu1 %v4427_v53  ;;  %4037 = vmatprep.subr.bf16.mxu0 %v4683_v0  ;;  %v4432_v53 = vld [vmem:[#allocation3 + $0xe0] sm:$0xff]  }
 0x4fe   :  { %4049 = vmatprep.subr.bf16.mxu1 %v4683_v0 }
 0x5c1   :  { %v1241_v55 = vpop.f32.mrb[20].mxu0 }
 0x5c2   :  { %v1242_v56 = vadd.f32 %v1241_v55, %v1179_v54  ;;  %v1293_v58 = vpop.f32.mrb[20].mxu1  ;;  %v3999_v59 = vpop.f32.mrb[21].mxu0  ;;  %v4433_v54 = vld [vmem:[#allocation3 + $0xe8] sm:$0xff]   ;;  %v4434_v55 = vld [vmem:[#allocation3 + $0xf0] sm:$0xff]  }
 0x5c3   :  { %v1294_v60 = vadd.f32 %v1293_v58, %v1255_v57  ;;  %v4011_v61 = vpop.f32.mrb[21].mxu1  ;;  %v1244_v62 = vpop.f32.mrb[22].mxu0  ;;  %v1455_v57 = vld [vmem:[#allocation2 + $0x60] sm:$0xff] }
 0x5c4   :  { %v1247_v63 = vadd.f32 %v1242_v56, %v1115_v46  ;;  %v1296_v1 = vpop.f32.mrb[22].mxu1  ;;  %v4000_v2 = vpop.f32.mrb[23].mxu0  ;;  %v4435_v56 = vld [vmem:[#allocation3 + $0xf8] sm:$0xff]  }
 0x5c5   :  { %v1299_v3 = vadd.f32 %v1294_v60, %v1167_v47  ;;  %v4012_v4 = vpop.f32.mrb[23].mxu1  ;;  %v1531_v60 = vld [vmem:[#allocation2 + $0x68] sm:$0xff] }
 0x5c6   :  { %v1248_v5 = vsub.f32 0.0, %v1247_v63 }
 0x5c7   :  { %v1300_v6 = vsub.f32 0.0, %v1299_v3 }
 0x5c8   :  { %v1249_v7 = vmul.f32 1.442695, %v1248_v5 }
 0x5c9   :  { %v1301_v8 = vmul.f32 1.442695, %v1300_v6 }
 0x5ca   :  { %4528 = vpow2.f32 %v1249_v7 }
 0x5cb   :  { %4530 = vpow2.f32 %v1301_v8 }
 0x5d4   :  { %v4529_v9 = vpop.eup %4528 }
 0x5d5   :  { %v4531_v10 = vpop.eup %4530  ;;  %v1251_v11 = vadd.f32 1.0, %v4529_v9 }
 0x5d6   :  { %v1303_v12 = vadd.f32 1.0, %v4531_v10 }
 0x5d7   :  { %4532 = vrcp.f32 %v1251_v11 }
 0x5d8   :  { %4534 = vrcp.f32 %v1303_v12 }
 0x5e1   :  { %v4533_v13 = vpop.eup %4532 }
 0x5e2   :  { %v4535_v14 = vpop.eup %4534  ;;  %v1253_v15 = vmul.f32 %v4533_v13, %v1247_v63 }
 0x5e3   :  { %v1305_v16 = vmul.f32 %v4535_v14, %v1299_v3 }
 0x5e4   :  { %v1315_v17 = vpack.c.bf16 %v1253_v15, %v1253_v15 }
 0x5e5   :  { %v1392_v18 = vpack.c.bf16 %v1305_v16, %v1305_v16 }
 0x5e6   :  { %4022 = vmatmul.mubr.msk.bf16.vlgmr.msra.gmra.mrb[24].mxu0 %vm425_vm3, %v1315_v17 }
 0x5e7   :  { %4034 = vmatmul.mubr.msk.bf16.vlgmr.msra.gmra.mrb[24].mxu1 %vm425_vm3, %v1392_v18  ;;  %4045 = vmatprep.mubr.msk.bf16.mxu0 %vm4684_vm0, %v4683_v0 }
 0x5e8   :  { %4057 = vmatprep.mubr.msk.bf16.mxu1 %vm4684_vm0, %v4683_v0  ;;  %4038 = vmatpush3.bf16.msra.mxu0 %v4428_v19 }
 0x5e9   :  { %4050 = vmatpush3.bf16.msra.mxu1 %v4428_v19  ;;  %4039 = vmatprep.subr.bf16.mxu0 %v4683_v0 }
 0x5ea   :  { %4051 = vmatprep.subr.bf16.mxu1 %v4683_v0 }
 0x5ec   :  { %4040 = vmatpush3.bf16.msra.mxu0 %v4429_v20 }
 0x5ed   :  { %4052 = vmatpush3.bf16.msra.mxu1 %v4429_v20  ;;  %4041 = vmatprep.subr.bf16.mxu0 %v4683_v0 }
 0x5ee   :  { %4053 = vmatprep.subr.bf16.mxu1 %v4683_v0 }
 0x5f0   :  { %4042 = vmatpush3.bf16.msra.mxu0 %v4430_v21 }
 0x5f1   :  { %4054 = vmatpush3.bf16.msra.mxu1 %v4430_v21  ;;  %4043 = vmatprep.subr.bf16.mxu0 %v4683_v0 }
 0x5f2   :  { %4055 = vmatprep.subr.bf16.mxu1 %v4683_v0 }
 0x5f4   :  { %4044 = vmatpush3.bf16.msra.mxu0 %v4431_v22 }
 0x5f5   :  { %4056 = vmatpush3.bf16.msra.mxu1 %v4431_v22  ;;  %4061 = vmatprep.subr.bf16.mxu0 %v4683_v0  ;;  %v4436_v22 = vld [vmem:[#allocation3 + $0x100] sm:$0xff]  }
 0x5f6   :  { %4073 = vmatprep.subr.bf16.mxu1 %v4683_v0 }
 0x6b9   :  { %v1379_v25 = vpop.f32.mrb[24].mxu0 }
 0x6ba   :  { %v1380_v26 = vadd.f32 %v1379_v25, %v1317_v24  ;;  %v1431_v28 = vpop.f32.mrb[24].mxu1  ;;  %v4023_v29 = vpop.f32.mrb[25].mxu0  ;;  %v4437_v24 = vld [vmem:[#allocation3 + $0x108] sm:$0xff]   ;;  %v4438_v25 = vld [vmem:[#allocation3 + $0x110] sm:$0xff]  }
 0x6bb   :  { %v1432_v30 = vadd.f32 %v1431_v28, %v1393_v27  ;;  %v4035_v31 = vpop.f32.mrb[25].mxu1  ;;  %v1382_v32 = vpop.f32.mrb[26].mxu0  ;;  %v1593_v27 = vld [vmem:[#allocation2 + $0x70] sm:$0xff] }
 0x6bc   :  { %v1385_v33 = vadd.f32 %v1380_v26, %v1253_v15  ;;  %v1434_v34 = vpop.f32.mrb[26].mxu1  ;;  %v4024_v35 = vpop.f32.mrb[27].mxu0  ;;  %v4439_v26 = vld [vmem:[#allocation3 + $0x118] sm:$0xff]  }
 0x6bd   :  { %v1437_v36 = vadd.f32 %v1432_v30, %v1305_v16  ;;  %v4036_v37 = vpop.f32.mrb[27].mxu1  ;;  %v1669_v30 = vld [vmem:[#allocation2 + $0x78] sm:$0xff] }
 0x6be   :  { %v1386_v38 = vsub.f32 0.0, %v1385_v33 }
 0x6bf   :  { %v1438_v40 = vsub.f32 0.0, %v1437_v36 }
 0x6c0   :  { %v1387_v41 = vmul.f32 1.442695, %v1386_v38 }
 0x6c1   :  { %v1439_v42 = vmul.f32 1.442695, %v1438_v40 }
 0x6c2   :  { %4536 = vpow2.f32 %v1387_v41 }
 0x6c3   :  { %4538 = vpow2.f32 %v1439_v42 }
 0x6cc   :  { %v4537_v43 = vpop.eup %4536 }
 0x6cd   :  { %v4539_v44 = vpop.eup %4538  ;;  %v1389_v45 = vadd.f32 1.0, %v4537_v43 }
 0x6ce   :  { %v1441_v46 = vadd.f32 1.0, %v4539_v44 }
 0x6cf   :  { %4540 = vrcp.f32 %v1389_v45 }
 0x6d0   :  { %4542 = vrcp.f32 %v1441_v46 }
 0x6d9   :  { %v4541_v47 = vpop.eup %4540 }
 0x6da   :  { %v4543_v48 = vpop.eup %4542  ;;  %v1391_v49 = vmul.f32 %v4541_v47, %v1385_v33 }
 0x6db   :  { %v1443_v50 = vmul.f32 %v4543_v48, %v1437_v36 }
 0x6dc   :  { %v1453_v51 = vpack.c.bf16 %v1391_v49, %v1391_v49 }
 0x6dd   :  { %v1530_v52 = vpack.c.bf16 %v1443_v50, %v1443_v50 }
 0x6de   :  { %4046 = vmatmul.mubr.msk.bf16.vlgmr.msra.gmra.mrb[28].mxu0 %vm425_vm3, %v1453_v51 }
 0x6df   :  { %4058 = vmatmul.mubr.msk.bf16.vlgmr.msra.gmra.mrb[28].mxu1 %vm425_vm3, %v1530_v52  ;;  %4069 = vmatprep.mubr.msk.bf16.mxu0 %vm4684_vm0, %v4683_v0 }
 0x6e0   :  { %4081 = vmatprep.mubr.msk.bf16.mxu1 %vm4684_vm0, %v4683_v0  ;;  %4062 = vmatpush3.bf16.msra.mxu0 %v4432_v53 }
 0x6e1   :  { %4074 = vmatpush3.bf16.msra.mxu1 %v4432_v53  ;;  %4063 = vmatprep.subr.bf16.mxu0 %v4683_v0 }
 0x6e2   :  { %4075 = vmatprep.subr.bf16.mxu1 %v4683_v0 }
 0x6e4   :  { %4064 = vmatpush3.bf16.msra.mxu0 %v4433_v54 }
 0x6e5   :  { %4076 = vmatpush3.bf16.msra.mxu1 %v4433_v54  ;;  %4065 = vmatprep.subr.bf16.mxu0 %v4683_v0 }
 0x6e6   :  { %4077 = vmatprep.subr.bf16.mxu1 %v4683_v0 }
 0x6e8   :  { %4066 = vmatpush3.bf16.msra.mxu0 %v4434_v55 }
 0x6e9   :  { %4078 = vmatpush3.bf16.msra.mxu1 %v4434_v55  ;;  %4067 = vmatprep.subr.bf16.mxu0 %v4683_v0 }
 0x6ea   :  { %4079 = vmatprep.subr.bf16.mxu1 %v4683_v0 }
 0x6ec   :  { %4068 = vmatpush3.bf16.msra.mxu0 %v4435_v56 }
 0x6ed   :  { %4080 = vmatpush3.bf16.msra.mxu1 %v4435_v56  ;;  %4085 = vmatprep.subr.bf16.mxu0 %v4683_v0  ;;  %v4440_v56 = vld [vmem:[#allocation3 + $0x120] sm:$0xff]  }
 0x6ee   :  { %4097 = vmatprep.subr.bf16.mxu1 %v4683_v0 }
 0x7b1   :  { %v1517_v58 = vpop.f32.mrb[28].mxu0 }
 0x7b2   :  { %v1518_v59 = vadd.f32 %v1517_v58, %v1455_v57  ;;  %v1569_v61 = vpop.f32.mrb[28].mxu1  ;;  %v4047_v62 = vpop.f32.mrb[29].mxu0  ;;  %v4441_v57 = vld [vmem:[#allocation3 + $0x128] sm:$0xff]   ;;  %v4442_v58 = vld [vmem:[#allocation3 + $0x130] sm:$0xff]  }
 0x7b3   :  { %v1570_v63 = vadd.f32 %v1569_v61, %v1531_v60  ;;  %v4059_v1 = vpop.f32.mrb[29].mxu1  ;;  %v1520_v2 = vpop.f32.mrb[30].mxu0  ;;  %v1731_v60 = vld [vmem:[#allocation2 + $0x80] sm:$0xff] }
 0x7b4   :  { %v1523_v3 = vadd.f32 %v1518_v59, %v1391_v49  ;;  %v1572_v4 = vpop.f32.mrb[30].mxu1  ;;  %v4048_v5 = vpop.f32.mrb[31].mxu0  ;;  %v4443_v59 = vld [vmem:[#allocation3 + $0x138] sm:$0xff]  }
 0x7b5   :  { %v1575_v6 = vadd.f32 %v1570_v63, %v1443_v50  ;;  %v4060_v7 = vpop.f32.mrb[31].mxu1  ;;  %v1807_v63 = vld [vmem:[#allocation2 + $0x88] sm:$0xff] }
 0x7b6   :  { %v1524_v8 = vsub.f32 0.0, %v1523_v3 }
 0x7b7   :  { %v1576_v9 = vsub.f32 0.0, %v1575_v6 }
 0x7b8   :  { %v1525_v10 = vmul.f32 1.442695, %v1524_v8 }
 0x7b9   :  { %v1577_v11 = vmul.f32 1.442695, %v1576_v9 }
 0x7ba   :  { %4544 = vpow2.f32 %v1525_v10 }
 0x7bb   :  { %4546 = vpow2.f32 %v1577_v11 }
 0x7c4   :  { %v4545_v12 = vpop.eup %4544 }
 0x7c5   :  { %v4547_v13 = vpop.eup %4546  ;;  %v1527_v14 = vadd.f32 1.0, %v4545_v12 }
 0x7c6   :  { %v1579_v15 = vadd.f32 1.0, %v4547_v13 }
 0x7c7   :  { %4548 = vrcp.f32 %v1527_v14 }
 0x7c8   :  { %4550 = vrcp.f32 %v1579_v15 }
 0x7d1   :  { %v4549_v16 = vpop.eup %4548 }
 0x7d2   :  { %v4551_v17 = vpop.eup %4550  ;;  %v1529_v18 = vmul.f32 %v4549_v16, %v1523_v3 }
 0x7d3   :  { %v1581_v19 = vmul.f32 %v4551_v17, %v1575_v6 }
 0x7d4   :  { %v1591_v20 = vpack.c.bf16 %v1529_v18, %v1529_v18 }
 0x7d5   :  { %v1668_v21 = vpack.c.bf16 %v1581_v19, %v1581_v19 }
 0x7d6   :  { %4070 = vmatmul.mubr.msk.bf16.vlgmr.msra.gmra.mrb[32].mxu0 %vm425_vm3, %v1591_v20 }
 0x7d7   :  { %4082 = vmatmul.mubr.msk.bf16.vlgmr.msra.gmra.mrb[32].mxu1 %vm425_vm3, %v1668_v21  ;;  %4093 = vmatprep.mubr.msk.bf16.mxu0 %vm4684_vm0, %v4683_v0 }
 0x7d8   :  { %4105 = vmatprep.mubr.msk.bf16.mxu1 %vm4684_vm0, %v4683_v0  ;;  %4086 = vmatpush3.bf16.msra.mxu0 %v4436_v22 }
 0x7d9   :  { %4098 = vmatpush3.bf16.msra.mxu1 %v4436_v22  ;;  %4087 = vmatprep.subr.bf16.mxu0 %v4683_v0 }
 0x7da   :  { %4099 = vmatprep.subr.bf16.mxu1 %v4683_v0 }
 0x7dc   :  { %4088 = vmatpush3.bf16.msra.mxu0 %v4437_v24 }
 0x7dd   :  { %4100 = vmatpush3.bf16.msra.mxu1 %v4437_v24  ;;  %4089 = vmatprep.subr.bf16.mxu0 %v4683_v0 }
 0x7de   :  { %4101 = vmatprep.subr.bf16.mxu1 %v4683_v0 }
 0x7e0   :  { %4090 = vmatpush3.bf16.msra.mxu0 %v4438_v25 }
 0x7e1   :  { %4102 = vmatpush3.bf16.msra.mxu1 %v4438_v25  ;;  %4091 = vmatprep.subr.bf16.mxu0 %v4683_v0 }
 0x7e2   :  { %4103 = vmatprep.subr.bf16.mxu1 %v4683_v0 }
 0x7e4   :  { %4092 = vmatpush3.bf16.msra.mxu0 %v4439_v26 }
 0x7e5   :  { %4104 = vmatpush3.bf16.msra.mxu1 %v4439_v26  ;;  %4109 = vmatprep.subr.bf16.mxu0 %v4683_v0  ;;  %v4444_v26 = vld [vmem:[#allocation3 + $0x140] sm:$0xff]  }
 0x7e6   :  { %4121 = vmatprep.subr.bf16.mxu1 %v4683_v0 }
 0x8a9   :  { %v1655_v28 = vpop.f32.mrb[32].mxu0 }
 0x8aa   :  { %v1656_v29 = vadd.f32 %v1655_v28, %v1593_v27  ;;  %v1707_v31 = vpop.f32.mrb[32].mxu1  ;;  %v4071_v32 = vpop.f32.mrb[33].mxu0  ;;  %v4445_v27 = vld [vmem:[#allocation3 + $0x148] sm:$0xff]   ;;  %v4446_v28 = vld [vmem:[#allocation3 + $0x150] sm:$0xff]  }
 0x8ab   :  { %v1708_v33 = vadd.f32 %v1707_v31, %v1669_v30  ;;  %v4083_v34 = vpop.f32.mrb[33].mxu1  ;;  %v1658_v35 = vpop.f32.mrb[34].mxu0  ;;  %v1869_v30 = vld [vmem:[#allocation2 + $0x90] sm:$0xff] }
 0x8ac   :  { %v1661_v36 = vadd.f32 %v1656_v29, %v1529_v18  ;;  %v1710_v37 = vpop.f32.mrb[34].mxu1  ;;  %v4072_v38 = vpop.f32.mrb[35].mxu0  ;;  %v4447_v29 = vld [vmem:[#allocation3 + $0x158] sm:$0xff]  }
 0x8ad   :  { %v1713_v40 = vadd.f32 %v1708_v33, %v1581_v19  ;;  %v4084_v41 = vpop.f32.mrb[35].mxu1  ;;  %v1945_v33 = vld [vmem:[#allocation2 + $0x98] sm:$0xff] }
 0x8ae   :  { %v1662_v42 = vsub.f32 0.0, %v1661_v36 }
 0x8af   :  { %v1714_v43 = vsub.f32 0.0, %v1713_v40 }
 0x8b0   :  { %v1663_v44 = vmul.f32 1.442695, %v1662_v42 }
 0x8b1   :  { %v1715_v45 = vmul.f32 1.442695, %v1714_v43 }
 0x8b2   :  { %4552 = vpow2.f32 %v1663_v44 }
 0x8b3   :  { %4554 = vpow2.f32 %v1715_v45 }
 0x8bc   :  { %v4553_v46 = vpop.eup %4552 }
 0x8bd   :  { %v4555_v47 = vpop.eup %4554  ;;  %v1665_v48 = vadd.f32 1.0, %v4553_v46 }
 0x8be   :  { %v1717_v49 = vadd.f32 1.0, %v4555_v47 }
 0x8bf   :  { %4556 = vrcp.f32 %v1665_v48 }
 0x8c0   :  { %4558 = vrcp.f32 %v1717_v49 }
 0x8c9   :  { %v4557_v50 = vpop.eup %4556 }
 0x8ca   :  { %v4559_v51 = vpop.eup %4558  ;;  %v1667_v52 = vmul.f32 %v4557_v50, %v1661_v36 }
 0x8cb   :  { %v1719_v53 = vmul.f32 %v4559_v51, %v1713_v40 }
 0x8cc   :  { %v1729_v54 = vpack.c.bf16 %v1667_v52, %v1667_v52 }
 0x8cd   :  { %v1806_v55 = vpack.c.bf16 %v1719_v53, %v1719_v53 }
 0x8ce   :  { %4094 = vmatmul.mubr.msk.bf16.vlgmr.msra.gmra.mrb[36].mxu0 %vm425_vm3, %v1729_v54 }
 0x8cf   :  { %4106 = vmatmul.mubr.msk.bf16.vlgmr.msra.gmra.mrb[36].mxu1 %vm425_vm3, %v1806_v55  ;;  %4117 = vmatprep.mubr.msk.bf16.mxu0 %vm4684_vm0, %v4683_v0 }
 0x8d0   :  { %4129 = vmatprep.mubr.msk.bf16.mxu1 %vm4684_vm0, %v4683_v0  ;;  %4110 = vmatpush3.bf16.msra.mxu0 %v4440_v56 }
 0x8d1   :  { %4122 = vmatpush3.bf16.msra.mxu1 %v4440_v56  ;;  %4111 = vmatprep.subr.bf16.mxu0 %v4683_v0 }
 0x8d2   :  { %4123 = vmatprep.subr.bf16.mxu1 %v4683_v0 }
 0x8d4   :  { %4112 = vmatpush3.bf16.msra.mxu0 %v4441_v57 }
 0x8d5   :  { %4124 = vmatpush3.bf16.msra.mxu1 %v4441_v57  ;;  %4113 = vmatprep.subr.bf16.mxu0 %v4683_v0 }
 0x8d6   :  { %4125 = vmatprep.subr.bf16.mxu1 %v4683_v0 }
 0x8d8   :  { %4114 = vmatpush3.bf16.msra.mxu0 %v4442_v58 }
 0x8d9   :  { %4126 = vmatpush3.bf16.msra.mxu1 %v4442_v58  ;;  %4115 = vmatprep.subr.bf16.mxu0 %v4683_v0 }
 0x8da   :  { %4127 = vmatprep.subr.bf16.mxu1 %v4683_v0 }
 0x8dc   :  { %4116 = vmatpush3.bf16.msra.mxu0 %v4443_v59 }
 0x8dd   :  { %4128 = vmatpush3.bf16.msra.mxu1 %v4443_v59  ;;  %4133 = vmatprep.subr.bf16.mxu0 %v4683_v0  ;;  %v4448_v59 = vld [vmem:[#allocation3 + $0x160] sm:$0xff]  }
 0x8de   :  { %4145 = vmatprep.subr.bf16.mxu1 %v4683_v0 }
 0x9a1   :  { %v1793_v61 = vpop.f32.mrb[36].mxu0 }
 0x9a2   :  { %v1794_v62 = vadd.f32 %v1793_v61, %v1731_v60  ;;  %v1845_v1 = vpop.f32.mrb[36].mxu1  ;;  %v4095_v2 = vpop.f32.mrb[37].mxu0  ;;  %v4449_v60 = vld [vmem:[#allocation3 + $0x168] sm:$0xff]   ;;  %v4450_v61 = vld [vmem:[#allocation3 + $0x170] sm:$0xff]  }
 0x9a3   :  { %v1846_v3 = vadd.f32 %v1845_v1, %v1807_v63  ;;  %v4107_v4 = vpop.f32.mrb[37].mxu1  ;;  %v1796_v5 = vpop.f32.mrb[38].mxu0  ;;  %v2007_v63 = vld [vmem:[#allocation2 + $0xa0] sm:$0xff] }
 0x9a4   :  { %v1799_v6 = vadd.f32 %v1794_v62, %v1667_v52  ;;  %v1848_v7 = vpop.f32.mrb[38].mxu1  ;;  %v4096_v8 = vpop.f32.mrb[39].mxu0  ;;  %v4451_v62 = vld [vmem:[#allocation3 + $0x178] sm:$0xff]  }
 0x9a5   :  { %v1851_v9 = vadd.f32 %v1846_v3, %v1719_v53  ;;  %v4108_v10 = vpop.f32.mrb[39].mxu1  ;;  %v2083_v3 = vld [vmem:[#allocation2 + $0xa8] sm:$0xff] }
 0x9a6   :  { %v1800_v11 = vsub.f32 0.0, %v1799_v6 }
 0x9a7   :  { %v1852_v12 = vsub.f32 0.0, %v1851_v9 }
 0x9a8   :  { %v1801_v13 = vmul.f32 1.442695, %v1800_v11 }
 0x9a9   :  { %v1853_v14 = vmul.f32 1.442695, %v1852_v12 }
 0x9aa   :  { %4560 = vpow2.f32 %v1801_v13 }
 0x9ab   :  { %4562 = vpow2.f32 %v1853_v14 }
 0x9b4   :  { %v4561_v15 = vpop.eup %4560 }
 0x9b5   :  { %v4563_v16 = vpop.eup %4562  ;;  %v1803_v17 = vadd.f32 1.0, %v4561_v15 }
 0x9b6   :  { %v1855_v18 = vadd.f32 1.0, %v4563_v16 }
 0x9b7   :  { %4564 = vrcp.f32 %v1803_v17 }
 0x9b8   :  { %4566 = vrcp.f32 %v1855_v18 }
 0x9c1   :  { %v4565_v19 = vpop.eup %4564 }
 0x9c2   :  { %v4567_v20 = vpop.eup %4566  ;;  %v1805_v21 = vmul.f32 %v4565_v19, %v1799_v6 }
 0x9c3   :  { %v1857_v22 = vmul.f32 %v4567_v20, %v1851_v9 }
 0x9c4   :  { %v1867_v24 = vpack.c.bf16 %v1805_v21, %v1805_v21 }
 0x9c5   :  { %v1944_v25 = vpack.c.bf16 %v1857_v22, %v1857_v22 }
 0x9c6   :  { %4118 = vmatmul.mubr.msk.bf16.vlgmr.msra.gmra.mrb[40].mxu0 %vm425_vm3, %v1867_v24 }
 0x9c7   :  { %4130 = vmatmul.mubr.msk.bf16.vlgmr.msra.gmra.mrb[40].mxu1 %vm425_vm3, %v1944_v25  ;;  %4141 = vmatprep.mubr.msk.bf16.mxu0 %vm4684_vm0, %v4683_v0 }
 0x9c8   :  { %4153 = vmatprep.mubr.msk.bf16.mxu1 %vm4684_vm0, %v4683_v0  ;;  %4134 = vmatpush3.bf16.msra.mxu0 %v4444_v26 }
 0x9c9   :  { %4146 = vmatpush3.bf16.msra.mxu1 %v4444_v26  ;;  %4135 = vmatprep.subr.bf16.mxu0 %v4683_v0 }
 0x9ca   :  { %4147 = vmatprep.subr.bf16.mxu1 %v4683_v0 }
 0x9cc   :  { %4136 = vmatpush3.bf16.msra.mxu0 %v4445_v27 }
 0x9cd   :  { %4148 = vmatpush3.bf16.msra.mxu1 %v4445_v27  ;;  %4137 = vmatprep.subr.bf16.mxu0 %v4683_v0 }
 0x9ce   :  { %4149 = vmatprep.subr.bf16.mxu1 %v4683_v0 }
 0x9d0   :  { %4138 = vmatpush3.bf16.msra.mxu0 %v4446_v28 }
 0x9d1   :  { %4150 = vmatpush3.bf16.msra.mxu1 %v4446_v28  ;;  %4139 = vmatprep.subr.bf16.mxu0 %v4683_v0 }
 0x9d2   :  { %4151 = vmatprep.subr.bf16.mxu1 %v4683_v0 }
 0x9d4   :  { %4140 = vmatpush3.bf16.msra.mxu0 %v4447_v29 }
 0x9d5   :  { %4152 = vmatpush3.bf16.msra.mxu1 %v4447_v29  ;;  %4157 = vmatprep.subr.bf16.mxu0 %v4683_v0  ;;  %v4452_v29 = vld [vmem:[#allocation3 + $0x180] sm:$0xff]  }
 0x9d6   :  { %4169 = vmatprep.subr.bf16.mxu1 %v4683_v0 }
 0xa99   :  { %v1931_v31 = vpop.f32.mrb[40].mxu0 }
 0xa9a   :  { %v1932_v32 = vadd.f32 %v1931_v31, %v1869_v30  ;;  %v1983_v34 = vpop.f32.mrb[40].mxu1  ;;  %v4119_v35 = vpop.f32.mrb[41].mxu0  ;;  %v4453_v30 = vld [vmem:[#allocation3 + $0x188] sm:$0xff]   ;;  %v4454_v31 = vld [vmem:[#allocation3 + $0x190] sm:$0xff]  }
 0xa9b   :  { %v1984_v36 = vadd.f32 %v1983_v34, %v1945_v33  ;;  %v4131_v37 = vpop.f32.mrb[41].mxu1  ;;  %v1934_v38 = vpop.f32.mrb[42].mxu0  ;;  %v2145_v33 = vld [vmem:[#allocation2 + $0xb0] sm:$0xff] }
 0xa9c   :  { %v1937_v40 = vadd.f32 %v1932_v32, %v1805_v21  ;;  %v1986_v41 = vpop.f32.mrb[42].mxu1  ;;  %v4120_v42 = vpop.f32.mrb[43].mxu0  ;;  %v4455_v32 = vld [vmem:[#allocation3 + $0x198] sm:$0xff]  }
 0xa9d   :  { %v1989_v43 = vadd.f32 %v1984_v36, %v1857_v22  ;;  %v4132_v44 = vpop.f32.mrb[43].mxu1  ;;  %v2221_v36 = vld [vmem:[#allocation2 + $0xb8] sm:$0xff] }
 0xa9e   :  { %v1938_v45 = vsub.f32 0.0, %v1937_v40 }
 0xa9f   :  { %v1990_v46 = vsub.f32 0.0, %v1989_v43 }
 0xaa0   :  { %v1939_v47 = vmul.f32 1.442695, %v1938_v45 }
 0xaa1   :  { %v1991_v48 = vmul.f32 1.442695, %v1990_v46 }
 0xaa2   :  { %4568 = vpow2.f32 %v1939_v47 }
 0xaa3   :  { %4570 = vpow2.f32 %v1991_v48 }
 0xaac   :  { %v4569_v49 = vpop.eup %4568 }
 0xaad   :  { %v4571_v50 = vpop.eup %4570  ;;  %v1941_v51 = vadd.f32 1.0, %v4569_v49 }
 0xaae   :  { %v1993_v52 = vadd.f32 1.0, %v4571_v50 }
 0xaaf   :  { %4572 = vrcp.f32 %v1941_v51 }
 0xab0   :  { %4574 = vrcp.f32 %v1993_v52 }
 0xab9   :  { %v4573_v53 = vpop.eup %4572 }
 0xaba   :  { %v4575_v54 = vpop.eup %4574  ;;  %v1943_v55 = vmul.f32 %v4573_v53, %v1937_v40 }
 0xabb   :  { %v1995_v56 = vmul.f32 %v4575_v54, %v1989_v43 }
 0xabc   :  { %v2005_v57 = vpack.c.bf16 %v1943_v55, %v1943_v55 }
 0xabd   :  { %v2082_v58 = vpack.c.bf16 %v1995_v56, %v1995_v56 }
 0xabe   :  { %4142 = vmatmul.mubr.msk.bf16.vlgmr.msra.gmra.mrb[44].mxu0 %vm425_vm3, %v2005_v57 }
 0xabf   :  { %4154 = vmatmul.mubr.msk.bf16.vlgmr.msra.gmra.mrb[44].mxu1 %vm425_vm3, %v2082_v58  ;;  %4165 = vmatprep.mubr.msk.bf16.mxu0 %vm4684_vm0, %v4683_v0 }
 0xac0   :  { %4177 = vmatprep.mubr.msk.bf16.mxu1 %vm4684_vm0, %v4683_v0  ;;  %4158 = vmatpush3.bf16.msra.mxu0 %v4448_v59 }
 0xac1   :  { %4170 = vmatpush3.bf16.msra.mxu1 %v4448_v59  ;;  %4159 = vmatprep.subr.bf16.mxu0 %v4683_v0 }
 0xac2   :  { %4171 = vmatprep.subr.bf16.mxu1 %v4683_v0 }
 0xac4   :  { %4160 = vmatpush3.bf16.msra.mxu0 %v4449_v60 }
 0xac5   :  { %4172 = vmatpush3.bf16.msra.mxu1 %v4449_v60  ;;  %4161 = vmatprep.subr.bf16.mxu0 %v4683_v0 }
 0xac6   :  { %4173 = vmatprep.subr.bf16.mxu1 %v4683_v0 }
 0xac8   :  { %4162 = vmatpush3.bf16.msra.mxu0 %v4450_v61 }
 0xac9   :  { %4174 = vmatpush3.bf16.msra.mxu1 %v4450_v61  ;;  %4163 = vmatprep.subr.bf16.mxu0 %v4683_v0 }
 0xaca   :  { %4175 = vmatprep.subr.bf16.mxu1 %v4683_v0 }
 0xacc   :  { %4164 = vmatpush3.bf16.msra.mxu0 %v4451_v62 }
 0xacd   :  { %4176 = vmatpush3.bf16.msra.mxu1 %v4451_v62  ;;  %4181 = vmatprep.subr.bf16.mxu0 %v4683_v0  ;;  %v4456_v62 = vld [vmem:[#allocation3 + $0x1a0] sm:$0xff]  }
 0xace   :  { %4193 = vmatprep.subr.bf16.mxu1 %v4683_v0 }
 0xb91   :  { %v2069_v1 = vpop.f32.mrb[44].mxu0 }
 0xb92   :  { %v2070_v2 = vadd.f32 %v2069_v1, %v2007_v63  ;;  %v2121_v4 = vpop.f32.mrb[44].mxu1  ;;  %v4143_v5 = vpop.f32.mrb[45].mxu0  ;;  %v4457_v63 = vld [vmem:[#allocation3 + $0x1a8] sm:$0xff]   ;;  %v4458_v1 = vld [vmem:[#allocation3 + $0x1b0] sm:$0xff]  }
 0xb93   :  { %v2122_v6 = vadd.f32 %v2121_v4, %v2083_v3  ;;  %v4155_v7 = vpop.f32.mrb[45].mxu1  ;;  %v2072_v8 = vpop.f32.mrb[46].mxu0  ;;  %v2283_v3 = vld [vmem:[#allocation2 + $0xc0] sm:$0xff] }
 0xb94   :  { %v2075_v9 = vadd.f32 %v2070_v2, %v1943_v55  ;;  %v2124_v10 = vpop.f32.mrb[46].mxu1  ;;  %v4144_v11 = vpop.f32.mrb[47].mxu0  ;;  %v4459_v2 = vld [vmem:[#allocation3 + $0x1b8] sm:$0xff]  }
 0xb95   :  { %v2127_v12 = vadd.f32 %v2122_v6, %v1995_v56  ;;  %v4156_v13 = vpop.f32.mrb[47].mxu1  ;;  %v2359_v6 = vld [vmem:[#allocation2 + $0xc8] sm:$0xff] }
 0xb96   :  { %v2076_v14 = vsub.f32 0.0, %v2075_v9 }
 0xb97   :  { %v2128_v15 = vsub.f32 0.0, %v2127_v12 }
 0xb98   :  { %v2077_v16 = vmul.f32 1.442695, %v2076_v14 }
 0xb99   :  { %v2129_v17 = vmul.f32 1.442695, %v2128_v15 }
 0xb9a   :  { %4576 = vpow2.f32 %v2077_v16 }
 0xb9b   :  { %4578 = vpow2.f32 %v2129_v17 }
 0xba4   :  { %v4577_v18 = vpop.eup %4576 }
 0xba5   :  { %v4579_v19 = vpop.eup %4578  ;;  %v2079_v20 = vadd.f32 1.0, %v4577_v18 }
 0xba6   :  { %v2131_v21 = vadd.f32 1.0, %v4579_v19 }
 0xba7   :  { %4580 = vrcp.f32 %v2079_v20 }
 0xba8   :  { %4582 = vrcp.f32 %v2131_v21 }
 0xbb1   :  { %v4581_v22 = vpop.eup %4580 }
 0xbb2   :  { %v4583_v24 = vpop.eup %4582  ;;  %v2081_v25 = vmul.f32 %v4581_v22, %v2075_v9 }
 0xbb3   :  { %v2133_v26 = vmul.f32 %v4583_v24, %v2127_v12 }
 0xbb4   :  { %v2143_v27 = vpack.c.bf16 %v2081_v25, %v2081_v25 }
 0xbb5   :  { %v2220_v28 = vpack.c.bf16 %v2133_v26, %v2133_v26 }
 0xbb6   :  { %4166 = vmatmul.mubr.msk.bf16.vlgmr.msra.gmra.mrb[48].mxu0 %vm425_vm3, %v2143_v27 }
 0xbb7   :  { %4178 = vmatmul.mubr.msk.bf16.vlgmr.msra.gmra.mrb[48].mxu1 %vm425_vm3, %v2220_v28  ;;  %4189 = vmatprep.mubr.msk.bf16.mxu0 %vm4684_vm0, %v4683_v0 }
 0xbb8   :  { %4201 = vmatprep.mubr.msk.bf16.mxu1 %vm4684_vm0, %v4683_v0  ;;  %4182 = vmatpush3.bf16.msra.mxu0 %v4452_v29 }
 0xbb9   :  { %4194 = vmatpush3.bf16.msra.mxu1 %v4452_v29  ;;  %4183 = vmatprep.subr.bf16.mxu0 %v4683_v0 }
 0xbba   :  { %4195 = vmatprep.subr.bf16.mxu1 %v4683_v0 }
 0xbbc   :  { %4184 = vmatpush3.bf16.msra.mxu0 %v4453_v30 }
 0xbbd   :  { %4196 = vmatpush3.bf16.msra.mxu1 %v4453_v30  ;;  %4185 = vmatprep.subr.bf16.mxu0 %v4683_v0 }
 0xbbe   :  { %4197 = vmatprep.subr.bf16.mxu1 %v4683_v0 }
 0xbc0   :  { %4186 = vmatpush3.bf16.msra.mxu0 %v4454_v31 }
 0xbc1   :  { %4198 = vmatpush3.bf16.msra.mxu1 %v4454_v31  ;;  %4187 = vmatprep.subr.bf16.mxu0 %v4683_v0 }
 0xbc2   :  { %4199 = vmatprep.subr.bf16.mxu1 %v4683_v0 }
 0xbc4   :  { %4188 = vmatpush3.bf16.msra.mxu0 %v4455_v32 }
 0xbc5   :  { %4200 = vmatpush3.bf16.msra.mxu1 %v4455_v32  ;;  %4205 = vmatprep.subr.bf16.mxu0 %v4683_v0  ;;  %v4460_v32 = vld [vmem:[#allocation3 + $0x1c0] sm:$0xff]  }
 0xbc6   :  { %4217 = vmatprep.subr.bf16.mxu1 %v4683_v0 }
 0xc89   :  { %v2207_v34 = vpop.f32.mrb[48].mxu0 }
 0xc8a   :  { %v2208_v35 = vadd.f32 %v2207_v34, %v2145_v33  ;;  %v2259_v37 = vpop.f32.mrb[48].mxu1  ;;  %v4167_v38 = vpop.f32.mrb[49].mxu0  ;;  %v4461_v33 = vld [vmem:[#allocation3 + $0x1c8] sm:$0xff]   ;;  %v4462_v34 = vld [vmem:[#allocation3 + $0x1d0] sm:$0xff]  }
 0xc8b   :  { %v2260_v40 = vadd.f32 %v2259_v37, %v2221_v36  ;;  %v4179_v41 = vpop.f32.mrb[49].mxu1  ;;  %v2210_v42 = vpop.f32.mrb[50].mxu0  ;;  %v2421_v36 = vld [vmem:[#allocation2 + $0xd0] sm:$0xff] }
 0xc8c   :  { %v2213_v43 = vadd.f32 %v2208_v35, %v2081_v25  ;;  %v2262_v44 = vpop.f32.mrb[50].mxu1  ;;  %v4168_v45 = vpop.f32.mrb[51].mxu0  ;;  %v4463_v35 = vld [vmem:[#allocation3 + $0x1d8] sm:$0xff]  }
 0xc8d   :  { %v2265_v46 = vadd.f32 %v2260_v40, %v2133_v26  ;;  %v4180_v47 = vpop.f32.mrb[51].mxu1  ;;  %v2497_v40 = vld [vmem:[#allocation2 + $0xd8] sm:$0xff] }
 0xc8e   :  { %v2214_v48 = vsub.f32 0.0, %v2213_v43 }
 0xc8f   :  { %v2266_v49 = vsub.f32 0.0, %v2265_v46 }
 0xc90   :  { %v2215_v50 = vmul.f32 1.442695, %v2214_v48 }
 0xc91   :  { %v2267_v51 = vmul.f32 1.442695, %v2266_v49 }
 0xc92   :  { %4584 = vpow2.f32 %v2215_v50 }
 0xc93   :  { %4586 = vpow2.f32 %v2267_v51 }
 0xc9c   :  { %v4585_v52 = vpop.eup %4584 }
 0xc9d   :  { %v4587_v53 = vpop.eup %4586  ;;  %v2217_v54 = vadd.f32 1.0, %v4585_v52 }
 0xc9e   :  { %v2269_v55 = vadd.f32 1.0, %v4587_v53 }
 0xc9f   :  { %4588 = vrcp.f32 %v2217_v54 }
 0xca0   :  { %4590 = vrcp.f32 %v2269_v55 }
 0xca9   :  { %v4589_v56 = vpop.eup %4588 }
 0xcaa   :  { %v4591_v57 = vpop.eup %4590  ;;  %v2219_v58 = vmul.f32 %v4589_v56, %v2213_v43 }
 0xcab   :  { %v2271_v59 = vmul.f32 %v4591_v57, %v2265_v46 }
 0xcac   :  { %v2281_v60 = vpack.c.bf16 %v2219_v58, %v2219_v58 }
 0xcad   :  { %v2358_v61 = vpack.c.bf16 %v2271_v59, %v2271_v59 }
 0xcae   :  { %4190 = vmatmul.mubr.msk.bf16.vlgmr.msra.gmra.mrb[52].mxu0 %vm425_vm3, %v2281_v60 }
 0xcaf   :  { %4202 = vmatmul.mubr.msk.bf16.vlgmr.msra.gmra.mrb[52].mxu1 %vm425_vm3, %v2358_v61  ;;  %4213 = vmatprep.mubr.msk.bf16.mxu0 %vm4684_vm0, %v4683_v0 }
 0xcb0   :  { %4225 = vmatprep.mubr.msk.bf16.mxu1 %vm4684_vm0, %v4683_v0  ;;  %4206 = vmatpush3.bf16.msra.mxu0 %v4456_v62 }
 0xcb1   :  { %4218 = vmatpush3.bf16.msra.mxu1 %v4456_v62  ;;  %4207 = vmatprep.subr.bf16.mxu0 %v4683_v0 }
 0xcb2   :  { %4219 = vmatprep.subr.bf16.mxu1 %v4683_v0 }
 0xcb4   :  { %4208 = vmatpush3.bf16.msra.mxu0 %v4457_v63 }
 0xcb5   :  { %4220 = vmatpush3.bf16.msra.mxu1 %v4457_v63  ;;  %4209 = vmatprep.subr.bf16.mxu0 %v4683_v0 }
 0xcb6   :  { %4221 = vmatprep.subr.bf16.mxu1 %v4683_v0 }
 0xcb8   :  { %4210 = vmatpush3.bf16.msra.mxu0 %v4458_v1 }
 0xcb9   :  { %4222 = vmatpush3.bf16.msra.mxu1 %v4458_v1  ;;  %4211 = vmatprep.subr.bf16.mxu0 %v4683_v0 }
 0xcba   :  { %4223 = vmatprep.subr.bf16.mxu1 %v4683_v0 }
 0xcbc   :  { %4212 = vmatpush3.bf16.msra.mxu0 %v4459_v2 }
 0xcbd   :  { %4224 = vmatpush3.bf16.msra.mxu1 %v4459_v2  ;;  %4229 = vmatprep.subr.bf16.mxu0 %v4683_v0  ;;  %v4464_v2 = vld [vmem:[#allocation3 + $0x1e0] sm:$0xff]  }
 0xcbe   :  { %4241 = vmatprep.subr.bf16.mxu1 %v4683_v0 }
 0xd81   :  { %v2345_v4 = vpop.f32.mrb[52].mxu0 }
 0xd82   :  { %v2346_v5 = vadd.f32 %v2345_v4, %v2283_v3  ;;  %v2397_v7 = vpop.f32.mrb[52].mxu1  ;;  %v4191_v8 = vpop.f32.mrb[53].mxu0  ;;  %v4465_v3 = vld [vmem:[#allocation3 + $0x1e8] sm:$0xff]   ;;  %v4466_v4 = vld [vmem:[#allocation3 + $0x1f0] sm:$0xff]  }
 0xd83   :  { %v2398_v9 = vadd.f32 %v2397_v7, %v2359_v6  ;;  %v4203_v10 = vpop.f32.mrb[53].mxu1  ;;  %v2348_v11 = vpop.f32.mrb[54].mxu0  ;;  %v2559_v6 = vld [vmem:[#allocation2 + $0xe0] sm:$0xff] }
 0xd84   :  { %v2351_v12 = vadd.f32 %v2346_v5, %v2219_v58  ;;  %v2400_v13 = vpop.f32.mrb[54].mxu1  ;;  %v4192_v14 = vpop.f32.mrb[55].mxu0  ;;  %v4467_v5 = vld [vmem:[#allocation3 + $0x1f8] sm:$0xff]  }
 0xd85   :  { %v2403_v15 = vadd.f32 %v2398_v9, %v2271_v59  ;;  %v4204_v16 = vpop.f32.mrb[55].mxu1  ;;  %v2635_v9 = vld [vmem:[#allocation2 + $0xe8] sm:$0xff] }
 0xd86   :  { %v2352_v17 = vsub.f32 0.0, %v2351_v12 }
 0xd87   :  { %v2404_v18 = vsub.f32 0.0, %v2403_v15 }
 0xd88   :  { %v2353_v19 = vmul.f32 1.442695, %v2352_v17 }
 0xd89   :  { %v2405_v20 = vmul.f32 1.442695, %v2404_v18 }
 0xd8a   :  { %4592 = vpow2.f32 %v2353_v19 }
 0xd8b   :  { %4594 = vpow2.f32 %v2405_v20 }
 0xd94   :  { %v4593_v21 = vpop.eup %4592 }
 0xd95   :  { %v4595_v22 = vpop.eup %4594  ;;  %v2355_v24 = vadd.f32 1.0, %v4593_v21 }
 0xd96   :  { %v2407_v25 = vadd.f32 1.0, %v4595_v22 }
 0xd97   :  { %4596 = vrcp.f32 %v2355_v24 }
 0xd98   :  { %4598 = vrcp.f32 %v2407_v25 }
 0xda1   :  { %v4597_v26 = vpop.eup %4596 }
 0xda2   :  { %v4599_v27 = vpop.eup %4598  ;;  %v2357_v28 = vmul.f32 %v4597_v26, %v2351_v12 }
 0xda3   :  { %v2409_v29 = vmul.f32 %v4599_v27, %v2403_v15 }
 0xda4   :  { %v2419_v30 = vpack.c.bf16 %v2357_v28, %v2357_v28 }
 0xda5   :  { %v2496_v31 = vpack.c.bf16 %v2409_v29, %v2409_v29 }
 0xda6   :  { %4214 = vmatmul.mubr.msk.bf16.vlgmr.msra.gmra.mrb[56].mxu0 %vm425_vm3, %v2419_v30 }
 0xda7   :  { %4226 = vmatmul.mubr.msk.bf16.vlgmr.msra.gmra.mrb[56].mxu1 %vm425_vm3, %v2496_v31  ;;  %4237 = vmatprep.mubr.msk.bf16.mxu0 %vm4684_vm0, %v4683_v0 }
 0xda8   :  { %4249 = vmatprep.mubr.msk.bf16.mxu1 %vm4684_vm0, %v4683_v0  ;;  %4230 = vmatpush3.bf16.msra.mxu0 %v4460_v32 }
 0xda9   :  { %4242 = vmatpush3.bf16.msra.mxu1 %v4460_v32  ;;  %4231 = vmatprep.subr.bf16.mxu0 %v4683_v0 }
 0xdaa   :  { %4243 = vmatprep.subr.bf16.mxu1 %v4683_v0 }
 0xdac   :  { %4232 = vmatpush3.bf16.msra.mxu0 %v4461_v33 }
 0xdad   :  { %4244 = vmatpush3.bf16.msra.mxu1 %v4461_v33  ;;  %4233 = vmatprep.subr.bf16.mxu0 %v4683_v0 }
 0xdae   :  { %4245 = vmatprep.subr.bf16.mxu1 %v4683_v0 }
 0xdb0   :  { %4234 = vmatpush3.bf16.msra.mxu0 %v4462_v34 }
 0xdb1   :  { %4246 = vmatpush3.bf16.msra.mxu1 %v4462_v34  ;;  %4235 = vmatprep.subr.bf16.mxu0 %v4683_v0 }
 0xdb2   :  { %4247 = vmatprep.subr.bf16.mxu1 %v4683_v0 }
 0xdb4   :  { %4236 = vmatpush3.bf16.msra.mxu0 %v4463_v35 }
 0xdb5   :  { %4248 = vmatpush3.bf16.msra.mxu1 %v4463_v35  ;;  %4253 = vmatprep.subr.bf16.mxu0 %v4683_v0  ;;  %v4468_v35 = vld [vmem:[#allocation3 + $0x200] sm:$0xff]  }
 0xdb6   :  { %4265 = vmatprep.subr.bf16.mxu1 %v4683_v0 }
 0xe79   :  { %v2483_v37 = vpop.f32.mrb[56].mxu0 }
 0xe7a   :  { %v2484_v38 = vadd.f32 %v2483_v37, %v2421_v36  ;;  %v2535_v41 = vpop.f32.mrb[56].mxu1  ;;  %v4215_v42 = vpop.f32.mrb[57].mxu0  ;;  %v4469_v36 = vld [vmem:[#allocation3 + $0x208] sm:$0xff]   ;;  %v4470_v37 = vld [vmem:[#allocation3 + $0x210] sm:$0xff]  }
 0xe7b   :  { %v2536_v43 = vadd.f32 %v2535_v41, %v2497_v40  ;;  %v4227_v44 = vpop.f32.mrb[57].mxu1  ;;  %v2486_v45 = vpop.f32.mrb[58].mxu0  ;;  %v2697_v40 = vld [vmem:[#allocation2 + $0xf0] sm:$0xff] }
 0xe7c   :  { %v2489_v46 = vadd.f32 %v2484_v38, %v2357_v28  ;;  %v2538_v47 = vpop.f32.mrb[58].mxu1  ;;  %v4216_v48 = vpop.f32.mrb[59].mxu0  ;;  %v4471_v38 = vld [vmem:[#allocation3 + $0x218] sm:$0xff]  }
 0xe7d   :  { %v2541_v49 = vadd.f32 %v2536_v43, %v2409_v29  ;;  %v4228_v50 = vpop.f32.mrb[59].mxu1  ;;  %v2773_v43 = vld [vmem:[#allocation2 + $0xf8] sm:$0xff] }
 0xe7e   :  { %v2490_v51 = vsub.f32 0.0, %v2489_v46 }
 0xe7f   :  { %v2542_v52 = vsub.f32 0.0, %v2541_v49 }
 0xe80   :  { %v2491_v53 = vmul.f32 1.442695, %v2490_v51 }
 0xe81   :  { %v2543_v54 = vmul.f32 1.442695, %v2542_v52 }
 0xe82   :  { %4600 = vpow2.f32 %v2491_v53 }
 0xe83   :  { %4602 = vpow2.f32 %v2543_v54 }
 0xe8c   :  { %v4601_v55 = vpop.eup %4600 }
 0xe8d   :  { %v4603_v56 = vpop.eup %4602  ;;  %v2493_v57 = vadd.f32 1.0, %v4601_v55 }
 0xe8e   :  { %v2545_v58 = vadd.f32 1.0, %v4603_v56 }
 0xe8f   :  { %4604 = vrcp.f32 %v2493_v57 }
 0xe90   :  { %4606 = vrcp.f32 %v2545_v58 }
 0xe99   :  { %v4605_v59 = vpop.eup %4604 }
 0xe9a   :  { %v4607_v60 = vpop.eup %4606  ;;  %v2495_v61 = vmul.f32 %v4605_v59, %v2489_v46 }
 0xe9b   :  { %v2547_v62 = vmul.f32 %v4607_v60, %v2541_v49 }
 0xe9c   :  { %v2557_v63 = vpack.c.bf16 %v2495_v61, %v2495_v61 }
 0xe9d   :  { %v2634_v1 = vpack.c.bf16 %v2547_v62, %v2547_v62 }
 0xe9e   :  { %4238 = vmatmul.mubr.msk.bf16.vlgmr.msra.gmra.mrb[60].mxu0 %vm425_vm3, %v2557_v63 }
 0xe9f   :  { %4250 = vmatmul.mubr.msk.bf16.vlgmr.msra.gmra.mrb[60].mxu1 %vm425_vm3, %v2634_v1  ;;  %4261 = vmatprep.mubr.msk.bf16.mxu0 %vm4684_vm0, %v4683_v0 }
 0xea0   :  { %4273 = vmatprep.mubr.msk.bf16.mxu1 %vm4684_vm0, %v4683_v0  ;;  %4254 = vmatpush3.bf16.msra.mxu0 %v4464_v2 }
 0xea1   :  { %4266 = vmatpush3.bf16.msra.mxu1 %v4464_v2  ;;  %4255 = vmatprep.subr.bf16.mxu0 %v4683_v0 }
 0xea2   :  { %4267 = vmatprep.subr.bf16.mxu1 %v4683_v0 }
 0xea4   :  { %4256 = vmatpush3.bf16.msra.mxu0 %v4465_v3 }
 0xea5   :  { %4268 = vmatpush3.bf16.msra.mxu1 %v4465_v3  ;;  %4257 = vmatprep.subr.bf16.mxu0 %v4683_v0 }
 0xea6   :  { %4269 = vmatprep.subr.bf16.mxu1 %v4683_v0 }
 0xea8   :  { %4258 = vmatpush3.bf16.msra.mxu0 %v4466_v4 }
 0xea9   :  { %4270 = vmatpush3.bf16.msra.mxu1 %v4466_v4  ;;  %4259 = vmatprep.subr.bf16.mxu0 %v4683_v0 }
 0xeaa   :  { %4271 = vmatprep.subr.bf16.mxu1 %v4683_v0 }
 0xeac   :  { %4260 = vmatpush3.bf16.msra.mxu0 %v4467_v5 }
 0xead   :  { %4272 = vmatpush3.bf16.msra.mxu1 %v4467_v5  ;;  %4277 = vmatprep.subr.bf16.mxu0 %v4683_v0  ;;  %v4472_v5 = vld [vmem:[#allocation3 + $0x220] sm:$0xff]  }
 0xeae   :  { %4289 = vmatprep.subr.bf16.mxu1 %v4683_v0 }
 0xf71   :  { %v2621_v7 = vpop.f32.mrb[60].mxu0 }
 0xf72   :  { %v2622_v8 = vadd.f32 %v2621_v7, %v2559_v6  ;;  %v2673_v10 = vpop.f32.mrb[60].mxu1  ;;  %v4239_v11 = vpop.f32.mrb[61].mxu0  ;;  %v4473_v6 = vld [vmem:[#allocation3 + $0x228] sm:$0xff]   ;;  %v4474_v7 = vld [vmem:[#allocation3 + $0x230] sm:$0xff]  }
 0xf73   :  { %v2674_v12 = vadd.f32 %v2673_v10, %v2635_v9  ;;  %v4251_v13 = vpop.f32.mrb[61].mxu1  ;;  %v2624_v14 = vpop.f32.mrb[62].mxu0  ;;  %v2835_v9 = vld [vmem:[#allocation2 + $0x100] sm:$0xff] }
 0xf74   :  { %v2627_v15 = vadd.f32 %v2622_v8, %v2495_v61  ;;  %v2676_v16 = vpop.f32.mrb[62].mxu1  ;;  %v4240_v17 = vpop.f32.mrb[63].mxu0  ;;  %v4475_v8 = vld [vmem:[#allocation3 + $0x238] sm:$0xff]  }
 0xf75   :  { %v2679_v18 = vadd.f32 %v2674_v12, %v2547_v62  ;;  %v4252_v19 = vpop.f32.mrb[63].mxu1  ;;  %v2911_v12 = vld [vmem:[#allocation2 + $0x108] sm:$0xff] }
 0xf76   :  { %v2628_v20 = vsub.f32 0.0, %v2627_v15 }
 0xf77   :  { %v2680_v21 = vsub.f32 0.0, %v2679_v18 }
 0xf78   :  { %v2629_v22 = vmul.f32 1.442695, %v2628_v20 }
 0xf79   :  { %v2681_v24 = vmul.f32 1.442695, %v2680_v21 }
 0xf7a   :  { %4608 = vpow2.f32 %v2629_v22 }
 0xf7b   :  { %4610 = vpow2.f32 %v2681_v24 }
 0xf84   :  { %v4609_v25 = vpop.eup %4608 }
 0xf85   :  { %v4611_v26 = vpop.eup %4610  ;;  %v2631_v27 = vadd.f32 1.0, %v4609_v25 }
 0xf86   :  { %v2683_v28 = vadd.f32 1.0, %v4611_v26 }
 0xf87   :  { %4612 = vrcp.f32 %v2631_v27 }
 0xf88   :  { %4614 = vrcp.f32 %v2683_v28 }
 0xf91   :  { %v4613_v29 = vpop.eup %4612 }
 0xf92   :  { %v4615_v30 = vpop.eup %4614  ;;  %v2633_v31 = vmul.f32 %v4613_v29, %v2627_v15 }
 0xf93   :  { %v2685_v32 = vmul.f32 %v4615_v30, %v2679_v18 }
 0xf94   :  { %v2695_v33 = vpack.c.bf16 %v2633_v31, %v2633_v31 }
 0xf95   :  { %v2772_v34 = vpack.c.bf16 %v2685_v32, %v2685_v32 }
 0xf96   :  { %4262 = vmatmul.mubr.msk.bf16.vlgmr.msra.gmra.mrb[64].mxu0 %vm425_vm3, %v2695_v33 }
 0xf97   :  { %4274 = vmatmul.mubr.msk.bf16.vlgmr.msra.gmra.mrb[64].mxu1 %vm425_vm3, %v2772_v34  ;;  %4285 = vmatprep.mubr.msk.bf16.mxu0 %vm4684_vm0, %v4683_v0 }
 0xf98   :  { %4297 = vmatprep.mubr.msk.bf16.mxu1 %vm4684_vm0, %v4683_v0  ;;  %4278 = vmatpush3.bf16.msra.mxu0 %v4468_v35 }
 0xf99   :  { %4290 = vmatpush3.bf16.msra.mxu1 %v4468_v35  ;;  %4279 = vmatprep.subr.bf16.mxu0 %v4683_v0 }
 0xf9a   :  { %4291 = vmatprep.subr.bf16.mxu1 %v4683_v0 }
 0xf9c   :  { %4280 = vmatpush3.bf16.msra.mxu0 %v4469_v36 }
 0xf9d   :  { %4292 = vmatpush3.bf16.msra.mxu1 %v4469_v36  ;;  %4281 = vmatprep.subr.bf16.mxu0 %v4683_v0 }
 0xf9e   :  { %4293 = vmatprep.subr.bf16.mxu1 %v4683_v0 }
 0xfa0   :  { %4282 = vmatpush3.bf16.msra.mxu0 %v4470_v37 }
 0xfa1   :  { %4294 = vmatpush3.bf16.msra.mxu1 %v4470_v37  ;;  %4283 = vmatprep.subr.bf16.mxu0 %v4683_v0 }
 0xfa2   :  { %4295 = vmatprep.subr.bf16.mxu1 %v4683_v0 }
 0xfa4   :  { %4284 = vmatpush3.bf16.msra.mxu0 %v4471_v38 }
 0xfa5   :  { %4296 = vmatpush3.bf16.msra.mxu1 %v4471_v38  ;;  %4301 = vmatprep.subr.bf16.mxu0 %v4683_v0  ;;  %v4476_v38 = vld [vmem:[#allocation3 + $0x240] sm:$0xff]  }
 0xfa6   :  { %4313 = vmatprep.subr.bf16.mxu1 %v4683_v0 }
0x1069   :  { %v2759_v41 = vpop.f32.mrb[64].mxu0 }
0x106a   :  { %v2760_v42 = vadd.f32 %v2759_v41, %v2697_v40  ;;  %v2811_v44 = vpop.f32.mrb[64].mxu1  ;;  %v4263_v45 = vpop.f32.mrb[65].mxu0  ;;  %v4477_v40 = vld [vmem:[#allocation3 + $0x248] sm:$0xff]   ;;  %v4478_v41 = vld [vmem:[#allocation3 + $0x250] sm:$0xff]  }
0x106b   :  { %v2812_v46 = vadd.f32 %v2811_v44, %v2773_v43  ;;  %v4275_v47 = vpop.f32.mrb[65].mxu1  ;;  %v2762_v48 = vpop.f32.mrb[66].mxu0  ;;  %v2973_v43 = vld [vmem:[#allocation2 + $0x110] sm:$0xff] }
0x106c   :  { %v2765_v49 = vadd.f32 %v2760_v42, %v2633_v31  ;;  %v2814_v50 = vpop.f32.mrb[66].mxu1  ;;  %v4264_v51 = vpop.f32.mrb[67].mxu0  ;;  %v4479_v42 = vld [vmem:[#allocation3 + $0x258] sm:$0xff]  }
0x106d   :  { %v2817_v52 = vadd.f32 %v2812_v46, %v2685_v32  ;;  %v4276_v53 = vpop.f32.mrb[67].mxu1  ;;  %v3049_v46 = vld [vmem:[#allocation2 + $0x118] sm:$0xff] }
0x106e   :  { %v2766_v54 = vsub.f32 0.0, %v2765_v49 }
0x106f   :  { %v2818_v55 = vsub.f32 0.0, %v2817_v52 }
0x1070   :  { %v2767_v56 = vmul.f32 1.442695, %v2766_v54 }
0x1071   :  { %v2819_v57 = vmul.f32 1.442695, %v2818_v55 }
0x1072   :  { %4616 = vpow2.f32 %v2767_v56 }
0x1073   :  { %4618 = vpow2.f32 %v2819_v57 }
0x107c   :  { %v4617_v58 = vpop.eup %4616 }
0x107d   :  { %v4619_v59 = vpop.eup %4618  ;;  %v2769_v60 = vadd.f32 1.0, %v4617_v58 }
0x107e   :  { %v2821_v61 = vadd.f32 1.0, %v4619_v59 }
0x107f   :  { %4620 = vrcp.f32 %v2769_v60 }
0x1080   :  { %4622 = vrcp.f32 %v2821_v61 }
0x1089   :  { %v4621_v62 = vpop.eup %4620 }
0x108a   :  { %v4623_v63 = vpop.eup %4622  ;;  %v2771_v1 = vmul.f32 %v4621_v62, %v2765_v49 }
0x108b   :  { %v2823_v2 = vmul.f32 %v4623_v63, %v2817_v52 }
0x108c   :  { %v2833_v3 = vpack.c.bf16 %v2771_v1, %v2771_v1 }
0x108d   :  { %v2910_v4 = vpack.c.bf16 %v2823_v2, %v2823_v2 }
0x108e   :  { %4286 = vmatmul.mubr.msk.bf16.vlgmr.msra.gmra.mrb[68].mxu0 %vm425_vm3, %v2833_v3 }
0x108f   :  { %4298 = vmatmul.mubr.msk.bf16.vlgmr.msra.gmra.mrb[68].mxu1 %vm425_vm3, %v2910_v4  ;;  %4309 = vmatprep.mubr.msk.bf16.mxu0 %vm4684_vm0, %v4683_v0 }
0x1090   :  { %4321 = vmatprep.mubr.msk.bf16.mxu1 %vm4684_vm0, %v4683_v0  ;;  %4302 = vmatpush3.bf16.msra.mxu0 %v4472_v5 }
0x1091   :  { %4314 = vmatpush3.bf16.msra.mxu1 %v4472_v5  ;;  %4303 = vmatprep.subr.bf16.mxu0 %v4683_v0 }
0x1092   :  { %4315 = vmatprep.subr.bf16.mxu1 %v4683_v0 }
0x1094   :  { %4304 = vmatpush3.bf16.msra.mxu0 %v4473_v6 }
0x1095   :  { %4316 = vmatpush3.bf16.msra.mxu1 %v4473_v6  ;;  %4305 = vmatprep.subr.bf16.mxu0 %v4683_v0 }
0x1096   :  { %4317 = vmatprep.subr.bf16.mxu1 %v4683_v0 }
0x1098   :  { %4306 = vmatpush3.bf16.msra.mxu0 %v4474_v7 }
0x1099   :  { %4318 = vmatpush3.bf16.msra.mxu1 %v4474_v7  ;;  %4307 = vmatprep.subr.bf16.mxu0 %v4683_v0 }
0x109a   :  { %4319 = vmatprep.subr.bf16.mxu1 %v4683_v0 }
0x109c   :  { %4308 = vmatpush3.bf16.msra.mxu0 %v4475_v8 }
0x109d   :  { %4320 = vmatpush3.bf16.msra.mxu1 %v4475_v8  ;;  %4325 = vmatprep.subr.bf16.mxu0 %v4683_v0  ;;  %v4480_v8 = vld [vmem:[#allocation3 + $0x260] sm:$0xff]  }
0x109e   :  { %4337 = vmatprep.subr.bf16.mxu1 %v4683_v0 }
0x1161   :  { %v2897_v10 = vpop.f32.mrb[68].mxu0 }
0x1162   :  { %v2898_v11 = vadd.f32 %v2897_v10, %v2835_v9  ;;  %v2949_v13 = vpop.f32.mrb[68].mxu1  ;;  %v4287_v14 = vpop.f32.mrb[69].mxu0  ;;  %v4481_v9 = vld [vmem:[#allocation3 + $0x268] sm:$0xff]   ;;  %v4482_v10 = vld [vmem:[#allocation3 + $0x270] sm:$0xff]  }
0x1163   :  { %v2950_v15 = vadd.f32 %v2949_v13, %v2911_v12  ;;  %v4299_v16 = vpop.f32.mrb[69].mxu1  ;;  %v2900_v17 = vpop.f32.mrb[70].mxu0  ;;  %v3111_v12 = vld [vmem:[#allocation2 + $0x120] sm:$0xff] }
0x1164   :  { %v2903_v18 = vadd.f32 %v2898_v11, %v2771_v1  ;;  %v2952_v19 = vpop.f32.mrb[70].mxu1  ;;  %v4288_v20 = vpop.f32.mrb[71].mxu0  ;;  %v4483_v11 = vld [vmem:[#allocation3 + $0x278] sm:$0xff]  }
0x1165   :  { %v2955_v21 = vadd.f32 %v2950_v15, %v2823_v2  ;;  %v4300_v22 = vpop.f32.mrb[71].mxu1  ;;  %v3187_v15 = vld [vmem:[#allocation2 + $0x128] sm:$0xff] }
0x1166   :  { %v2904_v24 = vsub.f32 0.0, %v2903_v18 }
0x1167   :  { %v2956_v25 = vsub.f32 0.0, %v2955_v21 }
0x1168   :  { %v2905_v26 = vmul.f32 1.442695, %v2904_v24 }
0x1169   :  { %v2957_v27 = vmul.f32 1.442695, %v2956_v25 }
0x116a   :  { %4624 = vpow2.f32 %v2905_v26 }
0x116b   :  { %4626 = vpow2.f32 %v2957_v27 }
0x1174   :  { %v4625_v28 = vpop.eup %4624 }
0x1175   :  { %v4627_v29 = vpop.eup %4626  ;;  %v2907_v30 = vadd.f32 1.0, %v4625_v28 }
0x1176   :  { %v2959_v31 = vadd.f32 1.0, %v4627_v29 }
0x1177   :  { %4628 = vrcp.f32 %v2907_v30 }
0x1178   :  { %4630 = vrcp.f32 %v2959_v31 }
0x1181   :  { %v4629_v32 = vpop.eup %4628 }
0x1182   :  { %v4631_v33 = vpop.eup %4630  ;;  %v2909_v34 = vmul.f32 %v4629_v32, %v2903_v18 }
0x1183   :  { %v2961_v35 = vmul.f32 %v4631_v33, %v2955_v21 }
0x1184   :  { %v2971_v36 = vpack.c.bf16 %v2909_v34, %v2909_v34 }
0x1185   :  { %v3048_v37 = vpack.c.bf16 %v2961_v35, %v2961_v35 }
0x1186   :  { %4310 = vmatmul.mubr.msk.bf16.vlgmr.msra.gmra.mrb[72].mxu0 %vm425_vm3, %v2971_v36 }
0x1187   :  { %4322 = vmatmul.mubr.msk.bf16.vlgmr.msra.gmra.mrb[72].mxu1 %vm425_vm3, %v3048_v37  ;;  %4333 = vmatprep.mubr.msk.bf16.mxu0 %vm4684_vm0, %v4683_v0 }
0x1188   :  { %4345 = vmatprep.mubr.msk.bf16.mxu1 %vm4684_vm0, %v4683_v0  ;;  %4326 = vmatpush3.bf16.msra.mxu0 %v4476_v38 }
0x1189   :  { %4338 = vmatpush3.bf16.msra.mxu1 %v4476_v38  ;;  %4327 = vmatprep.subr.bf16.mxu0 %v4683_v0 }
0x118a   :  { %4339 = vmatprep.subr.bf16.mxu1 %v4683_v0 }
0x118c   :  { %4328 = vmatpush3.bf16.msra.mxu0 %v4477_v40 }
0x118d   :  { %4340 = vmatpush3.bf16.msra.mxu1 %v4477_v40  ;;  %4329 = vmatprep.subr.bf16.mxu0 %v4683_v0 }
0x118e   :  { %4341 = vmatprep.subr.bf16.mxu1 %v4683_v0 }
0x1190   :  { %4330 = vmatpush3.bf16.msra.mxu0 %v4478_v41 }
0x1191   :  { %4342 = vmatpush3.bf16.msra.mxu1 %v4478_v41  ;;  %4331 = vmatprep.subr.bf16.mxu0 %v4683_v0 }
0x1192   :  { %4343 = vmatprep.subr.bf16.mxu1 %v4683_v0 }
0x1194   :  { %4332 = vmatpush3.bf16.msra.mxu0 %v4479_v42 }
0x1195   :  { %4344 = vmatpush3.bf16.msra.mxu1 %v4479_v42  ;;  %4349 = vmatprep.subr.bf16.mxu0 %v4683_v0  ;;  %v4484_v42 = vld [vmem:[%s5323_s8] sm:$0xff]  }
0x1196   :  { %4361 = vmatprep.subr.bf16.mxu1 %v4683_v0 }
0x1259   :  { %v3035_v44 = vpop.f32.mrb[72].mxu0 }
0x125a   :  { %v3036_v45 = vadd.f32 %v3035_v44, %v2973_v43  ;;  %v3087_v47 = vpop.f32.mrb[72].mxu1  ;;  %v4311_v48 = vpop.f32.mrb[73].mxu0  ;;  %v4485_v43 = vld [vmem:[%s5323_s8 + $0x8] sm:$0xff]   ;;  %v4486_v44 = vld [vmem:[%s5323_s8 + $0x10] sm:$0xff]  }
0x125b   :  { %v3088_v49 = vadd.f32 %v3087_v47, %v3049_v46  ;;  %v4323_v50 = vpop.f32.mrb[73].mxu1  ;;  %v3038_v51 = vpop.f32.mrb[74].mxu0  ;;  %v3249_v46 = vld [vmem:[#allocation2 + $0x130] sm:$0xff] }
0x125c   :  { %v3041_v52 = vadd.f32 %v3036_v45, %v2909_v34  ;;  %v3090_v53 = vpop.f32.mrb[74].mxu1  ;;  %v4312_v54 = vpop.f32.mrb[75].mxu0  ;;  %v4487_v45 = vld [vmem:[%s5323_s8 + $0x18] sm:$0xff]  }
0x125d   :  { %v3093_v55 = vadd.f32 %v3088_v49, %v2961_v35  ;;  %v4324_v56 = vpop.f32.mrb[75].mxu1  ;;  %v3325_v49 = vld [vmem:[#allocation2 + $0x138] sm:$0xff] }
0x125e   :  { %v3042_v57 = vsub.f32 0.0, %v3041_v52 }
0x125f   :  { %v3094_v58 = vsub.f32 0.0, %v3093_v55 }
0x1260   :  { %v3043_v59 = vmul.f32 1.442695, %v3042_v57 }
0x1261   :  { %v3095_v60 = vmul.f32 1.442695, %v3094_v58 }
0x1262   :  { %4632 = vpow2.f32 %v3043_v59 }
0x1263   :  { %4634 = vpow2.f32 %v3095_v60 }
0x126c   :  { %v4633_v61 = vpop.eup %4632 }
0x126d   :  { %v4635_v62 = vpop.eup %4634  ;;  %v3045_v63 = vadd.f32 1.0, %v4633_v61 }
0x126e   :  { %v3097_v1 = vadd.f32 1.0, %v4635_v62 }
0x126f   :  { %4636 = vrcp.f32 %v3045_v63 }
0x1270   :  { %4638 = vrcp.f32 %v3097_v1 }
0x1279   :  { %v4637_v2 = vpop.eup %4636 }
0x127a   :  { %v4639_v3 = vpop.eup %4638  ;;  %v3047_v4 = vmul.f32 %v4637_v2, %v3041_v52 }
0x127b   :  { %v3099_v5 = vmul.f32 %v4639_v3, %v3093_v55 }
0x127c   :  { %v3109_v6 = vpack.c.bf16 %v3047_v4, %v3047_v4 }
0x127d   :  { %v3186_v7 = vpack.c.bf16 %v3099_v5, %v3099_v5 }
0x127e   :  { %4334 = vmatmul.mubr.msk.bf16.vlgmr.msra.gmra.mrb[76].mxu0 %vm425_vm3, %v3109_v6 }
0x127f   :  { %4346 = vmatmul.mubr.msk.bf16.vlgmr.msra.gmra.mrb[76].mxu1 %vm425_vm3, %v3186_v7  ;;  %4357 = vmatprep.mubr.msk.bf16.mxu0 %vm4684_vm0, %v4683_v0 }
0x1280   :  { %4369 = vmatprep.mubr.msk.bf16.mxu1 %vm4684_vm0, %v4683_v0  ;;  %4350 = vmatpush3.bf16.msra.mxu0 %v4480_v8 }
0x1281   :  { %4362 = vmatpush3.bf16.msra.mxu1 %v4480_v8  ;;  %4351 = vmatprep.subr.bf16.mxu0 %v4683_v0 }
0x1282   :  { %4363 = vmatprep.subr.bf16.mxu1 %v4683_v0 }
0x1284   :  { %4352 = vmatpush3.bf16.msra.mxu0 %v4481_v9 }
0x1285   :  { %4364 = vmatpush3.bf16.msra.mxu1 %v4481_v9  ;;  %4353 = vmatprep.subr.bf16.mxu0 %v4683_v0 }
0x1286   :  { %4365 = vmatprep.subr.bf16.mxu1 %v4683_v0 }
0x1288   :  { %4354 = vmatpush3.bf16.msra.mxu0 %v4482_v10 }
0x1289   :  { %4366 = vmatpush3.bf16.msra.mxu1 %v4482_v10  ;;  %4355 = vmatprep.subr.bf16.mxu0 %v4683_v0  ;;  %v3537_v10 = vld [vmem:[%s5324_s9] ss:$0 sm:$0xff] }
0x128a   :  { %4367 = vmatprep.subr.bf16.mxu1 %v4683_v0 }
0x128c   :  { %4356 = vmatpush3.bf16.msra.mxu0 %v4483_v11 }
0x128d   :  { %4368 = vmatpush3.bf16.msra.mxu1 %v4483_v11  ;;  %4373 = vmatprep.subr.bf16.mxu0 %v4683_v0  ;;  %v491_v11 = vmul.f32 %v3537_v10, %v4822_v23 }
0x128e   :  { %4385 = vmatprep.subr.bf16.mxu1 %v4683_v0 }
0x1351   :  { %v3173_v13 = vpop.f32.mrb[76].mxu0 }
0x1352   :  { %v3174_v14 = vadd.f32 %v3173_v13, %v3111_v12  ;;  %v3225_v16 = vpop.f32.mrb[76].mxu1  ;;  %v4335_v17 = vpop.f32.mrb[77].mxu0  ;;  %v3538_v12 = vld [vmem:[%s5325_s10] ss:$0 sm:$0xff]  ;;  %v492_v13 = vmul.f32 %v3537_v10, %v4846_v39 }
0x1353   :  { %v3226_v18 = vadd.f32 %v3225_v16, %v3187_v15  ;;  %v4347_v19 = vpop.f32.mrb[77].mxu1  ;;  %v3176_v20 = vpop.f32.mrb[78].mxu0 }
0x1354   :  { %v3179_v21 = vadd.f32 %v3174_v14, %v3047_v4  ;;  %v3228_v22 = vpop.f32.mrb[78].mxu1  ;;  %v4336_v24 = vpop.f32.mrb[79].mxu0  ;;  %v500_v14 = vadd.f32 %v3538_v12, %v491_v11  ;;  %v501_v16 = vadd.f32 %v3538_v12, %v492_v13 }
0x1355   :  { %v3231_v25 = vadd.f32 %v3226_v18, %v3099_v5  ;;  %v4348_v26 = vpop.f32.mrb[79].mxu1 }
0x1356   :  { %v3180_v27 = vsub.f32 0.0, %v3179_v21 }
0x1357   :  { %v3232_v28 = vsub.f32 0.0, %v3231_v25 }
0x1358   :  { %v3181_v29 = vmul.f32 1.442695, %v3180_v27 }
0x1359   :  { %v3233_v30 = vmul.f32 1.442695, %v3232_v28 }
0x135a   :  { %4640 = vpow2.f32 %v3181_v29 }
0x135b   :  { %4642 = vpow2.f32 %v3233_v30 }
0x1364   :  { %v4641_v31 = vpop.eup %4640 }
0x1365   :  { %v4643_v32 = vpop.eup %4642  ;;  %v3183_v33 = vadd.f32 1.0, %v4641_v31 }
0x1366   :  { %v3235_v34 = vadd.f32 1.0, %v4643_v32 }
0x1367   :  { %4644 = vrcp.f32 %v3183_v33 }
0x1368   :  { %4646 = vrcp.f32 %v3235_v34 }
0x1371   :  { %v4645_v35 = vpop.eup %4644 }
0x1372   :  { %v4647_v36 = vpop.eup %4646  ;;  %v3185_v37 = vmul.f32 %v4645_v35, %v3179_v21 }
0x1373   :  { %v3237_v38 = vmul.f32 %v4647_v36, %v3231_v25 }
0x1374   :  { %v3247_v40 = vpack.c.bf16 %v3185_v37, %v3185_v37 }
0x1375   :  { %v3324_v41 = vpack.c.bf16 %v3237_v38, %v3237_v38 }
0x1376   :  { %4358 = vmatmul.mubr.msk.bf16.vlgmr.msra.gmra.mrb[80].mxu0 %vm425_vm3, %v3247_v40 }
0x1377   :  { %4370 = vmatmul.mubr.msk.bf16.vlgmr.msra.gmra.mrb[80].mxu1 %vm425_vm3, %v3324_v41  ;;  %4381 = vmatprep.mubr.msk.bf16.mxu0 %vm4684_vm0, %v4683_v0 }
0x1378   :  { %4393 = vmatprep.mubr.msk.bf16.mxu1 %vm4684_vm0, %v4683_v0  ;;  %4374 = vmatpush3.bf16.msra.mxu0 %v4484_v42 }
0x1379   :  { %4386 = vmatpush3.bf16.msra.mxu1 %v4484_v42  ;;  %4375 = vmatprep.subr.bf16.mxu0 %v4683_v0 }
0x137a   :  { %4387 = vmatprep.subr.bf16.mxu1 %v4683_v0 }
0x137c   :  { %4376 = vmatpush3.bf16.msra.mxu0 %v4485_v43 }
0x137d   :  { %4388 = vmatpush3.bf16.msra.mxu1 %v4485_v43  ;;  %4377 = vmatprep.subr.bf16.mxu0 %v4683_v0 }
0x137e   :  { %4389 = vmatprep.subr.bf16.mxu1 %v4683_v0 }
0x1380   :  { %4378 = vmatpush3.bf16.msra.mxu0 %v4486_v44 }
0x1381   :  { %4390 = vmatpush3.bf16.msra.mxu1 %v4486_v44  ;;  %4379 = vmatprep.subr.bf16.mxu0 %v4683_v0 }
0x1382   :  { %4391 = vmatprep.subr.bf16.mxu1 %v4683_v0 }
0x1384   :  { %4380 = vmatpush3.bf16.msra.mxu0 %v4487_v45 }
0x1385   :  { %4392 = vmatpush3.bf16.msra.mxu1 %v4487_v45 }
0x1449   :  { %v3311_v47 = vpop.f32.mrb[80].mxu0 }
0x144a   :  { %v3312_v48 = vadd.f32 %v3311_v47, %v3249_v46  ;;  %v3363_v50 = vpop.f32.mrb[80].mxu1  ;;  %v4359_v51 = vpop.f32.mrb[81].mxu0 }
0x144b   :  { %v3364_v52 = vadd.f32 %v3363_v50, %v3325_v49  ;;  %v4371_v53 = vpop.f32.mrb[81].mxu1  ;;  %v3314_v54 = vpop.f32.mrb[82].mxu0 }
0x144c   :  { %v3317_v55 = vadd.f32 %v3312_v48, %v3185_v37  ;;  %v3366_v56 = vpop.f32.mrb[82].mxu1  ;;  %v4360_v57 = vpop.f32.mrb[83].mxu0 }
0x144d   :  { %v3369_v58 = vadd.f32 %v3364_v52, %v3237_v38  ;;  %v4372_v0 = vpop.f32.mrb[83].mxu1 }
0x144e   :  { %v3318_v59 = vsub.f32 0.0, %v3317_v55 }
0x144f   :  { %v3370_v60 = vsub.f32 0.0, %v3369_v58 }
0x1450   :  { %v3319_v61 = vmul.f32 1.442695, %v3318_v59 }
0x1451   :  { %v3371_v62 = vmul.f32 1.442695, %v3370_v60 }
0x1452   :  { %4648 = vpow2.f32 %v3319_v61 }
0x1453   :  { %4650 = vpow2.f32 %v3371_v62 }
0x145c   :  { %v4649_v63 = vpop.eup %4648 }
0x145d   :  { %v4651_v1 = vpop.eup %4650  ;;  %v3321_v2 = vadd.f32 1.0, %v4649_v63 }
0x145e   :  { %v3373_v3 = vadd.f32 1.0, %v4651_v1 }
0x145f   :  { %4652 = vrcp.f32 %v3321_v2 }
0x1460   :  { %4654 = vrcp.f32 %v3373_v3 }
0x1469   :  { %v4653_v4 = vpop.eup %4652 }
0x146a   :  { %v4655_v5 = vpop.eup %4654  ;;  %v3323_v6 = vmul.f32 %v4653_v4, %v3317_v55 }
0x146b   :  { %v3375_v7 = vmul.f32 %v4655_v5, %v3369_v58 }
0x146c   :  { %v3376_v8 = vpack.c.bf16 %v3323_v6, %v3323_v6 }
0x146d   :  { %v3445_v9 = vpack.c.bf16 %v3375_v7, %v3375_v7 }
0x146e   :  { %4382 = vmatmul.mubr.msk.bf16.vlgmr.msra.gmra.mrb[84].mxu0 %vm425_vm3, %v3376_v8 }
0x146f   :  { %4394 = vmatmul.mubr.msk.bf16.vlgmr.msra.gmra.mrb[84].mxu1 %vm425_vm3, %v3445_v9 }
0x1541   :  { %v3438_v15 = vpop.f32.mrb[84].mxu0 }
0x1542   :  { %v3439_v17 = vadd.f32 %v3438_v15, %v500_v14  ;;  %v3483_v18 = vpop.f32.mrb[84].mxu1  ;;  %v4383_v19 = vpop.f32.mrb[85].mxu0 }
0x1543   :  { %v3484_v20 = vadd.f32 %v3483_v18, %v501_v16  ;;  %v4395_v21 = vpop.f32.mrb[85].mxu1  ;;  %v3441_v22 = vpop.f32.mrb[86].mxu0 }
0x1544   :  { %3444 = vst.msk [vmem:[%s5326_s11] sm:$0xff] %vm513_vm2, %v3439_v17  ;;  %v3486_v23 = vpop.f32.mrb[86].mxu1  ;;  %v4384_v24 = vpop.f32.mrb[87].mxu0 }
0x1545   :  { %3489 = vst.msk [vmem:[%s5326_s11 + $0x8] sm:$0xff] %vm513_vm2, %v3484_v20  ;;  %v4396_v39 = vpop.f32.mrb[87].mxu1 }
0x1546   :  { %3494 = vsyncpa [#allocation4], 1 }

</bundles_post_ra>
